<compile_context>
chip_gen: v5e
topology: v5e:2x2
jax: 0.10.0
libtpu: 0.0.40
codegen_flags: <defaults>
</compile_context>

<pallas_src>
import functools

import jax
import jax.numpy as jnp
from jax.experimental import pallas as pl
from jax.experimental.pallas import tpu as pltpu

EPS = 1e-5  # nn.BatchNorm2d default eps


def _silu(z, approx):
    # z * sigmoid(z); the reciprocal is routed to the EUP (vrcp) when the
    # reduced-precision (bf16) path is active.
    return z * pl.reciprocal(1.0 + jnp.exp(-z), approx=approx)


def _vmem_limit_bytes(streamed_block_bytes, resident_bytes):
    """Scoped-VMEM hint: double-buffered streamed blocks + resident operands +
    compiler slack; never below Mosaic's 32 MiB default, capped at the 64 MiB
    physically available per core on v7x."""
    need = 2 * streamed_block_bytes + resident_bytes + (8 << 20)
    return int(min(max(need, 32 << 20), 64 << 20))


# -------------- kernel A: 3x3 conv + bias + SiLU + BN-stat partials ------------

def conv3_silu_stats_kernel(xp_ref, w_ref, b_ref, ml_ref, mr_ref,
                            y_ref, s_ref, q_ref, *, hw, width, approx):
    """One image per program.

    xp_ref: ((H+2)*W + 2, C) H-padded flattened slab (compute dtype); the tap
            (dh, dw) of output row p reads input row p + dh*W + dw.
    w_ref : (9, C, C) conv taps, tap index dh*3 + dw.
    b_ref : (1, C) f32 bias.      ml_ref / mr_ref: (HW, 1) W-edge masks.
    y_ref : (HW, C) activation out (compute dtype; re-read by stage B).
    s_ref, q_ref: (1, C) f32 per-image sum / sum-of-squares partials.
    """
    c = b_ref.shape[-1]
    acc = jnp.zeros((hw, c), jnp.float32)
    for dh in range(3):
        for dw in range(3):
            xs = xp_ref[pl.ds(dh * width + dw, hw), :]
            if dw == 0:        # input column w-1: invalid where w == 0
                xs = xs * ml_ref[...]
            elif dw == 2:      # input column w+1: invalid where w == W-1
                xs = xs * mr_ref[...]
            acc += jnp.dot(xs, w_ref[dh * 3 + dw],
                           preferred_element_type=jnp.float32)
    z = acc + b_ref[...]
    y = _silu(z, approx)                                   # f32
    y_ref[...] = y.astype(y_ref.dtype)                     # bf16 store halves HBM
    # BN statistics accumulated from the f32 values (finalized in the wrapper).
    s_ref[...] = jnp.sum(y, axis=0, keepdims=True)
    q_ref[...] = jnp.sum(y * y, axis=0, keepdims=True)


# ---------- kernel B: BN-folded 1x1 conv + SiLU + spatial-mean partial ---------

def bn1x1_pool_kernel(y_ref, w1_ref, b1_ref, pooled_ref, *, approx):
    """One image per program: (HW, C) slab -> (1, Dh) spatial mean.

    y_ref : (HW, C) stage-A activation.   w1_ref: (C, Dh) BN-folded weights.
    b1_ref: (1, Dh) f32 folded bias.      pooled_ref: (1, Dh) f32 output block.
    """
    v = jnp.dot(y_ref[...], w1_ref[...],
                preferred_element_type=jnp.float32) + b1_ref[...]
    v = _silu(v, approx)
    pooled_ref[...] = jnp.mean(v, axis=0, keepdims=True)


# ----------------------------------- wrapper ----------------------------------

def critic_forward(x_nchw, p, compute_dtype=jnp.bfloat16):
    """compute_dtype: dtype of streamed matmul operands and of the stored
    stage-A activation (bf16 = production config; f32 for tight validation).
    All accumulation, BN statistics and the head math stay in f32."""
    n, c, h, w = x_nchw.shape
    hw = h * w
    m = n * hw
    d_head = p["w1"].shape[1]
    cdt = jnp.dtype(compute_dtype)
    approx = cdt == jnp.dtype(jnp.bfloat16)

    # NHWC, channels on the 128-lane axis.
    # TODO(synk): accept NHWC input (or fuse this transpose into the stage-A
    # load) to remove the one remaining extra XLA pass over the activation.
    x = jnp.transpose(x_nchw, (0, 2, 3, 1)).astype(jnp.float32)

    # Pad H by one row top/bottom, flatten spatial, pad one extra flat row at
    # each end -> 3x3 tap (dh, dw) of output row p is input row p + dh*W + dw.
    xp = jnp.pad(x, ((0, 0), (1, 1), (0, 0), (0, 0)))            # (N, H+2, W, C)
    xpf = jnp.pad(xp.reshape(n, (h + 2) * w, c), ((0, 0), (1, 1), (0, 0)))
    xpf = xpf.astype(cdt)                                        # (N, (H+2)W+2, C)
    mp2 = (h + 2) * w + 2

    # 0/1 masks that kill the wrapped W-edge contributions (dw = -1 / +1 taps).
    col = jnp.arange(hw, dtype=jnp.int32) % w
    mask_l = (col != 0).astype(cdt).reshape(hw, 1)
    mask_r = (col != w - 1).astype(cdt).reshape(hw, 1)

    w2 = p["w2"].reshape(9, c, c).astype(cdt)
    dsz = cdt.itemsize

    vmem_a = _vmem_limit_bytes((mp2 * c + hw * c) * dsz + 2 * c * 4,
                               9 * c * c * dsz + (c + 2 * hw) * 4)
    kern_a = functools.partial(conv3_silu_stats_kernel,
                               hw=hw, width=w, approx=approx)
    y, ssum, ssq = pl.pallas_call(
        kern_a,
        grid=(n,),
        in_specs=[
            pl.BlockSpec((None, mp2, c), lambda i: (i, 0, 0)),   # streamed image
            pl.BlockSpec((9, c, c), lambda i: (0, 0, 0)),        # resident taps
            pl.BlockSpec((1, c), lambda i: (0, 0)),              # resident bias
            pl.BlockSpec((hw, 1), lambda i: (0, 0)),             # resident masks
            pl.BlockSpec((hw, 1), lambda i: (0, 0)),
        ],
        out_specs=[
            pl.BlockSpec((None, hw, c), lambda i: (i, 0, 0)),    # y (compute dtype)
            pl.BlockSpec((None, 1, c), lambda i: (i, 0, 0)),     # per-image stat
            pl.BlockSpec((None, 1, c), lambda i: (i, 0, 0)),     #   partials (f32)
        ],
        out_shape=(
            jax.ShapeDtypeStruct((n, hw, c), cdt),
            jax.ShapeDtypeStruct((n, 1, c), jnp.float32),
            jax.ShapeDtypeStruct((n, 1, c), jnp.float32),
        ),
        compiler_params=pltpu.CompilerParams(
            dimension_semantics=("parallel",),      # carry-free grid
            vmem_limit_bytes=vmem_a,
        ),
    )(xpf, w2, p["b2"], mask_l, mask_r)

    # Finalize training-mode BatchNorm (biased variance) from the f32 partials
    # and fold gamma/beta straight into the 1x1 conv weights / bias.
    mu = jnp.sum(ssum, axis=0) / m                               # (1, C)
    var = jnp.maximum(jnp.sum(ssq, axis=0) / m - mu * mu, 0.0)
    scale = p["gamma"] * jax.lax.rsqrt(var + EPS)                # (1, C)
    shift = p["beta"] - mu * scale
    w1f = (p["w1"] * scale.reshape(c, 1)).astype(cdt)            # (C, Dh)
    b1f = p["b1"] + shift @ p["w1"]                              # (1, Dh), f32

    vmem_b = _vmem_limit_bytes(hw * c * dsz + d_head * 4,
                               c * d_head * dsz + d_head * 4)
    kern_b = functools.partial(bn1x1_pool_kernel, approx=approx)
    pooled = pl.pallas_call(
        kern_b,
        grid=(n,),
        in_specs=[
            pl.BlockSpec((None, hw, c), lambda i: (i, 0, 0)),    # streamed y
            pl.BlockSpec((c, d_head), lambda i: (0, 0)),         # resident w1'
            pl.BlockSpec((1, d_head), lambda i: (0, 0)),         # resident b1'
        ],
        out_specs=pl.BlockSpec((None, 1, d_head), lambda i: (i, 0, 0)),
        out_shape=jax.ShapeDtypeStruct((n, 1, d_head), jnp.float32),
        compiler_params=pltpu.CompilerParams(
            dimension_semantics=("parallel",),
            vmem_limit_bytes=vmem_b,
        ),
    )(y, w1f, b1f)
    pooled = pooled[:, 0, :]                                     # (N, Dh)

    # weight_norm(Linear(Dh, 1)) + tanh: trivial, stays in the XLA wrapper.
    w_fc = p["g_fc"] * p["v_fc"] * jax.lax.rsqrt(
        jnp.sum(p["v_fc"] * p["v_fc"], axis=1, keepdims=True))
    return jnp.tanh(pooled @ w_fc.T + p["b_fc"])                 # (N, 1)


# --------------------------------- parameters ---------------------------------

def init_params(key, c, head_dim):
    ks = jax.random.split(key, 9)

    def nrm(k, shape, s=0.1):
        return (s * jax.random.normal(k, shape)).astype(jnp.float32)

    return dict(
        # Conv2d(C, C, 3) stored as (9*C, C): row (dh*3+dw)*C + ci, col co.
        w2=nrm(ks[0], (9 * c, c)), b2=nrm(ks[1], (1, c)),
        # BatchNorm2d affine params.
        gamma=1.0 + nrm(ks[2], (1, c)), beta=nrm(ks[3], (1, c)),
        # Conv2d(C, head_dim, 1) stored as (C, head_dim).
        w1=nrm(ks[4], (c, head_dim)), b1=nrm(ks[5], (1, head_dim)),
        # weight_norm(Linear(head_dim, 1)): v, g, bias.
        v_fc=nrm(ks[6], (1, head_dim), 1.0), g_fc=1.0 + nrm(ks[7], (1, 1)),
        b_fc=nrm(ks[8], (1, 1)),
    )


# ------------------------------ pure-JAX reference -----------------------------

def reference_forward(x_nchw, p):
    n, c, h, w = x_nchw.shape
    x = jnp.transpose(x_nchw, (0, 2, 3, 1)).astype(jnp.float32)   # NHWC

    k3 = p["w2"].reshape(3, 3, c, c)                              # HWIO
    z = jax.lax.conv_general_dilated(
        x, k3, (1, 1), "SAME",
        dimension_numbers=("NHWC", "HWIO", "NHWC")) + p["b2"].reshape(1, 1, 1, -1)
    y = z * jax.nn.sigmoid(z)

    mu = jnp.mean(y, axis=(0, 1, 2), keepdims=True)
    var = jnp.mean((y - mu) ** 2, axis=(0, 1, 2), keepdims=True)
    a = (y - mu) * jax.lax.rsqrt(var + EPS) * p["gamma"].reshape(1, 1, 1, -1) \
        + p["beta"].reshape(1, 1, 1, -1)

    v = jnp.einsum("nhwc,cd->nhwd", a, p["w1"]) + p["b1"].reshape(1, 1, 1, -1)
    v = v * jax.nn.sigmoid(v)
    pooled = jnp.mean(v, axis=(1, 2))                             # (N, Dh)

    w_fc = p["g_fc"] * p["v_fc"] / jnp.linalg.norm(p["v_fc"], axis=1, keepdims=True)
    return jnp.tanh(pooled @ w_fc.T + p["b_fc"])                  # (N, 1)


# ------------------------------------ main -------------------------------------

if __name__ == "__main__":
    key = jax.random.PRNGKey(0)
    kx, kp = jax.random.split(key)

    N, C, H, W, HEAD = 2, 32, 16, 16, 8
    x = jax.random.normal(kx, (N, C, H, W), dtype=jnp.float32)
    params = init_params(kp, C, HEAD)

    ref = reference_forward(x, params)

    # f32 path: validates the kernel structure against the reference at 1e-3.
    fwd_f32 = jax.jit(functools.partial(critic_forward, compute_dtype=jnp.float32))
    out_f32 = jax.block_until_ready(fwd_f32(x, params))
    assert out_f32.shape == (N, 1)
    err32 = float(jnp.max(jnp.abs(out_f32 - ref)))
    assert jnp.allclose(out_f32, ref, rtol=1e-3, atol=1e-3), f"f32 max_err={err32}"

    # bf16 streamed-operand / bf16-y path (production config from the perf
    # review), validated at a bf16-appropriate tolerance.
    fwd_bf16 = jax.jit(functools.partial(critic_forward, compute_dtype=jnp.bfloat16))
    out_bf16 = jax.block_until_ready(fwd_bf16(x, params))
    err16 = float(jnp.max(jnp.abs(out_bf16 - ref)))
    assert jnp.allclose(out_bf16, ref, rtol=2e-2, atol=2e-2), f"bf16 max_err={err16}"

    print("KERNEL_OK")
</pallas_src>

<mosaic_0001>
module attributes {stable_mosaic.version = 11 : i64} {
  func.func @conv3_silu_stats_kernel(%arg0: i32, %arg1: memref<1x290x32xf32, #tpu.memory_space<vmem>>, %arg2: memref<9x32x32xf32, #tpu.memory_space<vmem>>, %arg3: memref<1x32xf32, #tpu.memory_space<vmem>>, %arg4: memref<256x1xf32, #tpu.memory_space<vmem>>, %arg5: memref<256x1xf32, #tpu.memory_space<vmem>>, %arg6: memref<1x256x32xf32, #tpu.memory_space<vmem>>, %arg7: memref<1x1x32xf32, #tpu.memory_space<vmem>>, %arg8: memref<1x1x32xf32, #tpu.memory_space<vmem>>) attributes {dimension_semantics = [#tpu.dimension_semantics<parallel>], iteration_bounds = array<i64: 2>, scalar_prefetch = 0 : i64, scratch_operands = 0 : i64, tpu.core_type = #tpu.core_type<tc>, window_params = [{transform_indices = @transform_0, window_bounds = array<i64: 1, 290, 32>}, {pipeline_mode = #tpu.pipeline_mode<synchronous>, transform_indices = @transform_1, window_bounds = array<i64: 9, 32, 32>}, {pipeline_mode = #tpu.pipeline_mode<synchronous>, transform_indices = @transform_2, window_bounds = array<i64: 1, 32>}, {pipeline_mode = #tpu.pipeline_mode<synchronous>, transform_indices = @transform_3, window_bounds = array<i64: 256, 1>}, {pipeline_mode = #tpu.pipeline_mode<synchronous>, transform_indices = @transform_4, window_bounds = array<i64: 256, 1>}, {transform_indices = @transform_5, window_bounds = array<i64: 1, 256, 32>}, {transform_indices = @transform_6, window_bounds = array<i64: 1, 1, 32>}, {transform_indices = @transform_7, window_bounds = array<i64: 1, 1, 32>}]} {
    %cst = arith.constant 0.000000e+00 : f32
    %0 = vector.broadcast %cst : f32 to vector<256x32xf32>
    %c0 = arith.constant 0 : index
    %c0_0 = arith.constant 0 : index
    %c0_1 = arith.constant 0 : index
    %1 = vector.load %arg1[%c0, %c0_0, %c0_1] : memref<1x290x32xf32, #tpu.memory_space<vmem>>, vector<1x256x32xf32>
    %2 = vector.shape_cast %1 : vector<1x256x32xf32> to vector<256x32xf32>
    %c0_2 = arith.constant 0 : index
    %c0_3 = arith.constant 0 : index
    %3 = vector.load %arg4[%c0_2, %c0_3] : memref<256x1xf32, #tpu.memory_space<vmem>>, vector<256x1xf32>
    %4 = vector.broadcast %3 : vector<256x1xf32> to vector<256x32xf32>
    %5 = arith.mulf %2, %4 : vector<256x32xf32>
    %c0_4 = arith.constant 0 : index
    %c0_5 = arith.constant 0 : index
    %c0_6 = arith.constant 0 : index
    %6 = vector.load %arg2[%c0_4, %c0_5, %c0_6] : memref<9x32x32xf32, #tpu.memory_space<vmem>>, vector<1x32x32xf32>
    %7 = vector.shape_cast %6 : vector<1x32x32xf32> to vector<32x32xf32>
    %cst_7 = arith.constant dense<0.000000e+00> : vector<256x32xf32>
    %8 = tpu.matmul %5, %7, %cst_7 {dimension_numbers = #tpu.dot_dimension_numbers<[1], [0], [0], [1], [0, 0, 1, 1], [], []>} : vector<256x32xf32>, vector<32x32xf32>, vector<256x32xf32> -> vector<256x32xf32>
    %9 = arith.addf %0, %8 : vector<256x32xf32>
    %c0_8 = arith.constant 0 : index
    %c1 = arith.constant 1 : index
    %c0_9 = arith.constant 0 : index
    %10 = vector.load %arg1[%c0_8, %c1, %c0_9] : memref<1x290x32xf32, #tpu.memory_space<vmem>>, vector<1x256x32xf32>
    %11 = vector.shape_cast %10 : vector<1x256x32xf32> to vector<256x32xf32>
    %c1_10 = arith.constant 1 : index
    %c0_11 = arith.constant 0 : index
    %c0_12 = arith.constant 0 : index
    %12 = vector.load %arg2[%c1_10, %c0_11, %c0_12] : memref<9x32x32xf32, #tpu.memory_space<vmem>>, vector<1x32x32xf32>
    %13 = vector.shape_cast %12 : vector<1x32x32xf32> to vector<32x32xf32>
    %cst_13 = arith.constant dense<0.000000e+00> : vector<256x32xf32>
    %14 = tpu.matmul %11, %13, %cst_13 {dimension_numbers = #tpu.dot_dimension_numbers<[1], [0], [0], [1], [0, 0, 1, 1], [], []>} : vector<256x32xf32>, vector<32x32xf32>, vector<256x32xf32> -> vector<256x32xf32>
    %15 = arith.addf %9, %14 : vector<256x32xf32>
    %c0_14 = arith.constant 0 : index
    %c2 = arith.constant 2 : index
    %c0_15 = arith.constant 0 : index
    %16 = vector.load %arg1[%c0_14, %c2, %c0_15] : memref<1x290x32xf32, #tpu.memory_space<vmem>>, vector<1x256x32xf32>
    %17 = vector.shape_cast %16 : vector<1x256x32xf32> to vector<256x32xf32>
    %c0_16 = arith.constant 0 : index
    %c0_17 = arith.constant 0 : index
    %18 = vector.load %arg5[%c0_16, %c0_17] : memref<256x1xf32, #tpu.memory_space<vmem>>, vector<256x1xf32>
    %19 = vector.broadcast %18 : vector<256x1xf32> to vector<256x32xf32>
    %20 = arith.mulf %17, %19 : vector<256x32xf32>
    %c2_18 = arith.constant 2 : index
    %c0_19 = arith.constant 0 : index
    %c0_20 = arith.constant 0 : index
    %21 = vector.load %arg2[%c2_18, %c0_19, %c0_20] : memref<9x32x32xf32, #tpu.memory_space<vmem>>, vector<1x32x32xf32>
    %22 = vector.shape_cast %21 : vector<1x32x32xf32> to vector<32x32xf32>
    %cst_21 = arith.constant dense<0.000000e+00> : vector<256x32xf32>
    %23 = tpu.matmul %20, %22, %cst_21 {dimension_numbers = #tpu.dot_dimension_numbers<[1], [0], [0], [1], [0, 0, 1, 1], [], []>} : vector<256x32xf32>, vector<32x32xf32>, vector<256x32xf32> -> vector<256x32xf32>
    %24 = arith.addf %15, %23 : vector<256x32xf32>
    %c0_22 = arith.constant 0 : index
    %c16 = arith.constant 16 : index
    %c0_23 = arith.constant 0 : index
    %25 = vector.load %arg1[%c0_22, %c16, %c0_23] : memref<1x290x32xf32, #tpu.memory_space<vmem>>, vector<1x256x32xf32>
    %26 = vector.shape_cast %25 : vector<1x256x32xf32> to vector<256x32xf32>
    %c0_24 = arith.constant 0 : index
    %c0_25 = arith.constant 0 : index
    %27 = vector.load %arg4[%c0_24, %c0_25] : memref<256x1xf32, #tpu.memory_space<vmem>>, vector<256x1xf32>
    %28 = vector.broadcast %27 : vector<256x1xf32> to vector<256x32xf32>
    %29 = arith.mulf %26, %28 : vector<256x32xf32>
    %c3 = arith.constant 3 : index
    %c0_26 = arith.constant 0 : index
    %c0_27 = arith.constant 0 : index
    %30 = vector.load %arg2[%c3, %c0_26, %c0_27] : memref<9x32x32xf32, #tpu.memory_space<vmem>>, vector<1x32x32xf32>
    %31 = vector.shape_cast %30 : vector<1x32x32xf32> to vector<32x32xf32>
    %cst_28 = arith.constant dense<0.000000e+00> : vector<256x32xf32>
    %32 = tpu.matmul %29, %31, %cst_28 {dimension_numbers = #tpu.dot_dimension_numbers<[1], [0], [0], [1], [0, 0, 1, 1], [], []>} : vector<256x32xf32>, vector<32x32xf32>, vector<256x32xf32> -> vector<256x32xf32>
    %33 = arith.addf %24, %32 : vector<256x32xf32>
    %c0_29 = arith.constant 0 : index
    %c17 = arith.constant 17 : index
    %c0_30 = arith.constant 0 : index
    %34 = vector.load %arg1[%c0_29, %c17, %c0_30] : memref<1x290x32xf32, #tpu.memory_space<vmem>>, vector<1x256x32xf32>
    %35 = vector.shape_cast %34 : vector<1x256x32xf32> to vector<256x32xf32>
    %c4 = arith.constant 4 : index
    %c0_31 = arith.constant 0 : index
    %c0_32 = arith.constant 0 : index
    %36 = vector.load %arg2[%c4, %c0_31, %c0_32] : memref<9x32x32xf32, #tpu.memory_space<vmem>>, vector<1x32x32xf32>
    %37 = vector.shape_cast %36 : vector<1x32x32xf32> to vector<32x32xf32>
    %cst_33 = arith.constant dense<0.000000e+00> : vector<256x32xf32>
    %38 = tpu.matmul %35, %37, %cst_33 {dimension_numbers = #tpu.dot_dimension_numbers<[1], [0], [0], [1], [0, 0, 1, 1], [], []>} : vector<256x32xf32>, vector<32x32xf32>, vector<256x32xf32> -> vector<256x32xf32>
    %39 = arith.addf %33, %38 : vector<256x32xf32>
    %c0_34 = arith.constant 0 : index
    %c18 = arith.constant 18 : index
    %c0_35 = arith.constant 0 : index
    %40 = vector.load %arg1[%c0_34, %c18, %c0_35] : memref<1x290x32xf32, #tpu.memory_space<vmem>>, vector<1x256x32xf32>
    %41 = vector.shape_cast %40 : vector<1x256x32xf32> to vector<256x32xf32>
    %c0_36 = arith.constant 0 : index
    %c0_37 = arith.constant 0 : index
    %42 = vector.load %arg5[%c0_36, %c0_37] : memref<256x1xf32, #tpu.memory_space<vmem>>, vector<256x1xf32>
    %43 = vector.broadcast %42 : vector<256x1xf32> to vector<256x32xf32>
    %44 = arith.mulf %41, %43 : vector<256x32xf32>
    %c5 = arith.constant 5 : index
    %c0_38 = arith.constant 0 : index
    %c0_39 = arith.constant 0 : index
    %45 = vector.load %arg2[%c5, %c0_38, %c0_39] : memref<9x32x32xf32, #tpu.memory_space<vmem>>, vector<1x32x32xf32>
    %46 = vector.shape_cast %45 : vector<1x32x32xf32> to vector<32x32xf32>
    %cst_40 = arith.constant dense<0.000000e+00> : vector<256x32xf32>
    %47 = tpu.matmul %44, %46, %cst_40 {dimension_numbers = #tpu.dot_dimension_numbers<[1], [0], [0], [1], [0, 0, 1, 1], [], []>} : vector<256x32xf32>, vector<32x32xf32>, vector<256x32xf32> -> vector<256x32xf32>
    %48 = arith.addf %39, %47 : vector<256x32xf32>
    %c0_41 = arith.constant 0 : index
    %c32 = arith.constant 32 : index
    %c0_42 = arith.constant 0 : index
    %49 = vector.load %arg1[%c0_41, %c32, %c0_42] : memref<1x290x32xf32, #tpu.memory_space<vmem>>, vector<1x256x32xf32>
    %50 = vector.shape_cast %49 : vector<1x256x32xf32> to vector<256x32xf32>
    %c0_43 = arith.constant 0 : index
    %c0_44 = arith.constant 0 : index
    %51 = vector.load %arg4[%c0_43, %c0_44] : memref<256x1xf32, #tpu.memory_space<vmem>>, vector<256x1xf32>
    %52 = vector.broadcast %51 : vector<256x1xf32> to vector<256x32xf32>
    %53 = arith.mulf %50, %52 : vector<256x32xf32>
    %c6 = arith.constant 6 : index
    %c0_45 = arith.constant 0 : index
    %c0_46 = arith.constant 0 : index
    %54 = vector.load %arg2[%c6, %c0_45, %c0_46] : memref<9x32x32xf32, #tpu.memory_space<vmem>>, vector<1x32x32xf32>
    %55 = vector.shape_cast %54 : vector<1x32x32xf32> to vector<32x32xf32>
    %cst_47 = arith.constant dense<0.000000e+00> : vector<256x32xf32>
    %56 = tpu.matmul %53, %55, %cst_47 {dimension_numbers = #tpu.dot_dimension_numbers<[1], [0], [0], [1], [0, 0, 1, 1], [], []>} : vector<256x32xf32>, vector<32x32xf32>, vector<256x32xf32> -> vector<256x32xf32>
    %57 = arith.addf %48, %56 : vector<256x32xf32>
    %c0_48 = arith.constant 0 : index
    %c33 = arith.constant 33 : index
    %c0_49 = arith.constant 0 : index
    %58 = vector.load %arg1[%c0_48, %c33, %c0_49] : memref<1x290x32xf32, #tpu.memory_space<vmem>>, vector<1x256x32xf32>
    %59 = vector.shape_cast %58 : vector<1x256x32xf32> to vector<256x32xf32>
    %c7 = arith.constant 7 : index
    %c0_50 = arith.constant 0 : index
    %c0_51 = arith.constant 0 : index
    %60 = vector.load %arg2[%c7, %c0_50, %c0_51] : memref<9x32x32xf32, #tpu.memory_space<vmem>>, vector<1x32x32xf32>
    %61 = vector.shape_cast %60 : vector<1x32x32xf32> to vector<32x32xf32>
    %cst_52 = arith.constant dense<0.000000e+00> : vector<256x32xf32>
    %62 = tpu.matmul %59, %61, %cst_52 {dimension_numbers = #tpu.dot_dimension_numbers<[1], [0], [0], [1], [0, 0, 1, 1], [], []>} : vector<256x32xf32>, vector<32x32xf32>, vector<256x32xf32> -> vector<256x32xf32>
    %63 = arith.addf %57, %62 : vector<256x32xf32>
    %c0_53 = arith.constant 0 : index
    %c34 = arith.constant 34 : index
    %c0_54 = arith.constant 0 : index
    %64 = vector.load %arg1[%c0_53, %c34, %c0_54] : memref<1x290x32xf32, #tpu.memory_space<vmem>>, vector<1x256x32xf32>
    %65 = vector.shape_cast %64 : vector<1x256x32xf32> to vector<256x32xf32>
    %c0_55 = arith.constant 0 : index
    %c0_56 = arith.constant 0 : index
    %66 = vector.load %arg5[%c0_55, %c0_56] : memref<256x1xf32, #tpu.memory_space<vmem>>, vector<256x1xf32>
    %67 = vector.broadcast %66 : vector<256x1xf32> to vector<256x32xf32>
    %68 = arith.mulf %65, %67 : vector<256x32xf32>
    %c8 = arith.constant 8 : index
    %c0_57 = arith.constant 0 : index
    %c0_58 = arith.constant 0 : index
    %69 = vector.load %arg2[%c8, %c0_57, %c0_58] : memref<9x32x32xf32, #tpu.memory_space<vmem>>, vector<1x32x32xf32>
    %70 = vector.shape_cast %69 : vector<1x32x32xf32> to vector<32x32xf32>
    %cst_59 = arith.constant dense<0.000000e+00> : vector<256x32xf32>
    %71 = tpu.matmul %68, %70, %cst_59 {dimension_numbers = #tpu.dot_dimension_numbers<[1], [0], [0], [1], [0, 0, 1, 1], [], []>} : vector<256x32xf32>, vector<32x32xf32>, vector<256x32xf32> -> vector<256x32xf32>
    %72 = arith.addf %63, %71 : vector<256x32xf32>
    %c0_60 = arith.constant 0 : index
    %c0_61 = arith.constant 0 : index
    %73 = vector.load %arg3[%c0_60, %c0_61] : memref<1x32xf32, #tpu.memory_space<vmem>>, vector<1x32xf32>
    %74 = vector.broadcast %73 : vector<1x32xf32> to vector<256x32xf32>
    %75 = arith.addf %72, %74 : vector<256x32xf32>
    %cst_62 = arith.constant 0.000000e+00 : f32
    %76 = vector.broadcast %cst_62 : f32 to vector<256x32xf32>
    %77 = arith.subf %76, %75 : vector<256x32xf32>
    %78 = math.exp %77 : vector<256x32xf32>
    %cst_63 = arith.constant 1.000000e+00 : f32
    %79 = vector.broadcast %cst_63 : f32 to vector<256x32xf32>
    %80 = arith.addf %79, %78 : vector<256x32xf32>
    %81 = tpu.reciprocal %80 : vector<256x32xf32> -> vector<256x32xf32>
    %82 = arith.mulf %75, %81 : vector<256x32xf32>
    %c0_64 = arith.constant 0 : index
    %c0_65 = arith.constant 0 : index
    %c0_66 = arith.constant 0 : index
    %83 = vector.load %arg6[%c0_64, %c0_65, %c0_66] : memref<1x256x32xf32, #tpu.memory_space<vmem>>, vector<1x256x32xf32>
    %84 = vector.shape_cast %83 : vector<1x256x32xf32> to vector<256x32xf32>
    %85 = vector.shape_cast %82 : vector<256x32xf32> to vector<1x256x32xf32>
    tpu.vector_store %arg6[%c0_64, %c0_65, %c0_66], %85 {strides = array<i32>} : memref<1x256x32xf32, #tpu.memory_space<vmem>>, vector<1x256x32xf32>,
    %cst_67 = arith.constant dense<0.000000e+00> : vector<32xf32>
    %86 = vector.multi_reduction <add>, %82, %cst_67 [0] : vector<256x32xf32> to vector<32xf32>
    %87 = vector.shape_cast %86 : vector<32xf32> to vector<1x32xf32>
    %c0_68 = arith.constant 0 : index
    %c0_69 = arith.constant 0 : index
    %c0_70 = arith.constant 0 : index
    %88 = vector.load %arg7[%c0_68, %c0_69, %c0_70] : memref<1x1x32xf32, #tpu.memory_space<vmem>>, vector<1x1x32xf32>
    %89 = vector.shape_cast %88 : vector<1x1x32xf32> to vector<1x32xf32>
    %90 = vector.shape_cast %87 : vector<1x32xf32> to vector<1x1x32xf32>
    tpu.vector_store %arg7[%c0_68, %c0_69, %c0_70], %90 {strides = array<i32>} : memref<1x1x32xf32, #tpu.memory_space<vmem>>, vector<1x1x32xf32>,
    %91 = arith.mulf %82, %82 : vector<256x32xf32>
    %cst_71 = arith.constant dense<0.000000e+00> : vector<32xf32>
    %92 = vector.multi_reduction <add>, %91, %cst_71 [0] : vector<256x32xf32> to vector<32xf32>
    %93 = vector.shape_cast %92 : vector<32xf32> to vector<1x32xf32>
    %c0_72 = arith.constant 0 : index
    %c0_73 = arith.constant 0 : index
    %c0_74 = arith.constant 0 : index
    %94 = vector.load %arg8[%c0_72, %c0_73, %c0_74] : memref<1x1x32xf32, #tpu.memory_space<vmem>>, vector<1x1x32xf32>
    %95 = vector.shape_cast %94 : vector<1x1x32xf32> to vector<1x32xf32>
    %96 = vector.shape_cast %93 : vector<1x32xf32> to vector<1x1x32xf32>
    tpu.vector_store %arg8[%c0_72, %c0_73, %c0_74], %96 {strides = array<i32>} : memref<1x1x32xf32, #tpu.memory_space<vmem>>, vector<1x1x32xf32>,
    return
  }
  func.func @transform_0(%arg0: i32) -> (i32, i32, i32) {
    %c0_i32 = arith.constant 0 : i32
    %c0_i32_0 = arith.constant 0 : i32
    %c0_i32_1 = arith.constant 0 : i32
    return %arg0, %c0_i32, %c0_i32_0 : i32, i32, i32
  }
  func.func @transform_1(%arg0: i32) -> (i32, i32, i32) {
    %c0_i32 = arith.constant 0 : i32
    %c0_i32_0 = arith.constant 0 : i32
    %c0_i32_1 = arith.constant 0 : i32
    %c0_i32_2 = arith.constant 0 : i32
    return %c0_i32, %c0_i32_0, %c0_i32_1 : i32, i32, i32
  }
  func.func @transform_2(%arg0: i32) -> (i32, i32) {
    %c0_i32 = arith.constant 0 : i32
    %c0_i32_0 = arith.constant 0 : i32
    %c0_i32_1 = arith.constant 0 : i32
    return %c0_i32, %c0_i32_0 : i32, i32
  }
  func.func @transform_3(%arg0: i32) -> (i32, i32) {
    %c0_i32 = arith.constant 0 : i32
    %c0_i32_0 = arith.constant 0 : i32
    %c0_i32_1 = arith.constant 0 : i32
    return %c0_i32, %c0_i32_0 : i32, i32
  }
  func.func @transform_4(%arg0: i32) -> (i32, i32) {
    %c0_i32 = arith.constant 0 : i32
    %c0_i32_0 = arith.constant 0 : i32
    %c0_i32_1 = arith.constant 0 : i32
    return %c0_i32, %c0_i32_0 : i32, i32
  }
  func.func @transform_5(%arg0: i32) -> (i32, i32, i32) {
    %c0_i32 = arith.constant 0 : i32
    %c0_i32_0 = arith.constant 0 : i32
    %c0_i32_1 = arith.constant 0 : i32
    return %arg0, %c0_i32, %c0_i32_0 : i32, i32, i32
  }
  func.func @transform_6(%arg0: i32) -> (i32, i32, i32) {
    %c0_i32 = arith.constant 0 : i32
    %c0_i32_0 = arith.constant 0 : i32
    %c0_i32_1 = arith.constant 0 : i32
    return %arg0, %c0_i32, %c0_i32_0 : i32, i32, i32
  }
  func.func @transform_7(%arg0: i32) -> (i32, i32, i32) {
    %c0_i32 = arith.constant 0 : i32
    %c0_i32_0 = arith.constant 0 : i32
    %c0_i32_1 = arith.constant 0 : i32
    return %arg0, %c0_i32, %c0_i32_0 : i32, i32, i32
  }
}

module attributes {stable_mosaic.version = 11 : i64} {
  func.func @bn1x1_pool_kernel(%arg0: i32, %arg1: memref<1x256x32xf32, #tpu.memory_space<vmem>>, %arg2: memref<32x8xf32, #tpu.memory_space<vmem>>, %arg3: memref<1x8xf32, #tpu.memory_space<vmem>>, %arg4: memref<1x1x8xf32, #tpu.memory_space<vmem>>) attributes {dimension_semantics = [#tpu.dimension_semantics<parallel>], iteration_bounds = array<i64: 2>, scalar_prefetch = 0 : i64, scratch_operands = 0 : i64, tpu.core_type = #tpu.core_type<tc>, window_params = [{transform_indices = @transform_0, window_bounds = array<i64: 1, 256, 32>}, {pipeline_mode = #tpu.pipeline_mode<synchronous>, transform_indices = @transform_1, window_bounds = array<i64: 32, 8>}, {pipeline_mode = #tpu.pipeline_mode<synchronous>, transform_indices = @transform_2, window_bounds = array<i64: 1, 8>}, {transform_indices = @transform_3, window_bounds = array<i64: 1, 1, 8>}]} {
    %c0 = arith.constant 0 : index
    %c0_0 = arith.constant 0 : index
    %c0_1 = arith.constant 0 : index
    %0 = vector.load %arg1[%c0, %c0_0, %c0_1] : memref<1x256x32xf32, #tpu.memory_space<vmem>>, vector<1x256x32xf32>
    %1 = vector.shape_cast %0 : vector<1x256x32xf32> to vector<256x32xf32>
    %c0_2 = arith.constant 0 : index
    %c0_3 = arith.constant 0 : index
    %2 = vector.load %arg2[%c0_2, %c0_3] : memref<32x8xf32, #tpu.memory_space<vmem>>, vector<32x8xf32>
    %cst = arith.constant dense<0.000000e+00> : vector<256x8xf32>
    %3 = tpu.matmul %1, %2, %cst {dimension_numbers = #tpu.dot_dimension_numbers<[1], [0], [0], [1], [0, 0, 1, 1], [], []>} : vector<256x32xf32>, vector<32x8xf32>, vector<256x8xf32> -> vector<256x8xf32>
    %c0_4 = arith.constant 0 : index
    %c0_5 = arith.constant 0 : index
    %4 = vector.load %arg3[%c0_4, %c0_5] : memref<1x8xf32, #tpu.memory_space<vmem>>, vector<1x8xf32>
    %5 = vector.broadcast %4 : vector<1x8xf32> to vector<256x8xf32>
    %6 = arith.addf %3, %5 : vector<256x8xf32>
    %cst_6 = arith.constant 0.000000e+00 : f32
    %7 = vector.broadcast %cst_6 : f32 to vector<256x8xf32>
    %8 = arith.subf %7, %6 : vector<256x8xf32>
    %9 = math.exp %8 : vector<256x8xf32>
    %cst_7 = arith.constant 1.000000e+00 : f32
    %10 = vector.broadcast %cst_7 : f32 to vector<256x8xf32>
    %11 = arith.addf %10, %9 : vector<256x8xf32>
    %12 = tpu.reciprocal %11 : vector<256x8xf32> -> vector<256x8xf32>
    %13 = arith.mulf %6, %12 : vector<256x8xf32>
    %cst_8 = arith.constant dense<0.000000e+00> : vector<8xf32>
    %14 = vector.multi_reduction <add>, %13, %cst_8 [0] : vector<256x8xf32> to vector<8xf32>
    %15 = vector.shape_cast %14 : vector<8xf32> to vector<1x8xf32>
    %cst_9 = arith.constant 2.560000e+02 : f32
    %16 = vector.broadcast %cst_9 : f32 to vector<1x8xf32>
    %17 = arith.divf %15, %16 : vector<1x8xf32>
    %c0_10 = arith.constant 0 : index
    %c0_11 = arith.constant 0 : index
    %c0_12 = arith.constant 0 : index
    %18 = vector.load %arg4[%c0_10, %c0_11, %c0_12] : memref<1x1x8xf32, #tpu.memory_space<vmem>>, vector<1x1x8xf32>
    %19 = vector.shape_cast %18 : vector<1x1x8xf32> to vector<1x8xf32>
    %20 = vector.shape_cast %17 : vector<1x8xf32> to vector<1x1x8xf32>
    tpu.vector_store %arg4[%c0_10, %c0_11, %c0_12], %20 {strides = array<i32>} : memref<1x1x8xf32, #tpu.memory_space<vmem>>, vector<1x1x8xf32>,
    return
  }
  func.func @transform_0(%arg0: i32) -> (i32, i32, i32) {
    %c0_i32 = arith.constant 0 : i32
    %c0_i32_0 = arith.constant 0 : i32
    %c0_i32_1 = arith.constant 0 : i32
    return %arg0, %c0_i32, %c0_i32_0 : i32, i32, i32
  }
  func.func @transform_1(%arg0: i32) -> (i32, i32) {
    %c0_i32 = arith.constant 0 : i32
    %c0_i32_0 = arith.constant 0 : i32
    %c0_i32_1 = arith.constant 0 : i32
    return %c0_i32, %c0_i32_0 : i32, i32
  }
  func.func @transform_2(%arg0: i32) -> (i32, i32) {
    %c0_i32 = arith.constant 0 : i32
    %c0_i32_0 = arith.constant 0 : i32
    %c0_i32_1 = arith.constant 0 : i32
    return %c0_i32, %c0_i32_0 : i32, i32
  }
  func.func @transform_3(%arg0: i32) -> (i32, i32, i32) {
    %c0_i32 = arith.constant 0 : i32
    %c0_i32_0 = arith.constant 0 : i32
    %c0_i32_1 = arith.constant 0 : i32
    return %arg0, %c0_i32, %c0_i32_0 : i32, i32, i32
  }
}

</mosaic_0001>

<bundles_post_ra>
// kernel: critic_forward.3
= control target key start
LH: loop header
LB: loop body
LE: loop exit
PB: predicated region body
PF: predicated region fallthrough
CT: control target
= control target key end

     0   :  { %s1376_s12 = smov 0   ;;  %s2630_s0 = inlined_call_operand.vmem [shape: f32[2,256,32], index: 0, kind: input, shape index: {}]   ;;  %s2631_s1 = inlined_call_operand.vmem [shape: f32[32,8], index: 1, kind: input, shape index: {}]   ;;  %s2632_s2 = inlined_call_operand.vmem [shape: f32[1,8], index: 2, kind: input, shape index: {}]   ;;  %s2633_s3 = inlined_call_operand.vmem [shape: f32[2,1,8], index: 3, kind: output, shape index: {}]  }
   0x1 LB: > { %s1152_s13 = sadd.s32 4294967295, %s1353_s12   ;;  %p1156_p0 = scmp.ge.s32.totalorder %s1353_s12, 1  ;;  %s1353_s12 = sphi %s1376_s12, %s13_s12  }
   0x2   : > { %p137_p1 = scmp.lt.s32.totalorder %s1353_s12, 3 }
   0x4   : > { %p138_p2 = pnand %p1156_p0, %p137_p1 }
   0x6   : > { %141 = sbr.rel (%p138_p2) target bundleno = 347 (0x15b), region = 32 }
   0xb   : > { %v202_v0 = vld [vmem:[%s2631_s1 + $0x18] sm:$0xff]  ;;  %v201_v1 = vld [vmem:[%s2631_s1 + $0x10] sm:$0xff]  ;;  %p159_p3 = scmp.lt.s32.totalorder %s1152_s13, 1  ;;  %v200_v2 = vld [vmem:[%s2631_s1 + $0x8] sm:$0xff]  ;;  %vm207_vm0 = vcmask 261120   ;;  %vm1025_vm9 = vcmask 64512  }
   0xc   : > { %316 = vmatpush.msra.mxu0 %v202_v0  ;;  %1194 = vmatpush.msra.mxu1 %v202_v0  ;;  %v199_v3 = vld [vmem:[%s2631_s1] sm:$0xff] }
   0xd   : > { %1195 = vmatpush.msra.mxu2 %v202_v0  ;;  %s2761_s13 = smov (!%p159_p3, %s1152_s13), 1  ;;  %1196 = vmatpush.msra.mxu3 %v202_v0  ;;  %v1471_v36 = vld [vmem:[%s2632_s2] ss:$0 sm:$0xff] }
   0xe   : > { %317 = vmatpush.msra.mxu0 %v201_v1  ;;  %1197 = vmatpush.msra.mxu1 %v201_v1  ;;  %s1193_s22 = sshll.u32 %s2761_s13, 8  ;;  %s166_s5 = scalar_lea.vmem %s2633_s3, %s2761_s13 }
   0xf   : > { %1198 = vmatpush.msra.mxu2 %v201_v1  ;;  %1199 = vmatpush.msra.mxu3 %v201_v1  ;;  %s1402_s25 = scalar_lea.vmem %s2630_s0, %s1193_s22 }
  0x10   : > { %318 = vmatpush.msra.mxu0 %v200_v2  ;;  %1200 = vmatpush.msra.mxu1 %v200_v2  ;;  %v167_v4 = vld [vmem:[%s1402_s25] sm:$0xff]  ;;  %v168_v8 = vld [vmem:[%s1402_s25 + $0x8] sm:$0xff]  ;;  %v169_v12 = vld [vmem:[%s1402_s25 + $0x10] sm:$0xff] }
  0x11   : > { %1201 = vmatpush.msra.mxu2 %v200_v2  ;;  %v175_v5 = vld [vmem:[%s1402_s25 + $0x40] sm:$0xff]  ;;  %1202 = vmatpush.msra.mxu3 %v200_v2  ;;  %v176_v9 = vld [vmem:[%s1402_s25 + $0x48] sm:$0xff]  ;;  %v177_v13 = vld [vmem:[%s1402_s25 + $0x50] sm:$0xff] }
  0x12   : > { %v183_v6 = vld [vmem:[%s1402_s25 + $0x80] sm:$0xff]  ;;  %319 = vmatpush.msra.mxu0 %v199_v3  ;;  %1203 = vmatpush.msra.mxu1 %v199_v3  ;;  %v184_v10 = vld [vmem:[%s1402_s25 + $0x88] sm:$0xff]  ;;  %v185_v14 = vld [vmem:[%s1402_s25 + $0x90] sm:$0xff] }
  0x13   : > { %1204 = vmatpush.msra.mxu2 %v199_v3  ;;  %1159 = vmatmul.msk.f32.vlgmr.msra.gmra.mxu0 %vm207_vm0, %v167_v4  ;;  %v191_v7 = vld [vmem:[%s1402_s25 + $0xc0] sm:$0xff]  ;;  %v192_v11 = vld [vmem:[%s1402_s25 + $0xc8] sm:$0xff]  ;;  %v193_v15 = vld [vmem:[%s1402_s25 + $0xd0] sm:$0xff] }
  0x14   : > { %1167 = vmatmul.msk.f32.vlgmr.msra.gmra.mxu1 %vm207_vm0, %v175_v5  ;;  %1175 = vmatmul.msk.f32.vlgmr.msra.gmra.mxu2 %vm207_vm0, %v183_v6  ;;  %v170_v16 = vld [vmem:[%s1402_s25 + $0x18] sm:$0xff]  ;;  %v171_v20 = vld [vmem:[%s1402_s25 + $0x20] sm:$0xff]  ;;  %v172_v24 = vld [vmem:[%s1402_s25 + $0x28] sm:$0xff] }
  0x15   : > { %1205 = vmatpush.msra.mxu3 %v199_v3  ;;  %v178_v17 = vld [vmem:[%s1402_s25 + $0x58] sm:$0xff]  ;;  %v179_v21 = vld [vmem:[%s1402_s25 + $0x60] sm:$0xff]  ;;  %v180_v25 = vld [vmem:[%s1402_s25 + $0x68] sm:$0xff] }
  0x16   : > { %1183 = vmatmul.msk.f32.vlgmr.msra.gmra.mxu3 %vm207_vm0, %v191_v7  ;;  %v186_v18 = vld [vmem:[%s1402_s25 + $0x98] sm:$0xff]  ;;  %v187_v22 = vld [vmem:[%s1402_s25 + $0xa0] sm:$0xff]  ;;  %v188_v26 = vld [vmem:[%s1402_s25 + $0xa8] sm:$0xff] }
  0x17   : > { %v194_v19 = vld [vmem:[%s1402_s25 + $0xd8] sm:$0xff]  ;;  %v195_v23 = vld [vmem:[%s1402_s25 + $0xe0] sm:$0xff]  ;;  %v196_v27 = vld [vmem:[%s1402_s25 + $0xe8] sm:$0xff] }
  0x18   : > { %v173_v28 = vld [vmem:[%s1402_s25 + $0x30] sm:$0xff]  ;;  %v174_v32 = vld [vmem:[%s1402_s25 + $0x38] sm:$0xff] }
  0x19   : > { %v181_v29 = vld [vmem:[%s1402_s25 + $0x70] sm:$0xff]  ;;  %v182_v33 = vld [vmem:[%s1402_s25 + $0x78] sm:$0xff] }
  0x1a   : > { %v189_v30 = vld [vmem:[%s1402_s25 + $0xb0] sm:$0xff]  ;;  %v190_v34 = vld [vmem:[%s1402_s25 + $0xb8] sm:$0xff] }
  0x1b   : > { %1160 = vmatmul.msk.f32.gmra.mxu0 %vm207_vm0, %v168_v8  ;;  %v197_v31 = vld [vmem:[%s1402_s25 + $0xf0] sm:$0xff]  ;;  %v198_v35 = vld [vmem:[%s1402_s25 + $0xf8] sm:$0xff] }
  0x1c   : > { %1168 = vmatmul.msk.f32.gmra.mxu1 %vm207_vm0, %v176_v9  ;;  %1176 = vmatmul.msk.f32.gmra.mxu2 %vm207_vm0, %v184_v10 }
  0x1e   : > { %1184 = vmatmul.msk.f32.gmra.mxu3 %vm207_vm0, %v192_v11 }
  0x23   : > { %1161 = vmatmul.msk.f32.gmra.mxu0 %vm207_vm0, %v169_v12 }
  0x24   : > { %1169 = vmatmul.msk.f32.gmra.mxu1 %vm207_vm0, %v177_v13  ;;  %1177 = vmatmul.msk.f32.gmra.mxu2 %vm207_vm0, %v185_v14 }
  0x26   : > { %1185 = vmatmul.msk.f32.gmra.mxu3 %vm207_vm0, %v193_v15 }
  0x2b   : > { %1162 = vmatmul.msk.f32.gmra.mxu0 %vm207_vm0, %v170_v16 }
  0x2c   : > { %1170 = vmatmul.msk.f32.gmra.mxu1 %vm207_vm0, %v178_v17  ;;  %1178 = vmatmul.msk.f32.gmra.mxu2 %vm207_vm0, %v186_v18 }
  0x2e   : > { %1186 = vmatmul.msk.f32.gmra.mxu3 %vm207_vm0, %v194_v19 }
  0x33   : > { %1163 = vmatmul.msk.f32.gmra.mxu0 %vm207_vm0, %v171_v20 }
  0x34   : > { %1171 = vmatmul.msk.f32.gmra.mxu1 %vm207_vm0, %v179_v21  ;;  %1179 = vmatmul.msk.f32.gmra.mxu2 %vm207_vm0, %v187_v22 }
  0x36   : > { %1187 = vmatmul.msk.f32.gmra.mxu3 %vm207_vm0, %v195_v23 }
  0x3b   : > { %1164 = vmatmul.msk.f32.gmra.mxu0 %vm207_vm0, %v172_v24 }
  0x3c   : > { %1172 = vmatmul.msk.f32.gmra.mxu1 %vm207_vm0, %v180_v25  ;;  %1180 = vmatmul.msk.f32.gmra.mxu2 %vm207_vm0, %v188_v26 }
  0x3e   : > { %1188 = vmatmul.msk.f32.gmra.mxu3 %vm207_vm0, %v196_v27 }
  0x43   : > { %1165 = vmatmul.msk.f32.gmra.mxu0 %vm207_vm0, %v173_v28 }
  0x44   : > { %1173 = vmatmul.msk.f32.gmra.mxu1 %vm207_vm0, %v181_v29  ;;  %1181 = vmatmul.msk.f32.gmra.mxu2 %vm207_vm0, %v189_v30 }
  0x46   : > { %1189 = vmatmul.msk.f32.gmra.mxu3 %vm207_vm0, %v197_v31 }
  0x4b   : > { %1166 = vmatmul.msk.f32.gmra.mxu0 %vm207_vm0, %v174_v32 }
  0x4c   : > { %1174 = vmatmul.msk.f32.gmra.mxu1 %vm207_vm0, %v182_v33  ;;  %1182 = vmatmul.msk.f32.gmra.mxu2 %vm207_vm0, %v190_v34 }
  0x4e   : > { %1190 = vmatmul.msk.f32.gmra.mxu3 %vm207_vm0, %v198_v35 }
  0x90   : > { %v321_v37 = vpop.f32.mrf.mxu0 }
  0x91   : > { %v345_v38 = vpop.f32.mrf.mxu1  ;;  %v1474_v39 = vadd.f32 %v1471_v36, %v321_v37 }
  0x92   : > { %v1477_v40 = vadd.f32 %v1471_v36, %v345_v38 }
  0x93   : > { %v417_v41 = vsub.f32 0.0, %v1474_v39 }
  0x94   : > { %v425_v42 = vsub.f32 0.0, %v1477_v40 }
  0x95   : > { %v449_v44 = vmul.f32 1.442695, %v417_v41 }
  0x96   : > { %v465_v45 = vmul.f32 1.442695, %v425_v42 }
  0x97   : > { %v369_v43 = vpop.f32.mrf.mxu2  ;;  %1216 = vpow2.f32 %v449_v44 }
  0x98   : > { %v324_v46 = vpop.f32.mrf.mxu0  ;;  %v1482_v47 = vadd.f32 %v1471_v36, %v369_v43  ;;  %1218 = vpow2.f32 %v465_v45 }
  0x99   : > { %v1485_v48 = vadd.f32 %v1471_v36, %v324_v46  ;;  %v348_v53 = vpop.f32.mrf.mxu1  ;;  %v393_v0 = vpop.f32.mrf.mxu3 }
  0x9a   : > { %v433_v49 = vsub.f32 0.0, %v1482_v47  ;;  %v1492_v57 = vadd.f32 %v1471_v36, %v348_v53  ;;  %v1507_v5 = vadd.f32 %v1471_v36, %v393_v0 }
  0x9b   : > { %v418_v50 = vsub.f32 0.0, %v1485_v48 }
  0x9c   : > { %v481_v52 = vmul.f32 1.442695, %v433_v49  ;;  %v426_v62 = vsub.f32 0.0, %v1492_v57  ;;  %v441_v14 = vsub.f32 0.0, %v1507_v5 }
  0x9d   : > { %v1217_v51 = vpop.eup %1216  ;;  %v451_v55 = vmul.f32 1.442695, %v418_v50 }
  0x9e   : > { %v1219_v54 = vpop.eup %1218  ;;  %v1489_v56 = vadd.f32 1.0, %v1217_v51  ;;  %1220 = vpow2.f32 %v481_v52  ;;  %v467_v4 = vmul.f32 1.442695, %v426_v62  ;;  %v497_v19 = vmul.f32 1.442695, %v441_v14 }
  0x9f   : > { %v1494_v59 = vadd.f32 1.0, %v1219_v54  ;;  %v372_v60 = vpop.f32.mrf.mxu2  ;;  %1222 = vpow2.f32 %v451_v55 }
  0xa0   : > { %v327_v58 = vpop.f32.mrf.mxu0  ;;  %1224 = vrcp.f32 %v1489_v56  ;;  %v1503_v63 = vadd.f32 %v1471_v36, %v372_v60  ;;  %v554_v31 = vand.u32 2147483647, %v1489_v56  ;;  %v556_v32 = vand.u32 2147483648, %v1489_v56 }
  0xa1   : > { %v1497_v61 = vadd.f32 %v1471_v36, %v327_v58  ;;  %1226 = vrcp.f32 %v1494_v59  ;;  %v351_v3 = vpop.f32.mrf.mxu1  ;;  %vm662_vm1 = vweird.f32 %v1494_v59  ;;  %v666_v33 = vand.u32 2147483647, %v1494_v59 }
  0xa2   : > { %v434_v7 = vsub.f32 0.0, %v1503_v63  ;;  %v1515_v10 = vadd.f32 %v1471_v36, %v351_v3  ;;  %1228 = vpow2.f32 %v467_v4  ;;  %v668_v38 = vand.u32 2147483648, %v1494_v59 }
  0xa3   : > { %v419_v2 = vsub.f32 0.0, %v1497_v61  ;;  %vm550_vm4 = vweird.f32 %v1489_v56  ;;  %vm1556_vm5 = vcmp.eq.f32.partialorder %v554_v31, 8.507059e+37  ;;  %v557_v50 = vor.u32 1.1754944e-38, %v556_v32 }
  0xa4   : > { %v1221_v1 = vpop.eup %1220  ;;  %v483_v16 = vmul.f32 1.442695, %v434_v7  ;;  %v427_v18 = vsub.f32 0.0, %v1515_v10  ;;  %vm1577_vm8 = vcmp.eq.f32.partialorder %v666_v33, 8.507059e+37  ;;  %v669_v60 = vor.u32 1.1754944e-38, %v668_v38 }
  0xa5   : > { %v1223_v6 = vpop.eup %1222  ;;  %v1512_v9 = vadd.f32 1.0, %v1221_v1  ;;  %v453_v12 = vmul.f32 1.442695, %v419_v2 }
  0xa6   : > { %v1510_v8 = vpop.eup %1224  ;;  %v1519_v13 = vadd.f32 1.0, %v1223_v6  ;;  %v469_v23 = vmul.f32 1.442695, %v427_v18 }
  0xa7   : > { %v1517_v11 = vpop.eup %1226  ;;  %v546_v15 = vmul.f32 %v1510_v8, %v1489_v56  ;;  %1230 = vrcp.f32 %v1512_v9  ;;  %vm551_vm3 = vweird.f32 %v1510_v8  ;;  %v375_v46 = vpop.f32.mrf.mxu2  ;;  %v780_v56 = vand.u32 2147483648, %v1512_v9 }
  0xa8   : > { %v658_v17 = vmul.f32 %v1517_v11, %v1494_v59  ;;  %1232 = vpow2.f32 %v453_v12  ;;  %v1229_v21 = vpop.eup %1228  ;;  %vm663_vm2 = vweird.f32 %v1517_v11  ;;  %v330_v35 = vpop.f32.mrf.mxu0  ;;  %vm1573_vm7 = vmor %vm550_vm4, %vm551_vm3  ;;  %v570_v58 = vand.u32 2147483648, %v1519_v13 }
  0xa9   : > { %1234 = vrcp.f32 %v1519_v13  ;;  %v547_v20 = vsub.f32 1.0, %v546_v15  ;;  %v1532_v27 = vadd.f32 1.0, %v1229_v21  ;;  %vm1564_vm6 = vmor %vm662_vm1, %vm663_vm2  ;;  %v1569_v52 = vadd.f32 %v1471_v36, %v330_v35  ;;  %v354_v4 = vpop.f32.mrf.mxu1 }
  0xaa   : > { %1236 = vpow2.f32 %v483_v16  ;;  %v659_v22 = vsub.f32 1.0, %v658_v17  ;;  %v1590_v0 = vadd.f32 %v1471_v36, %v375_v46  ;;  %vm774_vm10 = vweird.f32 %v1512_v9 }
  0xab   : > { %1238 = vpow2.f32 %v497_v19  ;;  %v548_v26 = vmul.f32 %v1510_v8, %v547_v20  ;;  %v778_v7 = vand.u32 2147483647, %v1512_v9  ;;  %v420_v12 = vsub.f32 0.0, %v1569_v52  ;;  %v396_v20 = vpop.f32.mrf.mxu3 }
  0xac   : > { %v660_v29 = vmul.f32 %v1517_v11, %v659_v22  ;;  %1240 = vpow2.f32 %v469_v23  ;;  %v1603_v14 = vor.u32 1.1754944e-38, %v780_v56  ;;  %vm564_vm11 = vweird.f32 %v1519_v13 }
  0xad   : > { %v1529_v24 = vpop.eup %1230  ;;  %v549_v37 = vadd.f32 %v1510_v8, %v548_v26  ;;  %1242 = vrcp.f32 %v1532_v27  ;;  %v1607_v15 = vor.u32 1.1754944e-38, %v570_v58  ;;  %v435_v18 = vsub.f32 0.0, %v1590_v0 }
  0xae   : > { %v1233_v25 = vpop.eup %1232  ;;  %v661_v42 = vadd.f32 %v1517_v11, %v660_v29  ;;  %v770_v43 = vmul.f32 %v1529_v24, %v1512_v9  ;;  %v1615_v19 = vadd.f32 %v1471_v36, %v354_v4  ;;  %vm1624_vm12 = vcmp.eq.f32.partialorder %v778_v7, 8.507059e+37 }
  0xaf   : > { %v1534_v28 = vpop.eup %1234  ;;  %v1542_v34 = vadd.f32 1.0, %v1233_v25  ;;  %v553_v59 = vsel %vm1573_vm7, %v1510_v8, %v549_v37  ;;  %v682_v31 = vand.u32 2147483648, %v1532_v27  ;;  %v455_v32 = vmul.f32 1.442695, %v420_v12 }
  0xb0   : > { %v1237_v30 = vpop.eup %1236  ;;  %v560_v44 = vmul.f32 %v1534_v28, %v1519_v13  ;;  %v665_v1 = vsel %vm1564_vm6, %v1517_v11, %v661_v42  ;;  %v771_v2 = vsub.f32 1.0, %v770_v43  ;;  %v568_v11 = vand.u32 2147483647, %v1519_v13  ;;  %v333_v26 = vpop.f32.mrf.mxu0 }
  0xb1   : > { %v1239_v41 = vpop.eup %1238  ;;  %v1553_v45 = vadd.f32 1.0, %v1237_v30  ;;  %1244 = vrcp.f32 %v1542_v34  ;;  %v558_v16 = vsel %vm1556_vm5, %v557_v50, %v553_v59  ;;  %v670_v17 = vsel %vm1577_vm8, %v669_v60, %v665_v1  ;;  %v357_v1 = vpop.f32.mrf.mxu1 }
  0xb2   : > { %v1241_v53 = vpop.eup %1240  ;;  %v1587_v62 = vadd.f32 1.0, %v1239_v41  ;;  %v561_v3 = vsub.f32 1.0, %v560_v44  ;;  %v772_v22 = vmul.f32 %v1529_v24, %v771_v2  ;;  %v680_v30 = vand.u32 2147483647, %v1532_v27  ;;  %v378_v41 = vpop.f32.mrf.mxu2 }
  0xb3   : > { %1246 = vrcp.f32 %v1553_v45  ;;  %v1596_v6 = vpop.eup %1242  ;;  %v1600_v8 = vadd.f32 1.0, %v1241_v53  ;;  %v993_v35 = vmul.f32 %v558_v16, %v1474_v39  ;;  %v1001_v37 = vmul.f32 %v670_v17, %v1477_v40 }
  0xb4   : > { %v562_v23 = vmul.f32 %v1534_v28, %v561_v3  ;;  %v672_v25 = vmul.f32 %v1596_v6, %v1532_v27  ;;  %1248 = vrcp.f32 %v1587_v62  ;;  %vm775_vm13 = vweird.f32 %v1529_v24 }
  0xb5   : > { %1250 = vrcp.f32 %v1600_v8  ;;  %v1637_v38 = vadd.f32 %v1471_v36, %v396_v20  ;;  %vm1639_vm14 = vcmp.eq.f32.partialorder %v568_v11, 8.507059e+37  ;;  %v485_v44 = vmul.f32 1.442695, %v435_v18  ;;  %vm1654_vm0 = vmor %vm774_vm10, %vm775_vm13 }
  0xb6   : > { %v428_v46 = vsub.f32 0.0, %v1615_v19  ;;  %v1647_v39 = vadd.f32 %v1471_v36, %v333_v26  ;;  %v773_v40 = vadd.f32 %v1529_v24, %v772_v22  ;;  %v563_v49 = vadd.f32 %v1534_v28, %v562_v23 }
  0xb7   : > { %v1617_v21 = vpop.eup %1244  ;;  %vm565_vm15 = vweird.f32 %v1534_v28  ;;  %v673_v50 = vsub.f32 1.0, %v672_v25  ;;  %vm676_vm1 = vweird.f32 %v1532_v27  ;;  %v1659_v53 = vor.u32 1.1754944e-38, %v682_v31 }
  0xb8   : > { %v574_v43 = vmul.f32 %v1617_v21, %v1542_v34  ;;  %1252 = vpow2.f32 %v455_v32  ;;  %v1664_v55 = vadd.f32 %v1471_v36, %v378_v41  ;;  %v1669_v58 = vsel %vm1025_vm9, %v993_v35, 0.0  ;;  %vm1682_vm2 = vmor %vm564_vm11, %vm565_vm15 }
  0xb9   : > { %v1631_v33 = vpop.eup %1246  ;;  %v1672_v9 = vsel %vm1025_vm9, %v1001_v37, 0.0  ;;  %v890_v59 = vand.u32 2147483647, %v1587_v62  ;;  %v442_v60 = vsub.f32 0.0, %v1637_v38  ;;  %1254 = vpow2.f32 %v485_v44 }
  0xba   : > { %v784_v54 = vmul.f32 %v1631_v33, %v1553_v45  ;;  %v1666_v56 = vpop.eup %1248  ;;  %v575_v4 = vsub.f32 1.0, %v574_v43  ;;  %v471_v7 = vmul.f32 1.442695, %v428_v46  ;;  %v421_v12 = vsub.f32 0.0, %v1647_v39 }
  0xbb   : > { %v1676_v2 = vpop.eup %1250  ;;  %v777_v11 = vsel %vm1654_vm0, %v1529_v24, %v773_v40  ;;  %v567_v16 = vsel %vm1682_vm2, %v1534_v28, %v563_v49  ;;  %v674_v17 = vmul.f32 %v1596_v6, %v673_v50  ;;  %v792_v13 = vand.u32 2147483647, %v1553_v45 }
  0xbc   : > { %v785_v18 = vsub.f32 1.0, %v784_v54  ;;  %v882_v20 = vmul.f32 %v1666_v56, %v1587_v62  ;;  %v436_v22 = vsub.f32 0.0, %v1664_v55  ;;  %v1699_v23 = vadd.f32 %v1471_v36, %v357_v1 }
  0xbd   : > { %vm677_vm3 = vweird.f32 %v1596_v6  ;;  %vm788_vm4 = vweird.f32 %v1553_v45  ;;  %v686_v24 = vmul.f32 %v1676_v2, %v1600_v8  ;;  %v499_v28 = vmul.f32 1.442695, %v442_v60 }
  0xbe   : > { %v1253_v25 = vpop.eup %1252  ;;  %vm1705_vm5 = vcmp.eq.f32.partialorder %v680_v30, 8.507059e+37  ;;  %v794_v31 = vand.u32 2147483648, %v1553_v45  ;;  %v576_v32 = vmul.f32 %v1617_v21, %v575_v4  ;;  %vm886_vm6 = vweird.f32 %v1587_v62  ;;  %vm1737_vm11 = vmor %vm676_vm1, %vm677_vm3 }
  0xbf   : > { %1256 = vpow2.f32 %v471_v7  ;;  %v457_v35 = vmul.f32 1.442695, %v421_v12  ;;  %v782_v37 = vsel %vm1624_vm12, %v1603_v14, %v777_v11  ;;  %v572_v41 = vsel %vm1639_vm14, %v1607_v15, %v567_v16  ;;  %v1255_v44 = vpop.eup %1254 }
  0xc0   : > { %v675_v30 = vadd.f32 %v1596_v6, %v674_v17  ;;  %v582_v43 = vand.u32 2147483647, %v1542_v34  ;;  %v786_v46 = vmul.f32 %v1631_v33, %v785_v18  ;;  %vm1721_vm7 = vcmp.eq.f32.partialorder %v792_v13, 8.507059e+37 }
  0xc1   : > { %v883_v49 = vsub.f32 1.0, %v882_v20  ;;  %v487_v50 = vmul.f32 1.442695, %v436_v22  ;;  %v429_v29 = vsub.f32 0.0, %v1699_v23  ;;  %vm789_vm8 = vweird.f32 %v1631_v33 }
  0xc2   : > { %v687_v14 = vsub.f32 1.0, %v686_v24  ;;  %v1727_v42 = vadd.f32 1.0, %v1253_v25  ;;  %1258 = vpow2.f32 %v499_v28  ;;  %v577_v15 = vadd.f32 %v1617_v21, %v576_v32  ;;  %vm1749_vm13 = vmor %vm788_vm4, %vm789_vm8  ;;  %v336_v24 = vpop.f32.mrf.mxu0 }
  0xc3   : > { %vm579_vm10 = vweird.f32 %v1617_v21  ;;  %v584_v51 = vand.u32 2147483648, %v1542_v34  ;;  %1260 = vpow2.f32 %v457_v35  ;;  %v994_v54 = vmul.f32 %v572_v41, %v1485_v48 }
  0xc4   : > { %v795_v1 = vor.u32 1.1754944e-38, %v794_v31  ;;  %vm578_vm12 = vweird.f32 %v1542_v34  ;;  %v1742_v3 = vadd.f32 1.0, %v1255_v44  ;;  %v787_v7 = vadd.f32 %v1631_v33, %v786_v46 }
  0xc5   : > { %v1257_v4 = vpop.eup %1256  ;;  %v884_v27 = vmul.f32 %v1666_v56, %v883_v49  ;;  %1262 = vpow2.f32 %v487_v50  ;;  %v473_v12 = vmul.f32 1.442695, %v429_v29  ;;  %vm1754_vm14 = vmor %vm578_vm12, %vm579_vm10  ;;  %vm1758_vm15 = vcmp.eq.f32.partialorder %v582_v43, 8.507059e+37  ;;  %v399_v49 = vpop.f32.mrf.mxu3 }
  0xc6   : > { %v688_v16 = vmul.f32 %v1676_v2, %v687_v14  ;;  %v892_v45 = vand.u32 2147483648, %v1587_v62  ;;  %1264 = vrcp.f32 %v1727_v42  ;;  %v679_v17 = vsel %vm1737_vm11, %v1596_v6, %v675_v30 }
  0xc7   : > { %v581_v13 = vsel %vm1754_vm14, %v1617_v21, %v577_v15  ;;  %v585_v18 = vor.u32 1.1754944e-38, %v584_v51  ;;  %vm887_vm0 = vweird.f32 %v1666_v56  ;;  %vm690_vm1 = vweird.f32 %v1600_v8 }
  0xc8   : > { %v1259_v20 = vpop.eup %1258  ;;  %vm691_vm2 = vweird.f32 %v1676_v2  ;;  %1266 = vrcp.f32 %v1742_v3  ;;  %v1775_v22 = vadd.f32 1.0, %v1257_v4  ;;  %v791_v6 = vsel %vm1749_vm13, %v1631_v33, %v787_v7  ;;  %vm1793_vm3 = vmor %vm886_vm6, %vm887_vm0 }
  0xc9   : > { %v1261_v28 = vpop.eup %1260  ;;  %v696_v21 = vand.u32 2147483648, %v1600_v8  ;;  %v885_v25 = vadd.f32 %v1666_v56, %v884_v27  ;;  %1268 = vpow2.f32 %v473_v12  ;;  %v684_v31 = vsel %vm1705_vm5, %v1659_v53, %v679_v17  ;;  %vm1803_vm4 = vmor %vm690_vm1, %vm691_vm2 }
  0xca   : > { %v586_v32 = vsel %vm1758_vm15, %v585_v18, %v581_v13  ;;  %v689_v35 = vadd.f32 %v1676_v2, %v688_v16  ;;  %v694_v41 = vand.u32 2147483647, %v1600_v8  ;;  %v1009_v43 = vmul.f32 %v782_v37, %v1482_v47 }
  0xcb   : > { %v1263_v30 = vpop.eup %1262  ;;  %v1027_v53 = vsel %vm1025_vm9, %v994_v54, 0.0  ;;  %vm1809_vm5 = vcmp.eq.f32.partialorder %v890_v59, 8.507059e+37  ;;  %v1813_v46 = vadd.f32 1.0, %v1259_v20  ;;  %v796_v37 = vsel %vm1721_vm7, %v795_v1, %v791_v6  ;;  %v381_v1 = vpop.f32.mrf.mxu2 }
  0xcc   : > { %v1815_v47 = vpop.eup %1264  ;;  %v893_v50 = vor.u32 1.1754944e-38, %v892_v45  ;;  %1270 = vrcp.f32 %v1775_v22  ;;  %v1820_v8 = vadd.f32 1.0, %v1261_v28  ;;  %v1002_v29 = vmul.f32 %v684_v31, %v1492_v57  ;;  %v339_v45 = vpop.f32.mrf.mxu0 }
  0xcd   : > { %v995_v62 = vmul.f32 %v586_v32, %v1497_v61  ;;  %v697_v59 = vor.u32 1.1754944e-38, %v696_v21  ;;  %v889_v14 = vsel %vm1793_vm3, %v1666_v56, %v885_v25  ;;  %v693_v40 = vsel %vm1803_vm4, %v1676_v2, %v689_v35 }
  0xce   : > { %v1827_v15 = vpop.eup %1266  ;;  %vm695_vm6 = vcmp.eq.f32.partialorder %v694_v41, 8.507059e+37  ;;  %v1832_v51 = vadd.f32 1.0, %v1263_v30  ;;  %v1835_v54 = vadd.f32 %v1471_v36, %v399_v49  ;;  %v1838_v61 = vsel %vm1025_vm9, %v1009_v43, 0.0 }
  0xcf   : > { %v1269_v57 = vpop.eup %1268  ;;  %v1010_v60 = vmul.f32 %v796_v37, %v1503_v63  ;;  %v588_v56 = vmul.f32 %v1815_v47, %v1727_v42  ;;  %1272 = vrcp.f32 %v1813_v46  ;;  %v1028_v2 = vadd.f32 %v1027_v53, %v1669_v58 }
  0xd0   : > { %v894_v4 = vsel %vm1809_vm5, %v893_v50, %v889_v14  ;;  %1274 = vrcp.f32 %v1820_v8  ;;  %v1849_v7 = vadd.f32 %v1471_v36, %v336_v24  ;;  %v1852_v48 = vsel %vm1025_vm9, %v1002_v29, 0.0 }
  0xd1   : > { %v1029_v63 = vsel %vm1025_vm9, %v995_v62, 0.0  ;;  %v698_v27 = vsel %vm695_vm6, %v697_v59, %v693_v40  ;;  %v798_v12 = vmul.f32 %v1827_v15, %v1742_v3  ;;  %1276 = vrcp.f32 %v1832_v51 }
  0xd2   : > { %v1857_v11 = vpop.eup %1270  ;;  %v1860_v58 = vadd.f32 1.0, %v1269_v57  ;;  %v443_v34 = vsub.f32 0.0, %v1835_v54  ;;  %v1864_v16 = vadd.f32 %v1471_v36, %v381_v1  ;;  %v1867_v17 = vsel %vm1025_vm9, %v1010_v60, 0.0  ;;  %v360_v60 = vpop.f32.mrf.mxu1 }
  0xd3   : > { %v1870_v13 = vmul.f32 %v894_v4, %v1507_v5  ;;  %v808_v18 = vand.u32 2147483648, %v1742_v3  ;;  %v589_v20 = vsub.f32 1.0, %v588_v56  ;;  %v1873_v24 = vadd.f32 %v1029_v63, %v1028_v2 }
  0xd4   : > { %v1876_v28 = vmul.f32 %v698_v27, %v1515_v10  ;;  %vm802_vm7 = vweird.f32 %v1742_v3  ;;  %v422_v6 = vsub.f32 0.0, %v1849_v7  ;;  %v799_v25 = vsub.f32 1.0, %v798_v12 }
  0xd5   : > { %v1880_v21 = vpop.eup %1272  ;;  %v806_v31 = vand.u32 2147483647, %v1742_v3  ;;  %v700_v5 = vmul.f32 %v1857_v11, %v1775_v22  ;;  %v1886_v32 = vadd.f32 %v1471_v36, %v339_v45  ;;  %v596_v10 = vand.u32 2147483647, %v1727_v42 }
  0xd6   : > { %v1888_v35 = vpop.eup %1274  ;;  %1278 = vrcp.f32 %v1860_v58  ;;  %v501_v41 = vmul.f32 1.442695, %v443_v34  ;;  %v437_v33 = vsub.f32 0.0, %v1864_v16  ;;  %v1893_v30 = vor.u32 1.1754944e-38, %v808_v18 }
  0xd7   : > { %v590_v43 = vmul.f32 %v1815_v47, %v589_v20  ;;  %vm592_vm8 = vweird.f32 %v1727_v42  ;;  %v598_v53 = vand.u32 2147483648, %v1727_v42  ;;  %v1898_v26 = vpop.eup %1276  ;;  %v708_v44 = vand.u32 2147483647, %v1775_v22 }
  0xd8   : > { %v710_v49 = vand.u32 2147483648, %v1775_v22  ;;  %v896_v37 = vmul.f32 %v1880_v21, %v1813_v46  ;;  %v459_v50 = vmul.f32 1.442695, %v422_v6  ;;  %v800_v29 = vmul.f32 %v1827_v15, %v799_v25 }
  0xd9   : > { %vm1905_vm10 = vcmp.eq.f32.partialorder %v806_v31, 8.507059e+37  ;;  %v701_v59 = vsub.f32 1.0, %v700_v5  ;;  %v602_v14 = vmul.f32 %v1888_v35, %v1820_v8  ;;  %v423_v40 = vsub.f32 0.0, %v1886_v32 }
  0xda   : > { %vm803_vm11 = vweird.f32 %v1827_v15  ;;  %vm1913_vm12 = vcmp.eq.f32.partialorder %v596_v10, 8.507059e+37  ;;  %vm704_vm13 = vweird.f32 %v1775_v22  ;;  %1280 = vpow2.f32 %v501_v41 }
  0xdb   : > { %v591_v56 = vadd.f32 %v1815_v47, %v590_v43  ;;  %vm593_vm14 = vweird.f32 %v1815_v47  ;;  %v599_v1 = vor.u32 1.1754944e-38, %v598_v53  ;;  %v812_v2 = vmul.f32 %v1898_v26, %v1832_v51  ;;  %vm1931_vm15 = vmor %vm802_vm7, %vm803_vm11  ;;  %v1956_v53 = vpop.f32.mrf.mxu3 }
  0xdc   : > { %v1922_v4 = vpop.eup %1278  ;;  %v1924_v63 = vor.u32 1.1754944e-38, %v710_v49  ;;  %v897_v27 = vsub.f32 1.0, %v896_v37  ;;  %v489_v12 = vmul.f32 1.442695, %v437_v33  ;;  %1282 = vpow2.f32 %v459_v50  ;;  %vm1942_vm1 = vmor %vm592_vm8, %vm593_vm14 }
  0xdd   : > { %v801_v34 = vadd.f32 %v1827_v15, %v800_v29  ;;  %v702_v18 = vmul.f32 %v1857_v11, %v701_v59  ;;  %vm1936_vm0 = vcmp.eq.f32.partialorder %v708_v44, 8.507059e+37  ;;  %v603_v6 = vsub.f32 1.0, %v602_v14 }
  0xde   : > { %v461_v25 = vmul.f32 1.442695, %v423_v40  ;;  %v904_v3 = vand.u32 2147483647, %v1813_v46  ;;  %v906_v5 = vand.u32 2147483648, %v1813_v46  ;;  %v822_v41 = vand.u32 2147483648, %v1832_v51 }
  0xdf   : > { %v820_v10 = vand.u32 2147483647, %v1832_v51  ;;  %v595_v33 = vsel %vm1942_vm1, %v1815_v47, %v591_v56  ;;  %vm705_vm2 = vweird.f32 %v1857_v11  ;;  %v813_v43 = vsub.f32 1.0, %v812_v2 }
  0xe0   : > { %v714_v42 = vmul.f32 %v1922_v4, %v1860_v58  ;;  %v1281_v44 = vpop.eup %1280  ;;  %v898_v49 = vmul.f32 %v1880_v21, %v897_v27  ;;  %vm900_vm3 = vweird.f32 %v1813_v46  ;;  %vm816_vm4 = vweird.f32 %v1832_v51  ;;  %vm1975_vm5 = vmor %vm704_vm13, %vm705_vm2 }
  0xe1   : > { %v1962_v37 = vadd.f32 %v1471_v36, %v360_v60  ;;  %v805_v47 = vsel %vm1931_vm15, %v1827_v15, %v801_v34  ;;  %v703_v50 = vadd.f32 %v1857_v11, %v702_v18  ;;  %v604_v29 = vmul.f32 %v1888_v35, %v603_v6  ;;  %v363_v18 = vpop.f32.mrf.mxu1 }
  0xe2   : > { %1284 = vpow2.f32 %v461_v25  ;;  %v1283_v59 = vpop.eup %1282  ;;  %v600_v14 = vsel %vm1913_vm12, %v599_v1, %v595_v33  ;;  %vm901_vm6 = vweird.f32 %v1880_v21  ;;  %vm1980_vm7 = vcmp.eq.f32.partialorder %v904_v3, 8.507059e+37  ;;  %v384_v25 = vpop.f32.mrf.mxu2 }
  0xe3   : > { %v907_v60 = vor.u32 1.1754944e-38, %v906_v5  ;;  %v823_v56 = vor.u32 1.1754944e-38, %v822_v41  ;;  %v814_v2 = vmul.f32 %v1898_v26, %v813_v43  ;;  %vm1985_vm8 = vcmp.eq.f32.partialorder %v820_v10, 8.507059e+37  ;;  %vm2004_vm12 = vmor %vm900_vm3, %vm901_vm6 }
  0xe4   : > { %v715_v1 = vsub.f32 1.0, %v714_v42  ;;  %v1989_v22 = vadd.f32 1.0, %v1281_v44  ;;  %1286 = vpow2.f32 %v489_v12  ;;  %v810_v27 = vsel %vm1905_vm10, %v1893_v30, %v805_v47 }
  0xe5   : > { %v899_v34 = vadd.f32 %v1880_v21, %v898_v49  ;;  %vm817_vm11 = vweird.f32 %v1898_v26  ;;  %v430_v45 = vsub.f32 0.0, %v1962_v37  ;;  %v707_v6 = vsel %vm1975_vm5, %v1857_v11, %v703_v50 }
  0xe6   : > { %v605_v30 = vadd.f32 %v1888_v35, %v604_v29  ;;  %vm607_vm10 = vweird.f32 %v1888_v35  ;;  %v2010_v62 = vadd.f32 1.0, %v1283_v59  ;;  %v996_v31 = vmul.f32 %v600_v14, %v1569_v52  ;;  %vm2021_vm14 = vmor %vm816_vm4, %vm817_vm11 }
  0xe7   : > { %vm606_vm13 = vweird.f32 %v1820_v8  ;;  %v610_v11 = vand.u32 2147483647, %v1820_v8  ;;  %v612_v3 = vand.u32 2147483648, %v1820_v8  ;;  %v815_v5 = vadd.f32 %v1898_v26, %v814_v2 }
  0xe8   : > { %v1285_v46 = vpop.eup %1284  ;;  %v716_v41 = vmul.f32 %v1922_v4, %v715_v1  ;;  %1288 = vrcp.f32 %v1989_v22  ;;  %v2028_v52 = vadd.f32 %v1471_v36, %v363_v18  ;;  %v712_v8 = vsel %vm1936_vm0, %v1924_v63, %v707_v6  ;;  %vm2038_vm15 = vmor %vm606_vm13, %vm607_vm10  ;;  %v342_v6 = vpop.f32.mrf.mxu0 }
  0xe9   : > { %v903_v33 = vsel %vm2004_vm12, %v1880_v21, %v899_v34  ;;  %v475_v43 = vmul.f32 1.442695, %v430_v45  ;;  %v2043_v42 = vadd.f32 %v1471_v36, %v384_v25  ;;  %v609_v20 = vsel %vm2038_vm15, %v1888_v35, %v605_v30  ;;  %v2051_v21 = vpop.f32.mrf.mxu3 }
  0xea   : > { %v1287_v44 = vpop.eup %1286  ;;  %vm718_vm0 = vweird.f32 %v1860_v58  ;;  %vm719_vm1 = vweird.f32 %v1922_v4  ;;  %1290 = vrcp.f32 %v2010_v62  ;;  %v613_v63 = vor.u32 1.1754944e-38, %v612_v3 }
  0xeb   : > { %v722_v49 = vand.u32 2147483647, %v1860_v58  ;;  %v724_v47 = vand.u32 2147483648, %v1860_v58  ;;  %v2055_v50 = vadd.f32 1.0, %v1285_v46  ;;  %v819_v29 = vsel %vm2021_vm14, %v1898_v26, %v815_v5  ;;  %vm2062_vm3 = vmor %vm718_vm0, %vm719_vm1 }
  0xec   : > { %vm611_vm2 = vcmp.eq.f32.partialorder %v610_v11, 8.507059e+37  ;;  %v717_v35 = vadd.f32 %v1922_v4, %v716_v41  ;;  %v431_v59 = vsub.f32 0.0, %v2028_v52  ;;  %v2066_v2 = vadd.f32 1.0, %v1287_v44 }
  0xed   : > { %v614_v14 = vsel %vm611_vm2, %v613_v63, %v609_v20  ;;  %1292 = vpow2.f32 %v475_v43  ;;  %v438_v58 = vsub.f32 0.0, %v2043_v42  ;;  %v1011_v34 = vmul.f32 %v810_v27, %v1590_v0 }
  0xee   : > { %v2069_v1 = vpop.eup %1288  ;;  %v1031_v26 = vsel %vm1025_vm9, %v996_v31, 0.0  ;;  %v1004_v45 = vmul.f32 %v712_v8, %v1615_v19  ;;  %v908_v18 = vsel %vm1980_vm7, %v907_v60, %v903_v33  ;;  %v824_v12 = vsel %vm1985_vm8, %v823_v56, %v819_v29  ;;  %v387_v56 = vpop.f32.mrf.mxu2 }
  0xef   : > { %vm2078_vm4 = vcmp.eq.f32.partialorder %v722_v49, 8.507059e+37  ;;  %v725_v25 = vor.u32 1.1754944e-38, %v724_v47  ;;  %1294 = vrcp.f32 %v2055_v50  ;;  %v997_v0 = vmul.f32 %v614_v14, %v1647_v39  ;;  %v366_v49 = vpop.f32.mrf.mxu1 }
  0xf0   : > { %v2083_v11 = vpop.eup %1290  ;;  %v721_v19 = vsel %vm2062_vm3, %v1922_v4, %v717_v35  ;;  %v2091_v15 = vadd.f32 %v1471_v36, %v1956_v53  ;;  %v477_v60 = vmul.f32 1.442695, %v431_v59  ;;  %v910_v57 = vmul.f32 %v2069_v1, %v1989_v22 }
  0xf1   : > { %1296 = vrcp.f32 %v2066_v2  ;;  %v491_v27 = vmul.f32 1.442695, %v438_v58  ;;  %v2097_v31 = vadd.f32 %v1471_v36, %v342_v6  ;;  %v2101_v39 = vsel %vm1025_vm9, %v1876_v28, 0.0 }
  0xf2   : > { %2699 = vst [vmem:[#allocation2_spill] sm:$0xff] %v2091_v15  ;;  %v2105_v4 = vsel %vm1025_vm9, %v1870_v13, 0.0  ;;  %v2108_v53 = vsel %vm1025_vm9, %v1011_v34, 0.0  ;;  %v1012_v3 = vmul.f32 %v824_v12, %v1664_v55  ;;  %v1032_v5 = vadd.f32 %v1031_v26, %v1873_v24  ;;  %v2124_v55 = vpop.f32.mrf.mxu3  ;;  %v1346_v12 = vld [vmem:[%s2632_s2] ss:$0 sm:$0xff] }
  0xf3   : > { %v1293_v46 = vpop.eup %1292  ;;  %v2113_v10 = vsel %vm1025_vm9, %v1004_v45, 0.0  ;;  %v920_v41 = vand.u32 2147483648, %v1989_v22  ;;  %v616_v28 = vmul.f32 %v2083_v11, %v2010_v62  ;;  %v2119_v8 = vmul.f32 %v908_v18, %v1637_v38 }
  0xf4   : > { %v726_v13 = vsel %vm2078_vm4, %v725_v25, %v721_v19  ;;  %v444_v33 = vsub.f32 0.0, %v2091_v15  ;;  %1298 = vpow2.f32 %v477_v60  ;;  %v1033_v51 = vsel %vm1025_vm9, %v997_v0, 0.0 }
  0xf5   : > { %2700 = vst [vmem:[#allocation3_spill] sm:$0xff] %v2119_v8  ;;  %v2126_v24 = vpop.eup %1294  ;;  %v911_v43 = vsub.f32 1.0, %v910_v57  ;;  %1300 = vpow2.f32 %v491_v27  ;;  %v424_v44 = vsub.f32 0.0, %v2097_v31  ;;  %v2131_v20 = vsel %vm1025_vm9, %v1012_v3, 0.0 }
  0xf6   : > { %vm914_vm5 = vweird.f32 %v1989_v22  ;;  %v918_v38 = vand.u32 2147483647, %v1989_v22  ;;  %v2135_v63 = vadd.f32 1.0, %v1293_v46  ;;  %v1005_v29 = vmul.f32 %v726_v13, %v1699_v23  ;;  %v390_v0 = vpop.f32.mrf.mxu2 }
  0xf7   : > { %v2137_v47 = vpop.eup %1296  ;;  %v2140_v35 = vor.u32 1.1754944e-38, %v920_v41  ;;  %v617_v59 = vsub.f32 1.0, %v616_v28  ;;  %v2143_v14 = vadd.f32 %v1471_v36, %v387_v56  ;;  %v2145_v40 = vadd.f32 %v1033_v51, %v1032_v5 }
  0xf8   : > { %v503_v58 = vmul.f32 1.442695, %v444_v33  ;;  %v630_v34 = vmul.f32 %v2126_v24, %v2055_v50  ;;  %v2151_v26 = vadd.f32 %v1471_v36, %v2051_v21  ;;  %v912_v45 = vmul.f32 %v2069_v1, %v911_v43 }
  0xf9   : > { %vm915_vm6 = vweird.f32 %v2069_v1  ;;  %v463_v23 = vmul.f32 1.442695, %v424_v44  ;;  %v2156_v18 = vadd.f32 %v1471_v36, %v366_v49  ;;  %vm2158_vm7 = vcmp.eq.f32.partialorder %v918_v38, 8.507059e+37 }
  0xfa   : > { %2701 = vst [vmem:[#allocation4_spill] sm:$0xff] %v2151_v26  ;;  %v1299_v6 = vpop.eup %1298  ;;  %v826_v30 = vmul.f32 %v2137_v47, %v2066_v2  ;;  %v836_v21 = vand.u32 2147483648, %v2066_v2  ;;  %1302 = vrcp.f32 %v2135_v63  ;;  %v2168_v60 = vsel %vm1025_vm9, %v1005_v29, 0.0  ;;  %vm2185_vm8 = vmor %vm914_vm5, %vm915_vm6  ;;  %v411_v49 = vpop.f32.mrf.mxu3 }
  0xfb   : > { %v1301_v19 = vpop.eup %1300  ;;  %v618_v56 = vmul.f32 %v2083_v11, %v617_v59  ;;  %v439_v57 = vsub.f32 0.0, %v2143_v14  ;;  %1304 = vpow2.f32 %v463_v23  ;;  %v624_v27 = vand.u32 2147483647, %v2010_v62 }
  0xfc   : > { %1306 = vpow2.f32 %v503_v58  ;;  %v631_v3 = vsub.f32 1.0, %v630_v34  ;;  %v432_v46 = vsub.f32 0.0, %v2156_v18  ;;  %v913_v5 = vadd.f32 %v2069_v1, %v912_v45 }
  0xfd   : > { %v626_v41 = vand.u32 2147483648, %v2010_v62  ;;  %v2176_v28 = vadd.f32 1.0, %v1299_v6  ;;  %v2179_v13 = vadd.f32 %v1471_v36, %v390_v0  ;;  %v827_v51 = vsub.f32 1.0, %v826_v30 }
  0xfe   : > { %vm830_vm11 = vweird.f32 %v2066_v2  ;;  %v2190_v43 = vadd.f32 1.0, %v1301_v19  ;;  %v445_v44 = vsub.f32 0.0, %v2151_v26  ;;  %v479_v38 = vmul.f32 1.442695, %v432_v46 }
  0xff   : > { %v619_v36 = vadd.f32 %v2083_v11, %v618_v56  ;;  %vm621_vm12 = vweird.f32 %v2083_v11  ;;  %v493_v29 = vmul.f32 1.442695, %v439_v57  ;;  %v440_v22 = vsub.f32 0.0, %v2179_v13 }
 0x100   : > { %v2196_v59 = vpop.eup %1302  ;;  %v2198_v58 = vor.u32 1.1754944e-38, %v836_v21  ;;  %vm620_vm10 = vweird.f32 %v2010_v62  ;;  %v632_v34 = vmul.f32 %v2126_v24, %v631_v3  ;;  %1308 = vpow2.f32 %v479_v38 }
 0x101   : > { %v1305_v45 = vpop.eup %1304  ;;  %v917_v23 = vsel %vm2185_vm8, %v2069_v1, %v913_v5  ;;  %vm2205_vm13 = vcmp.eq.f32.partialorder %v624_v27, 8.507059e+37  ;;  %v627_v30 = vor.u32 1.1754944e-38, %v626_v41  ;;  %1310 = vrcp.f32 %v2176_v28  ;;  %vm2210_vm14 = vmor %vm620_vm10, %vm621_vm12 }
 0x102   : > { %v1307_v0 = vpop.eup %1306  ;;  %v738_v62 = vand.u32 2147483648, %v2135_v63  ;;  %1312 = vrcp.f32 %v2190_v43  ;;  %v505_v19 = vmul.f32 1.442695, %v445_v44  ;;  %v2216_v56 = vadd.f32 1.0, %v1305_v45  ;;  %v414_v6 = vpop.f32.mrf.mxu3 }
 0x103   : > { %v828_v1 = vmul.f32 %v2137_v47, %v827_v51  ;;  %v623_v57 = vsel %vm2210_vm14, %v2083_v11, %v619_v36  ;;  %1314 = vpow2.f32 %v493_v29  ;;  %v495_v27 = vmul.f32 1.442695, %v440_v22 }
 0x104   : > { %v728_v3 = vmul.f32 %v2196_v59, %v2135_v63  ;;  %v633_v46 = vadd.f32 %v2126_v24, %v632_v34  ;;  %vm635_vm15 = vweird.f32 %v2126_v24  ;;  %1316 = vrcp.f32 %v2216_v56 }
 0x105   : > { %v2230_v5 = vsel %vm2158_vm7, %v2140_v35, %v917_v23  ;;  %vm831_vm0 = vweird.f32 %v2137_v47  ;;  %v2233_v41 = vadd.f32 1.0, %v1307_v0  ;;  %v640_v11 = vand.u32 2147483648, %v2055_v50 }
 0x106   : > { %v1309_v33 = vpop.eup %1308  ;;  %v628_v51 = vsel %vm2205_vm13, %v627_v30, %v623_v57  ;;  %vm634_vm1 = vweird.f32 %v2055_v50  ;;  %v638_v44 = vand.u32 2147483647, %v2055_v50  ;;  %v2244_v35 = vadd.f32 %v1346_v12, %v2124_v55  ;;  %vm2271_vm3 = vmor %vm830_vm11, %vm831_vm0 }
 0x107   : > { %v2246_v38 = vpop.eup %1310  ;;  %v736_v36 = vand.u32 2147483647, %v2135_v63  ;;  %v2249_v29 = vor.u32 1.1754944e-38, %v738_v62  ;;  %vm2253_vm2 = vmor %vm634_vm1, %vm635_vm15  ;;  %v2257_v50 = vadd.f32 1.0, %v1309_v33  ;;  %1318 = vpow2.f32 %v495_v27 }
 0x108   : > { %2710 = vst [vmem:[#allocation5_spill] sm:$0xff] %v2244_v35  ;;  %v2259_v34 = vpop.eup %1312  ;;  %v2262_v55 = vadd.f32 %v2137_v47, %v828_v1  ;;  %v729_v45 = vsub.f32 1.0, %v728_v3  ;;  %v637_v23 = vsel %vm2253_vm2, %v2126_v24, %v633_v46  ;;  %1320 = vpow2.f32 %v505_v19 }
 0x109   : > { %v1315_v30 = vpop.eup %1314  ;;  %v998_v21 = vmul.f32 %v628_v51, %v1849_v7  ;;  %v641_v62 = vor.u32 1.1754944e-38, %v640_v11  ;;  %1322 = vrcp.f32 %v2257_v50  ;;  %v2277_v1 = vadd.f32 %v1346_v12, %v411_v49 }
 0x10a   : > { %v1317_v57 = vpop.eup %1316  ;;  %vm732_vm4 = vweird.f32 %v2135_v63  ;;  %1324 = vrcp.f32 %v2233_v41  ;;  %vm639_vm5 = vcmp.eq.f32.partialorder %v638_v44, 8.507059e+37  ;;  %v742_v24 = vmul.f32 %v2246_v38, %v2176_v28 }
 0x10b   : > { %2715 = vst [vmem:[#allocation6_spill] sm:$0xff] %v2277_v1  ;;  %v446_v19 = vsub.f32 0.0, %v2244_v35  ;;  %v642_v3 = vsel %vm639_vm5, %v641_v62, %v637_v23  ;;  %v644_v7 = vmul.f32 %v1317_v57, %v2216_v56  ;;  %v2286_v46 = vadd.f32 %v1346_v12, %v414_v6 }
 0x10c   : > { %v730_v11 = vmul.f32 %v2196_v59, %v729_v45  ;;  %vm733_vm6 = vweird.f32 %v2196_v59  ;;  %v2294_v33 = vadd.f32 1.0, %v1315_v30  ;;  %v1035_v44 = vsel %vm1025_vm9, %v998_v21, 0.0 }
 0x10d   : > { %2716 = vst [vmem:[#allocation7_spill] sm:$0xff] %v2286_v46  ;;  %v1319_v51 = vpop.eup %1318  ;;  %v2299_v22 = vmul.f32 %v2259_v34, %v2190_v43  ;;  %v645_v12 = vsub.f32 1.0, %v644_v7  ;;  %v447_v23 = vsub.f32 0.0, %v2277_v1  ;;  %v999_v62 = vmul.f32 %v642_v3, %v1886_v32  ;;  %vm2339_vm15 = vmor %vm732_vm4, %vm733_vm6 }
 0x10e   : > { %v1321_v6 = vpop.eup %1320  ;;  %v743_v27 = vsub.f32 1.0, %v742_v24  ;;  %v654_v45 = vand.u32 2147483648, %v2216_v56  ;;  %v507_v49 = vmul.f32 1.442695, %v446_v19  ;;  %v2717_v30 = vand.u32 2147483647, %v2066_v2 }
 0x10f   : > { %v2304_v25 = vpop.eup %1322  ;;  %v646_v35 = vmul.f32 %v1317_v57, %v645_v12  ;;  %vm649_vm8 = vweird.f32 %v1317_v57  ;;  %v652_v7 = vand.u32 2147483647, %v2216_v56  ;;  %v448_v1 = vsub.f32 0.0, %v2286_v46 }
 0x110   : > { %vm2308_vm7 = vcmp.eq.f32.partialorder %v2717_v30, 8.507059e+37  ;;  %v2314_v26 = vpop.eup %1324  ;;  %v731_v32 = vadd.f32 %v2196_v59, %v730_v11  ;;  %1326 = vrcp.f32 %v2294_v33  ;;  %v756_v24 = vmul.f32 %v2304_v25, %v2257_v50 }
 0x111   : > { %v2320_v2 = vadd.f32 1.0, %v1319_v51  ;;  %v1036_v19 = vadd.f32 %v1035_v44, %v2145_v40  ;;  %vm2323_vm11 = vcmp.eq.f32.partialorder %v736_v36, 8.507059e+37  ;;  %v647_v12 = vadd.f32 %v1317_v57, %v646_v35 }
 0x112   : > { %vm648_vm12 = vweird.f32 %v2216_v56  ;;  %v509_v30 = vmul.f32 1.442695, %v447_v23  ;;  %v1037_v46 = vsel %vm1025_vm9, %v999_v62, 0.0  ;;  %v744_v11 = vmul.f32 %v2246_v38, %v743_v27 }
 0x113   : > { %vm650_vm10 = vmor %vm648_vm12, %vm649_vm8  ;;  %v655_v15 = vor.u32 1.1754944e-38, %v654_v45  ;;  %v757_v8 = vsub.f32 1.0, %v756_v24  ;;  %vm653_vm13 = vcmp.eq.f32.partialorder %v652_v7, 8.507059e+37  ;;  %1328 = vpow2.f32 %v507_v49 }
 0x114   : > { %v651_v51 = vsel %vm650_vm10, %v1317_v57, %v647_v12  ;;  %v511_v40 = vmul.f32 1.442695, %v448_v1  ;;  %vm746_vm14 = vweird.f32 %v2176_v28  ;;  %v2332_v36 = vadd.f32 1.0, %v1321_v6 }
 0x115   : > { %v656_v35 = vsel %vm653_vm13, %v655_v15, %v651_v51  ;;  %1330 = vrcp.f32 %v2320_v2  ;;  %vm747_vm0 = vweird.f32 %v2246_v38  ;;  %v758_v1 = vmul.f32 %v2304_v25, %v757_v8 }
 0x116   : > { %v1000_v57 = vmul.f32 %v656_v35, %v2097_v31  ;;  %1332 = vpow2.f32 %v509_v30  ;;  %v2346_v27 = vpop.eup %1326  ;;  %v1038_v15 = vadd.f32 %v1037_v46, %v1036_v19  ;;  %v745_v49 = vadd.f32 %v2246_v38, %v744_v11  ;;  %vm2362_vm4 = vmor %vm746_vm14, %vm747_vm0 }
 0x117   : > { %v750_v44 = vand.u32 2147483647, %v2176_v28  ;;  %v752_v63 = vand.u32 2147483648, %v2176_v28  ;;  %vm760_vm1 = vweird.f32 %v2257_v50  ;;  %vm761_vm2 = vweird.f32 %v2304_v25 }
 0x118   : > { %v1039_v23 = vsel %vm1025_vm9, %v1000_v57, 0.0  ;;  %1334 = vpow2.f32 %v511_v40  ;;  %v735_v31 = vsel %vm2339_vm15, %v2196_v59, %v731_v32  ;;  %v934_v8 = vand.u32 2147483648, %v2233_v41  ;;  %vm2389_vm6 = vmor %vm760_vm1, %vm761_vm2 }
 0x119   : > { %v1040_v6 = vadd.f32 %v1039_v23, %v1038_v15  ;;  %v766_v62 = vand.u32 2147483648, %v2257_v50  ;;  %v1329_v45 = vpop.eup %1328  ;;  %vm844_vm5 = vweird.f32 %v2190_v43  ;;  %1336 = vrcp.f32 %v2332_v36 }
 0x11a   : > { %v854_v59 = vmul.f32 %v2346_v27, %v2294_v33  ;;  %v759_v7 = vadd.f32 %v2304_v25, %v758_v1  ;;  %v764_v32 = vand.u32 2147483647, %v2257_v50  ;;  %v2726_v24 = vsel %vm2271_vm3, %v2137_v47, %v2262_v55 }
 0x11b   : > { %v2373_v28 = vpop.eup %1330  ;;  %v838_v19 = vsel %vm2308_vm7, %v2198_v58, %v2726_v24  ;;  %v841_v12 = vsub.f32 1.0, %v2299_v22  ;;  %v753_v30 = vor.u32 1.1754944e-38, %v752_v63  ;;  %v1042_v11 = vadd.f32 %v1672_v9, %v1040_v6 }
 0x11c   : > { %v1333_v0 = vpop.eup %1332  ;;  %v924_v47 = vmul.f32 %v2314_v26, %v2233_v41  ;;  %v848_v55 = vand.u32 2147483647, %v2190_v43  ;;  %v749_v58 = vsel %vm2362_vm4, %v2246_v38, %v745_v49  ;;  %vm751_vm3 = vcmp.eq.f32.partialorder %v750_v44, 8.507059e+37 }
 0x11d   : > { %v740_v9 = vsel %vm2323_vm11, %v2249_v29, %v735_v31  ;;  %v1044_v50 = vadd.f32 %v1852_v48, %v1042_v11  ;;  %v767_v22 = vor.u32 1.1754944e-38, %v766_v62  ;;  %v2403_v21 = vadd.f32 1.0, %v1329_v45 }
 0x11e   : > { %v1335_v40 = vpop.eup %1334  ;;  %v855_v35 = vsub.f32 1.0, %v854_v59  ;;  %v763_v56 = vsel %vm2389_vm6, %v2304_v25, %v759_v7  ;;  %vm765_vm7 = vcmp.eq.f32.partialorder %v764_v32, 8.507059e+37  ;;  %v868_v38 = vmul.f32 %v2373_v28, %v2320_v2 }
 0x11f   : > { %v842_v57 = vmul.f32 %v2259_v34, %v841_v12  ;;  %v754_v1 = vsel %vm751_vm3, %v753_v30, %v749_v58  ;;  %v1046_v29 = vadd.f32 %v2101_v39, %v1044_v50  ;;  %v2412_v3 = vadd.f32 1.0, %v1333_v0  ;;  %v2414_v48 = vpop.eup %1336 }
 0x120   : > { %v2417_v15 = vmul.f32 %v838_v19, %v1864_v16  ;;  %v1006_v49 = vmul.f32 %v740_v9, %v1962_v37  ;;  %vm845_vm8 = vweird.f32 %v2259_v34  ;;  %v850_v25 = vand.u32 2147483648, %v2190_v43 }
 0x121   : > { %v768_v44 = vsel %vm765_vm7, %v767_v22, %v763_v56  ;;  %v1048_v63 = vadd.f32 %v2113_v10, %v1046_v29  ;;  %1338 = vrcp.f32 %v2403_v21  ;;  %v2424_v23 = vadd.f32 1.0, %v1335_v40  ;;  %vm2442_vm13 = vmor %vm844_vm5, %vm845_vm8 }
 0x122   : > { %v925_v39 = vsub.f32 1.0, %v924_v47  ;;  %v1007_v31 = vmul.f32 %v754_v1, %v2028_v52  ;;  %v856_v46 = vmul.f32 %v2346_v27, %v855_v35  ;;  %v869_v16 = vsub.f32 1.0, %v868_v38 }
 0x123   : > { %v843_v6 = vadd.f32 %v2259_v34, %v842_v57  ;;  %v938_v37 = vmul.f32 %v2414_v48, %v2332_v36  ;;  %v1050_v62 = vadd.f32 %v2168_v60, %v1048_v63  ;;  %1340 = vrcp.f32 %v2412_v3 }
 0x124   : > { %v1051_v10 = vsel %vm1025_vm9, %v1006_v49, 0.0  ;;  %vm928_vm11 = vweird.f32 %v2233_v41  ;;  %vm858_vm12 = vweird.f32 %v2294_v33  ;;  %vm859_vm10 = vweird.f32 %v2346_v27 }
 0x125   : > { %v1008_v52 = vmul.f32 %v768_v44, %v2156_v18  ;;  %v862_v60 = vand.u32 2147483647, %v2294_v33  ;;  %v864_v59 = vand.u32 2147483648, %v2294_v33  ;;  %v1052_v7 = vadd.f32 %v1051_v10, %v1050_v62  ;;  %vm2463_vm15 = vmor %vm858_vm12, %vm859_vm10 }
 0x126   : > { %1342 = vrcp.f32 %v2424_v23  ;;  %vm2449_vm14 = vcmp.eq.f32.partialorder %v848_v55, 8.507059e+37  ;;  %v1053_v18 = vsel %vm1025_vm9, %v1007_v31, 0.0  ;;  %v857_v24 = vadd.f32 %v2346_v27, %v856_v46 }
 0x127   : > { %v870_v43 = vmul.f32 %v2373_v28, %v869_v16  ;;  %v2456_v19 = vpop.eup %1338  ;;  %v926_v12 = vmul.f32 %v2314_v26, %v925_v39  ;;  %v851_v30 = vor.u32 1.1754944e-38, %v850_v25  ;;  %v939_v11 = vsub.f32 1.0, %v938_v37 }
 0x128   : > { %v1054_v0 = vadd.f32 %v1053_v18, %v1052_v7  ;;  %v847_v47 = vsel %vm2442_vm13, %v2259_v34, %v843_v6  ;;  %v1055_v55 = vsel %vm1025_vm9, %v1008_v52, 0.0  ;;  %vm872_vm0 = vweird.f32 %v2320_v2 }
 0x129   : > { %vm873_vm1 = vweird.f32 %v2373_v28  ;;  %v2473_v58 = vpop.eup %1340  ;;  %vm2475_vm2 = vcmp.eq.f32.partialorder %v862_v60, 8.507059e+37  ;;  %v865_v33 = vor.u32 1.1754944e-38, %v864_v59  ;;  %v878_v22 = vand.u32 2147483648, %v2320_v2 }
 0x12a   : > { %v1056_v50 = vadd.f32 %v1055_v55, %v1054_v0  ;;  %v861_v34 = vsel %vm2463_vm15, %v2346_v27, %v857_v24  ;;  %v952_v40 = vmul.f32 %v2456_v19, %v2403_v21  ;;  %v871_v35 = vadd.f32 %v2373_v28, %v870_v43  ;;  %vm2497_vm5 = vmor %vm872_vm0, %vm873_vm1 }
 0x12b   : > { %v876_v56 = vand.u32 2147483647, %v2320_v2  ;;  %v927_v57 = vadd.f32 %v2314_v26, %v926_v12  ;;  %vm929_vm4 = vweird.f32 %v2314_v26  ;;  %v940_v1 = vmul.f32 %v2414_v48, %v939_v11 }
 0x12c   : > { %v2487_v38 = vpop.eup %1342  ;;  %v1058_v29 = vadd.f32 %v1838_v61, %v1056_v50  ;;  %v852_v49 = vsel %vm2449_vm14, %v851_v30, %v847_v47  ;;  %vm942_vm6 = vweird.f32 %v2332_v36  ;;  %v946_v25 = vand.u32 2147483647, %v2332_v36  ;;  %vm2520_vm8 = vmor %vm928_vm11, %vm929_vm4 }
 0x12d   : > { %v966_v44 = vmul.f32 %v2473_v58, %v2412_v3  ;;  %vm943_vm3 = vweird.f32 %v2414_v48  ;;  %v866_v61 = vsel %vm2475_vm2, %v865_v33, %v861_v34  ;;  %v879_v63 = vor.u32 1.1754944e-38, %v878_v22 }
 0x12e   : > { %v1060_v2 = vadd.f32 %v1867_v17, %v1058_v29  ;;  %v953_v39 = vsub.f32 1.0, %v952_v40  ;;  %v875_v31 = vsel %vm2497_vm5, %v2373_v28, %v871_v35  ;;  %vm877_vm7 = vcmp.eq.f32.partialorder %v876_v56, 8.507059e+37  ;;  %vm2542_vm11 = vmor %vm942_vm6, %vm943_vm3 }
 0x12f   : > { %v980_v46 = vmul.f32 %v2487_v38, %v2424_v23  ;;  %v1014_v17 = vmul.f32 %v852_v49, %v2043_v42  ;;  %v941_v6 = vadd.f32 %v2414_v48, %v940_v1  ;;  %v948_v37 = vand.u32 2147483648, %v2332_v36  ;;  %v2758_v42 = vld [vmem:[#allocation6_spill] sm:$0xff] }
 0x130   : > { %v1062_v28 = vadd.f32 %v2108_v53, %v1060_v2  ;;  %v1019_v62 = vmul.f32 %v2230_v5, %v1835_v54  ;;  %v2741_v10 = vand.u32 2147483647, %v2233_v41  ;;  %v935_v45 = vor.u32 1.1754944e-38, %v934_v8 }
 0x131   : > { %v967_v53 = vsub.f32 1.0, %v966_v44  ;;  %v1065_v54 = vsel %vm1025_vm9, %v2417_v15, 0.0  ;;  %v1015_v5 = vmul.f32 %v866_v61, %v2143_v14  ;;  %v880_v60 = vsel %vm877_vm7, %v879_v63, %v875_v31 }
 0x132   : > { %vm2532_vm12 = vcmp.eq.f32.partialorder %v2741_v10, 8.507059e+37  ;;  %v1064_v59 = vadd.f32 %v2131_v20, %v1062_v28  ;;  %v931_v41 = vsel %vm2520_vm8, %v2314_v26, %v927_v57  ;;  %vm2553_vm10 = vcmp.eq.f32.partialorder %v946_v25, 8.507059e+37  ;;  %v2755_v25 = vld [vmem:[#allocation2_spill] sm:$0xff] }
 0x133   : > { %v954_v36 = vmul.f32 %v2456_v19, %v953_v39  ;;  %v981_v7 = vsub.f32 1.0, %v980_v46  ;;  %v1067_v32 = vsel %vm1025_vm9, %v1014_v17, 0.0  ;;  %v945_v14 = vsel %vm2542_vm11, %v2414_v48, %v941_v6  ;;  %v2756_v39 = vld [vmem:[#allocation4_spill] sm:$0xff] }
 0x134   : > { %v949_v15 = vor.u32 1.1754944e-38, %v948_v37  ;;  %v1066_v18 = vadd.f32 %v1065_v54, %v1064_v59  ;;  %vm956_vm13 = vweird.f32 %v2403_v21  ;;  %vm957_vm14 = vweird.f32 %v2456_v19  ;;  %v2757_v37 = vld [vmem:[#allocation5_spill] sm:$0xff] }
 0x135   : > { %v1016_v20 = vmul.f32 %v880_v60, %v2179_v13  ;;  %v968_v26 = vmul.f32 %v2473_v58, %v967_v53  ;;  %v1069_v24 = vsel %vm1025_vm9, %v1015_v5, 0.0  ;;  %v960_v43 = vand.u32 2147483647, %v2403_v21  ;;  %vm2573_vm1 = vmor %vm956_vm13, %vm957_vm14  ;;  %v2759_v5 = vld [vmem:[#allocation7_spill] sm:$0xff] }
 0x136   : > { %v962_v12 = vand.u32 2147483648, %v2403_v21  ;;  %v1068_v30 = vadd.f32 %v1067_v32, %v1066_v18  ;;  %v955_v11 = vadd.f32 %v2456_v19, %v954_v36  ;;  %vm970_vm15 = vweird.f32 %v2412_v3 }
 0x137   : > { %vm971_vm0 = vweird.f32 %v2473_v58  ;;  %v982_v48 = vmul.f32 %v2487_v38, %v981_v7  ;;  %v974_v0 = vand.u32 2147483647, %v2412_v3  ;;  %v976_v47 = vand.u32 2147483648, %v2412_v3 }
 0x138   : > { %v1070_v13 = vadd.f32 %v1069_v24, %v1068_v30  ;;  %vm984_vm2 = vweird.f32 %v2424_v23  ;;  %v1071_v21 = vsel %vm1025_vm9, %v1016_v20, 0.0  ;;  %v969_v55 = vadd.f32 %v2473_v58, %v968_v26  ;;  %vm2585_vm5 = vmor %vm970_vm15, %vm971_vm0 }
 0x139   : > { %vm985_vm4 = vweird.f32 %v2487_v38  ;;  %v936_v9 = vsel %vm2532_vm12, %v935_v45, %v931_v41  ;;  %v963_v33 = vor.u32 1.1754944e-38, %v962_v12  ;;  %v990_v34 = vand.u32 2147483648, %v2424_v23 }
 0x13a   : > { %v1072_v50 = vadd.f32 %v1071_v21, %v1070_v13  ;;  %v959_v3 = vsel %vm2573_vm1, %v2456_v19, %v955_v11  ;;  %vm961_vm6 = vcmp.eq.f32.partialorder %v960_v43, 8.507059e+37  ;;  %v983_v40 = vadd.f32 %v2487_v38, %v982_v48  ;;  %vm2600_vm3 = vmor %vm984_vm2, %vm985_vm4  ;;  %v2754_v19 = vld [vmem:[#allocation3_spill] sm:$0xff] }
 0x13b   : > { %v988_v35 = vand.u32 2147483647, %v2424_v23  ;;  %v950_v56 = vsel %vm2553_vm10, %v949_v15, %v945_v14  ;;  %v977_v1 = vor.u32 1.1754944e-38, %v976_v47  ;;  %v1355_v27 = vmov 256.0  }
 0x13c   : > { %v1074_v57 = vadd.f32 %v2105_v4, %v1072_v50  ;;  %1344 = vrcp.f32 %v1355_v27  ;;  %v1075_v49 = vsel %vm1025_vm9, %v2754_v19, 0.0  ;;  %v1020_v44 = vmul.f32 %v936_v9, %v2755_v25 }
 0x13d   : > { %v973_v61 = vsel %vm2585_vm5, %v2473_v58, %v969_v55  ;;  %vm975_vm7 = vcmp.eq.f32.partialorder %v974_v0, 8.507059e+37  ;;  %v964_v4 = vsel %vm961_vm6, %v963_v33, %v959_v3  ;;  %v991_v63 = vor.u32 1.1754944e-38, %v990_v34 }
 0x13e   : > { %v1076_v2 = vadd.f32 %v1075_v49, %v1074_v57  ;;  %v1077_v23 = vsel %vm1025_vm9, %v1019_v62, 0.0  ;;  %v1021_v31 = vmul.f32 %v950_v56, %v2756_v39  ;;  %v987_v46 = vsel %vm2600_vm3, %v2487_v38, %v983_v40 }
 0x13f   : > { %vm989_vm8 = vcmp.eq.f32.partialorder %v988_v35, 8.507059e+37  ;;  %v978_v17 = vsel %vm975_vm7, %v977_v1, %v973_v61  ;;  %v1079_v6 = vsel %vm1025_vm9, %v1020_v44, 0.0  ;;  %v1022_v28 = vmul.f32 %v964_v4, %v2757_v37 }
 0x140   : > { %v1078_v16 = vadd.f32 %v1077_v23, %v1076_v2  ;;  %v992_v52 = vsel %vm989_vm8, %v991_v63, %v987_v46  ;;  %v1081_v45 = vsel %vm1025_vm9, %v1021_v31, 0.0  ;;  %v1023_v62 = vmul.f32 %v978_v17, %v2758_v42 }
 0x141   : > { %v1083_v54 = vsel %vm1025_vm9, %v1022_v28, 0.0  ;;  %v1024_v60 = vmul.f32 %v992_v52, %v2759_v5  ;;  %vm1103_vm11 = vcmask 57344  }
 0x142   : > { %v1345_v58 = vpop.eup %1344  ;;  %v1080_v10 = vadd.f32 %v1079_v6, %v1078_v16  ;;  %v1085_v41 = vsel %vm1025_vm9, %v1023_v62, 0.0 }
 0x143   : > { %v1096_v38 = vmul.f32 256.0, %v1345_v58  ;;  %v1087_v36 = vsel %vm1025_vm9, %v1024_v60, 0.0  ;;  %vm1100_vm12 = vweird.f32 %v1345_v58 }
 0x144   : > { %v1082_v53 = vadd.f32 %v1081_v45, %v1080_v10 }
 0x145   : > { %v1097_v7 = vsub.f32 1.0, %v1096_v38 }
 0x146   : > { %v1084_v59 = vadd.f32 %v1083_v54, %v1082_v53 }
 0x147   : > { %v1098_v15 = vmul.f32 %v1345_v58, %v1097_v7 }
 0x148   : > { %v1086_v8 = vadd.f32 %v1085_v41, %v1084_v59 }
 0x149   : > { %v1099_v26 = vadd.f32 %v1345_v58, %v1098_v15 }
 0x14a   : > { %v1088_v32 = vadd.f32 %v1087_v36, %v1086_v8 }
 0x14b   : > { %v1101_v12 = vsel %vm1100_vm12, %v1345_v58, %v1099_v26 }
 0x14c   : > { %v1089_v14 = vrot.slane %v1088_v32, 4 }
 0x14e   : > { %v1090_v18 = vadd.f32 %v1089_v14, %v1088_v32 }
 0x150   : > { %v1091_v20 = vrot.slane %v1090_v18, 2 }
 0x152   : > { %v1092_v24 = vadd.f32 %v1091_v20, %v1090_v18 }
 0x154   : > { %v1093_v43 = vrot.slane %v1092_v24, 1 }
 0x156   : > { %v1094_v30 = vadd.f32 %v1093_v43, %v1092_v24 }
 0x158   : > { %v1102_v11 = vmul.f32 %v1101_v12, %v1094_v30 }
 0x15a   : > { %1104 = vst.msk [vmem:[%s166_s5] sm:$0x1] %vm1103_vm11, %v1102_v11 }
 0x15b PF: > { %s13_s12 = sadd.s32 1, %s1353_s12  }
 0x15c   : > { %p10_p4 = scmp.ge.s32.totalorder %s13_s12, 4  }
 0x15e   :  { %12 = sbr.rel (!%p10_p4) target bundleno = 1 (0x1), region = 62 }

// kernel: critic_forward.2
= control target key start
LH: loop header
LB: loop body
LE: loop exit
PB: predicated region body
PF: predicated region fallthrough
CT: control target
= control target key end

     0   :  { %s4802_s24 = smov 0   ;;  %s7404_s0 = inlined_call_operand.vmem [shape: f32[2,290,32], index: 0, kind: input, shape index: {}]   ;;  %s7405_s1 = inlined_call_operand.vmem [shape: f32[9,32,32], index: 1, kind: input, shape index: {}]   ;;  %s7406_s2 = inlined_call_operand.vmem [shape: f32[1,32], index: 2, kind: input, shape index: {}]   ;;  %s7407_s3 = inlined_call_operand.vmem [shape: f32[256,1], index: 3, kind: input, shape index: {}]   ;;  %s7408_s4 = inlined_call_operand.vmem [shape: f32[256,1], index: 4, kind: input, shape index: {}]   ;;  %s7409_s5 = inlined_call_operand.vmem [shape: f32[2,256,32], index: 5, kind: output, shape index: {0}]   ;;  %s7410_s6 = inlined_call_operand.vmem [shape: f32[2,1,32], index: 6, kind: output, shape index: {1}]   ;;  %s7411_s7 = inlined_call_operand.vmem [shape: f32[2,1,32], index: 7, kind: output, shape index: {2}]  }
   0x1 LB: > { %s4264_s25 = sadd.s32 4294967295, %s4759_s24   ;;  %p4268_p0 = scmp.ge.s32.totalorder %s4759_s24, 1  ;;  %s4759_s24 = sphi %s4802_s24, %s18_s24  }
   0x2   : > { %p242_p1 = scmp.lt.s32.totalorder %s4759_s24, 3 }
   0x4   : > { %p243_p2 = pnand %p4268_p0, %p242_p1 }
   0x6   : > { %246 = sbr.rel (%p243_p2) target bundleno = 834 (0x342), region = 40 }
   0xb   : > { %v4275_v0 = vld [vmem:[%s7405_s1 + $0x38] sm:$0xff]  ;;  %v1046_v1 = vld [vmem:[%s7408_s4 + $0x10] sm:$0xff]  ;;  %v1045_v2 = vld [vmem:[%s7408_s4 + $0x8] sm:$0xff]  ;;  %p280_p3 = scmp.lt.s32.totalorder %s4264_s25, 1  ;;  %v4761_v3 = vmov 0   ;;  %vm593_vm0 = vcmask 261120  }
   0xc   : > { %702 = vmatpush.msra.mxu0 %v4275_v0  ;;  %4619 = vset.pattern.permute.xlu2 %v4761_v3  ;;  %v1044_v4 = vld [vmem:[%s7408_s4] sm:$0xff]  ;;  %v4274_v5 = vld [vmem:[%s7405_s1 + $0x30] sm:$0xff]  ;;  %v4273_v6 = vld [vmem:[%s7405_s1 + $0x28] sm:$0xff] }
   0xd   : > { %4618 = vset.pattern.permute.xlu1 %v4761_v3  ;;  %4617 = vset.pattern.permute.xlu0 %v4761_v3  ;;  %s7707_s25 = smov (!%p280_p3, %s4264_s25), 1  ;;  %v4272_v7 = vld [vmem:[%s7405_s1 + $0x20] sm:$0xff]  ;;  %v330_v9 = vld [vmem:[%s7407_s3 + $0x10] sm:$0xff]  ;;  %v329_v10 = vld [vmem:[%s7407_s3 + $0x8] sm:$0xff] }
   0xe   : > { %1088 = vperm.xlu2 %4619, %v1046_v1   ;;  %1083 = vperm.xlu1 %4618, %v1045_v2   ;;  %s4607_s15 = smul.u32 296, %s7707_s25  ;;  %v328_v11 = vld [vmem:[%s7407_s3] sm:$0xff]  ;;  %v331_v14 = vld [vmem:[%s7407_s3 + $0x18] sm:$0xff]  ;;  %v333_v18 = vld [vmem:[%s7407_s3 + $0x28] sm:$0xff]  ;;  %s4594_s8 = sshll.u32 %s7707_s25, 8 }
   0xf   : > { %1078 = vperm.xlu0 %4617, %v1044_v4   ;;  %703 = vmatpush.msra.mxu0 %v4274_v5  ;;  %v1048_v13 = vld [vmem:[%s7408_s4 + $0x20] sm:$0xff]  ;;  %v1047_v15 = vld [vmem:[%s7408_s4 + $0x18] sm:$0xff]  ;;  %v1049_v19 = vld [vmem:[%s7408_s4 + $0x28] sm:$0xff]  ;;  %s6716_s11 = scalar_lea.vmem %s7409_s5, %s4594_s8  ;;  %s292_s17 = scalar_lea.vmem %s7410_s6, %s7707_s25 }
  0x10   : > { %4596 = vmatpush.msra.mxu2 %v4275_v0  ;;  %4595 = vmatpush.msra.mxu1 %v4275_v0  ;;  %s4837_s20 = scalar_lea.vmem %s7404_s0, %s4607_s15  ;;  %v332_v20 = vld [vmem:[%s7407_s3 + $0x20] sm:$0xff]  ;;  %v4343_v21 = vld [vmem:[%s7405_s1 + $0x58] sm:$0xff]  ;;  %v334_v28 = vld [vmem:[%s7407_s3 + $0x30] sm:$0xff]  ;;  %s295_s21 = scalar_lea.vmem %s7411_s7, %s7707_s25 }
  0x11   : > { %704 = vmatpush.msra.mxu0 %v4273_v6  ;;  %4597 = vmatpush.msra.mxu3 %v4275_v0  ;;  %v556_v8 = vld [vmem:[%s4837_s20 + $0x1] sm:$0xff]  ;;  %v557_v12 = vld [vmem:[%s4837_s20 + $0x9] sm:$0xff]  ;;  %v4867_v17 = vld [vmem:[%s4837_s20 + $0x11] sm:$0xff] }
  0x12   : > { %4599 = vmatpush.msra.mxu2 %v4274_v5  ;;  %4598 = vmatpush.msra.mxu1 %v4274_v5  ;;  %v4862_v16 = vld [vmem:[%s4837_s20 + $0x81] sm:$0xff]  ;;  %v4887_v23 = vld [vmem:[%s4837_s20 + $0x89] sm:$0xff]  ;;  %v4379_v25 = vld [vmem:[%s7405_s1 + $0x78] sm:$0xff] }
  0x13   : > { %705 = vmatpush.msra.mxu0 %v4272_v7  ;;  %4600 = vmatpush.msra.mxu3 %v4274_v5  ;;  %v4884_v22 = vld [vmem:[%s4837_s20 + $0x41] sm:$0xff]  ;;  %v4896_v26 = vld [vmem:[%s4837_s20 + $0x19] sm:$0xff]  ;;  %v1050_v29 = vld [vmem:[%s7408_s4 + $0x30] sm:$0xff] }
  0x14   : > { %4276 = vmatmul.msk.f32.vlgmr.msra.gmra.mxu0 %vm593_vm0, %v556_v8  ;;  %4602 = vmatpush.msra.mxu2 %v4273_v6  ;;  %v580_v24 = vld [vmem:[%s4837_s20 + $0xc1] sm:$0xff]  ;;  %v1051_v27 = vld [vmem:[%s7408_s4 + $0x38] sm:$0xff]  ;;  %v4414_v32 = vld [vmem:[%s7405_s1 + $0x90] sm:$0xff] }
  0x15   : > { %4601 = vmatpush.msra.mxu1 %v4273_v6  ;;  %4603 = vmatpush.msra.mxu3 %v4273_v6  ;;  %v555_v30 = vld [vmem:[%s7405_s1 + $0x18] sm:$0xff]  ;;  %v4413_v33 = vld [vmem:[%s7405_s1 + $0x88] sm:$0xff]  ;;  %v4412_v38 = vld [vmem:[%s7405_s1 + $0x80] sm:$0xff] }
  0x16   : > { %372 = vperm.xlu2 %4619, %v330_v9   ;;  %367 = vperm.xlu1 %4618, %v329_v10   ;;  %v4415_v31 = vld [vmem:[%s7405_s1 + $0x98] sm:$0xff]  ;;  %v4925_v34 = vld [vmem:[%s4837_s20 + $0x49] sm:$0xff]  ;;  %v4934_v37 = vld [vmem:[%s4837_s20 + $0x21] sm:$0xff] }
  0x17   : > { %362 = vperm.xlu0 %4617, %v328_v11   ;;  %4605 = vmatpush.msra.mxu2 %v4272_v7  ;;  %v4930_v35 = vld [vmem:[%s4837_s20 + $0x91] sm:$0xff]  ;;  %v581_v36 = vld [vmem:[%s4837_s20 + $0xc9] sm:$0xff]  ;;  %v336_v39 = vld [vmem:[%s7407_s3 + $0x40] sm:$0xff] }
  0x18   : > { %4604 = vmatpush.msra.mxu1 %v4272_v7  ;;  %4606 = vmatpush.msra.mxu3 %v4272_v7  ;;  %v1052_v40 = vld [vmem:[%s7408_s4 + $0x40] sm:$0xff]  ;;  %v335_v41 = vld [vmem:[%s7407_s3 + $0x38] sm:$0xff]  ;;  %v4342_v42 = vld [vmem:[%s7405_s1 + $0x50] sm:$0xff] }
  0x19   : > { %4292 = vmatmul.msk.f32.vlgmr.msra.gmra.mxu2 %vm593_vm0, %v4862_v16  ;;  %4284 = vmatmul.msk.f32.vlgmr.msra.gmra.mxu1 %vm593_vm0, %v4884_v22  ;;  %v4957_v43 = vld [vmem:[%s4837_s20 + $0x51] sm:$0xff]  ;;  %v4960_v44 = vld [vmem:[%s4837_s20 + $0x99] sm:$0xff]  ;;  %v4969_v47 = vld [vmem:[%s4837_s20 + $0x29] sm:$0xff] }
  0x1a   : > { %1381 = vmatpush.msrb.mxu2 %v4343_v21  ;;  %4300 = vmatmul.msk.f32.vlgmr.msra.gmra.mxu3 %vm593_vm0, %v580_v24  ;;  %v582_v45 = vld [vmem:[%s4837_s20 + $0xd1] sm:$0xff]  ;;  %v337_v49 = vld [vmem:[%s7407_s3 + $0x48] sm:$0xff]  ;;  %v4989_v52 = vld [vmem:[%s4837_s20 + $0x59] sm:$0xff] }
  0x1b   : > { %1691 = vmatpush.msrb.mxu3 %v4379_v25  ;;  %911 = vmatpush.msrb.mxu1 %v555_v30  ;;  %v4378_v46 = vld [vmem:[%s7405_s1 + $0x70] sm:$0xff]  ;;  %v1053_v50 = vld [vmem:[%s7408_s4 + $0x48] sm:$0xff]  ;;  %v583_v54 = vld [vmem:[%s4837_s20 + $0xd9] sm:$0xff] }
  0x1c   : > { %4277 = vmatmul.msk.f32.gmra.mxu0 %vm593_vm0, %v557_v12  ;;  %1382 = vmatpush.msrb.mxu2 %v4342_v42  ;;  %v1054_v48 = vld [vmem:[%s7408_s4 + $0x50] sm:$0xff]  ;;  %v4992_v53 = vld [vmem:[%s4837_s20 + $0xa1] sm:$0xff]  ;;  %v339_v56 = vld [vmem:[%s7407_s3 + $0x58] sm:$0xff] }
  0x1d   : > { %1969 = vmatpush.msrb.mxu0 %v4415_v31  ;;  %1692 = vmatpush.msrb.mxu3 %v4378_v46  ;;  %v554_v51 = vld [vmem:[%s7405_s1 + $0x10] sm:$0xff]  ;;  %v1055_v57 = vld [vmem:[%s7408_s4 + $0x58] sm:$0xff]  ;;  %v4341_v60 = vld [vmem:[%s7405_s1 + $0x48] sm:$0xff] }
  0x1e   : > { %1098 = vperm.xlu2 %4619, %v1048_v13   ;;  %377 = vperm.xlu1 %4618, %v331_v14   ;;  %v4998_v55 = vld [vmem:[%s4837_s20 + $0x31] sm:$0xff]  ;;  %v5015_v59 = vld [vmem:[%s4837_s20 + $0x39] sm:$0xff]  ;;  %v5021_v61 = vld [vmem:[%s4837_s20 + $0x61] sm:$0xff] }
  0x1f   : > { %1093 = vperm.xlu0 %4617, %v1047_v15   ;;  %1970 = vmatpush.msrb.mxu0 %v4414_v32  ;;  %v338_v58 = vld [vmem:[%s7407_s3 + $0x50] sm:$0xff]  ;;  %v584_v63 = vld [vmem:[%s4837_s20 + $0xe1] sm:$0xff]  ;;  %v579_v13 = vld [vmem:[%s4837_s20 + $0xb9] sm:$0xff] }
  0x20   : > { %912 = vmatpush.msrb.mxu1 %v554_v51  ;;  %1383 = vmatpush.msrb.mxu2 %v4341_v60  ;;  %v5024_v62 = vld [vmem:[%s4837_s20 + $0xa9] sm:$0xff]  ;;  %v340_v1 = vld [vmem:[%s7407_s3 + $0x60] sm:$0xff]  ;;  %v578_v6 = vld [vmem:[%s4837_s20 + $0xb1] sm:$0xff] }
  0x21   : > { %4293 = vmatmul.msk.f32.gmra.mxu2 %vm593_vm0, %v4887_v23  ;;  %4285 = vmatmul.msk.f32.gmra.mxu1 %vm593_vm0, %v4925_v34  ;;  %v1057_v0 = vld [vmem:[%s7408_s4 + $0x68] sm:$0xff]  ;;  %v1056_v3 = vld [vmem:[%s7408_s4 + $0x60] sm:$0xff]  ;;  %v342_v8 = vld [vmem:[%s7407_s3 + $0x70] sm:$0xff] }
  0x22   : > { %4301 = vmatmul.msk.f32.gmra.mxu3 %vm593_vm0, %v581_v36  ;;  %1971 = vmatpush.msrb.mxu0 %v4413_v33  ;;  %v4377_v2 = vld [vmem:[%s7405_s1 + $0x68] sm:$0xff]  ;;  %v1058_v9 = vld [vmem:[%s7408_s4 + $0x70] sm:$0xff]  ;;  %v4340_v11 = vld [vmem:[%s7405_s1 + $0x40] sm:$0xff] }
  0x23   : > { %v553_v4 = vld [vmem:[%s7405_s1 + $0x8] sm:$0xff]  ;;  %1693 = vmatpush.msrb.mxu3 %v4377_v2  ;;  %v5073_v12 = vld [vmem:[%s4837_s20 + $0x71] sm:$0xff]  ;;  %1384 = vmatpush.msrb.mxu2 %v4340_v11  ;;  %v4376_v15 = vld [vmem:[%s7405_s1 + $0x60] sm:$0xff] }
  0x24   : > { %4278 = vmatmul.msk.f32.gmra.mxu0 %vm593_vm0, %v4867_v17  ;;  %913 = vmatpush.msrb.mxu1 %v553_v4  ;;  %v5050_v5 = vld [vmem:[%s4837_s20 + $0x69] sm:$0xff]  ;;  %v586_v14 = vld [vmem:[%s4837_s20 + $0xf1] sm:$0xff]  ;;  %v5105_v25 = vld [vmem:[%s4837_s20 + $0x79] sm:$0xff] }
  0x25   : > { %1972 = vmatpush.msrb.mxu0 %v4412_v38  ;;  %v585_v7 = vld [vmem:[%s4837_s20 + $0xe9] sm:$0xff]  ;;  %1694 = vmatpush.msrb.mxu3 %v4376_v15  ;;  %v1063_v33 = vld [vmem:[%s7408_s4 + $0x98] sm:$0xff]  ;;  %v348_v46 = vld [vmem:[%s7407_s3 + $0xa0] sm:$0xff] }
  0x26   : > { %387 = vperm.xlu2 %4619, %v333_v18   ;;  %1103 = vperm.xlu1 %4618, %v1049_v19   ;;  %v341_v10 = vld [vmem:[%s7407_s3 + $0x68] sm:$0xff]  ;;  %v343_v18 = vld [vmem:[%s7407_s3 + $0x78] sm:$0xff]  ;;  %v346_v36 = vld [vmem:[%s7407_s3 + $0x90] sm:$0xff] }
  0x27   : > { %382 = vperm.xlu0 %4617, %v332_v20   ;;  %v1059_v19 = vld [vmem:[%s7408_s4 + $0x78] sm:$0xff]  ;;  %v552_v20 = vld [vmem:[%s7405_s1] sm:$0xff]  ;;  %v345_v21 = vld [vmem:[%s7407_s3 + $0x88] sm:$0xff] }
  0x28   : > { %914 = vmatpush.msrb.mxu1 %v552_v20  ;;  %v1061_v24 = vld [vmem:[%s7408_s4 + $0x88] sm:$0xff]  ;;  %v1062_v38 = vld [vmem:[%s7408_s4 + $0x90] sm:$0xff]  ;;  %v5200_v60 = vld [vmem:[%s4837_s20 + $0x1a] sm:$0xff] }
  0x29   : > { %4294 = vmatmul.msk.f32.gmra.mxu2 %vm593_vm0, %v4930_v35  ;;  %4286 = vmatmul.msk.f32.gmra.mxu1 %vm593_vm0, %v4957_v43  ;;  %v5122_v30 = vld [vmem:[%s4837_s20 + $0x22] sm:$0xff]  ;;  %v350_v15 = vld [vmem:[%s7407_s3 + $0xb0] sm:$0xff] }
  0x2a   : > { %4302 = vmatmul.msk.f32.gmra.mxu3 %vm593_vm0, %v582_v45  ;;  %v5210_v4 = vld [vmem:[%s4837_s20 + $0x48] sm:$0xff]  ;;  %v298_v20 = vld [vmem:[%s4837_s20 + $0x10] sm:$0xff] }
  0x2c   : > { %4279 = vmatmul.msk.f32.gmra.mxu0 %vm593_vm0, %v4896_v26 }
  0x2e   : > { %1113 = vperm.xlu2 %4619, %v1051_v27   ;;  %392 = vperm.xlu1 %4618, %v334_v28   ;;  %v344_v27 = vld [vmem:[%s7407_s3 + $0x80] sm:$0xff]  ;;  %v5117_v28 = vld [vmem:[%s4837_s20 + $0x32] sm:$0xff] }
  0x2f   : > { %1108 = vperm.xlu0 %4617, %v1050_v29  }
  0x31   : > { %4295 = vmatmul.msk.f32.gmra.mxu2 %vm593_vm0, %v4960_v44  ;;  %4287 = vmatmul.msk.f32.gmra.mxu1 %vm593_vm0, %v4989_v52 }
  0x32   : > { %4303 = vmatmul.msk.f32.gmra.mxu3 %vm593_vm0, %v583_v54 }
  0x34   : > { %4280 = vmatmul.msk.f32.gmra.mxu0 %vm593_vm0, %v4934_v37 }
  0x36   : > { %402 = vperm.xlu2 %4619, %v336_v39   ;;  %1118 = vperm.xlu1 %4618, %v1052_v40   ;;  %v4523_v39 = vld [vmem:[%s7405_s1 + $0xf8] sm:$0xff] }
  0x37   : > { %397 = vperm.xlu0 %4617, %v335_v41   ;;  %v4451_v40 = vld [vmem:[%s7405_s1 + $0xb8] sm:$0xff]  ;;  %v5153_v41 = vld [vmem:[%s4837_s20 + $0x30] sm:$0xff]  ;;  %2867 = vmatpush.msra.mxu3 %v4523_v39 }
  0x38   : > { %2279 = vmatpush.msra.mxu1 %v4451_v40 }
  0x39   : > { %4296 = vmatmul.msk.f32.gmra.mxu2 %vm593_vm0, %v4992_v53  ;;  %4288 = vmatmul.msk.f32.gmra.mxu1 %vm593_vm0, %v5021_v61 }
  0x3a   : > { %4304 = vmatmul.msk.f32.gmra.mxu3 %vm593_vm0, %v584_v63  ;;  %v5203_v63 = vld [vmem:[%s4837_s20 + $0x2a] sm:$0xff] }
  0x3c   : > { %4281 = vmatmul.msk.f32.gmra.mxu0 %vm593_vm0, %v4969_v47 }
  0x3e   : > { %1128 = vperm.xlu2 %4619, %v1054_v48   ;;  %407 = vperm.xlu1 %4618, %v337_v49   ;;  %v347_v48 = vld [vmem:[%s7407_s3 + $0x98] sm:$0xff] }
  0x3f   : > { %1123 = vperm.xlu0 %4617, %v1053_v50   ;;  %v4559_v49 = vld [vmem:[%s7405_s1 + $0x118] sm:$0xff]  ;;  %v5176_v50 = vld [vmem:[%s4837_s20 + $0x42] sm:$0xff] }
  0x40   : > { %3177 = vmatpush.msra.mxu0 %v4559_v49  ;;  %v352_v49 = vld [vmem:[%s7407_s3 + $0xc0] sm:$0xff] }
  0x41   : > { %4297 = vmatmul.msk.f32.gmra.mxu2 %vm593_vm0, %v5024_v62  ;;  %4289 = vmatmul.msk.f32.gmra.mxu1 %vm593_vm0, %v5050_v5 }
  0x42   : > { %4305 = vmatmul.msk.f32.gmra.mxu3 %vm593_vm0, %v585_v7 }
  0x44   : > { %4282 = vmatmul.msk.f32.gmra.mxu0 %vm593_vm0, %v4998_v55 }
  0x46   : > { %417 = vperm.xlu2 %4619, %v339_v56   ;;  %1133 = vperm.xlu1 %4618, %v1055_v57   ;;  %v1066_v56 = vld [vmem:[%s7408_s4 + $0xb0] sm:$0xff]  ;;  %v349_v57 = vld [vmem:[%s7407_s3 + $0xa8] sm:$0xff] }
  0x47   : > { %412 = vperm.xlu0 %4617, %v338_v58   ;;  %v1065_v58 = vld [vmem:[%s7408_s4 + $0xa8] sm:$0xff] }
  0x49   : > { %4298 = vmatmul.msk.f32.gmra.mxu2 %vm593_vm0, %v578_v6  ;;  %4290 = vmatmul.msk.f32.gmra.mxu1 %vm593_vm0, %v5073_v12 }
  0x4a   : > { %4306 = vmatmul.msk.f32.gmra.mxu3 %vm593_vm0, %v586_v14  ;;  %v1067_v14 = vld [vmem:[%s7408_s4 + $0xb8] sm:$0xff] }
  0x4c   : > { %4283 = vmatmul.msk.f32.gmra.mxu0 %vm593_vm0, %v5015_v59 }
  0x4e   : > { %1143 = vperm.xlu2 %4619, %v1057_v0   ;;  %422 = vperm.xlu1 %4618, %v340_v1   ;;  %v1014_v0 = vld [vmem:[%s4837_s20 + $0x12] sm:$0xff]  ;;  %v1012_v1 = vld [vmem:[%s4837_s20 + $0x2] sm:$0xff] }
  0x4f   : > { %1138 = vperm.xlu0 %4617, %v1056_v3  }
  0x51   : > { %4299 = vmatmul.msk.f32.gmra.mxu2 %vm593_vm0, %v579_v13  ;;  %4291 = vmatmul.msk.f32.gmra.mxu1 %vm593_vm0, %v5105_v25  ;;  %v351_v13 = vld [vmem:[%s7407_s3 + $0xb8] sm:$0xff] }
  0x54   : > { %4416 = vmatmul.msk.f32.vlgmr.msrb.gmra.mxu0 %vm593_vm0, %v4867_v17  ;;  %v1060_v17 = vld [vmem:[%s7408_s4 + $0x80] sm:$0xff] }
  0x56   : > { %432 = vperm.xlu2 %4619, %v342_v8   ;;  %1148 = vperm.xlu1 %4618, %v1058_v9  }
  0x57   : > { %427 = vperm.xlu0 %4617, %v341_v10  }
  0x5c   : > { %4417 = vmatmul.msk.f32.gmra.mxu0 %vm593_vm0, %v4896_v26  ;;  %v587_v26 = vld [vmem:[%s4837_s20 + $0xf9] sm:$0xff] }
  0x5d   : > { %4307 = vmatmul.msk.f32.gmra.mxu3 %vm593_vm0, %v587_v26  ;;  %v5252_v26 = vld [vmem:[%s4837_s20 + $0x20] sm:$0xff] }
  0x5e   : > { %1158 = vperm.xlu2 %4619, %v1060_v17   ;;  %437 = vperm.xlu1 %4618, %v343_v18   ;;  %v1013_v17 = vld [vmem:[%s4837_s20 + $0xa] sm:$0xff] }
  0x5f   : > { %1153 = vperm.xlu0 %4617, %v1059_v19   ;;  %v5241_v18 = vld [vmem:[%s4837_s20 + $0x4a] sm:$0xff]  ;;  %v5244_v19 = vld [vmem:[%s4837_s20 + $0x5a] sm:$0xff] }
  0x64   : > { %4418 = vmatmul.msk.f32.gmra.mxu0 %vm593_vm0, %v4934_v37  ;;  %v4487_v37 = vld [vmem:[%s7405_s1 + $0xd8] sm:$0xff] }
  0x65   : > { %2589 = vmatpush.msra.mxu2 %v4487_v37 }
  0x66   : > { %447 = vperm.xlu2 %4619, %v345_v21   ;;  %1163 = vperm.xlu1 %4618, %v1061_v24   ;;  %v5248_v21 = vld [vmem:[%s4837_s20 + $0x28] sm:$0xff]  ;;  %v296_v24 = vld [vmem:[%s4837_s20] sm:$0xff] }
  0x67   : > { %442 = vperm.xlu0 %4617, %v344_v27  }
  0x68   : > { %v5119_v29 = vpop.permute.xlu2 %1088 }
  0x69   : > { %v5126_v31 = vmul.f32 %v5122_v30, %v5119_v29  ;;  %v5130_v32 = vmul.f32 %v5117_v28, %v5119_v29 }
  0x6b   : > { %7436 = vst [vmem:[#allocation2_spill] sm:$0xff] %v5126_v31 }
  0x6c   : > { %7437 = vst [vmem:[#allocation3_spill] sm:$0xff] %v5130_v32  ;;  %4419 = vmatmul.msk.f32.gmra.mxu0 %vm593_vm0, %v4969_v47  ;;  %v1064_v47 = vld [vmem:[%s7408_s4 + $0xa0] sm:$0xff] }
  0x6e   : > { %1173 = vperm.xlu2 %4619, %v1063_v33   ;;  %452 = vperm.xlu1 %4618, %v346_v36  }
  0x6f   : > { %1168 = vperm.xlu0 %4617, %v1062_v38  }
  0x70   : > { %v5155_v42 = vpop.permute.xlu2 %372 }
  0x71   : > { %v5159_v45 = vmul.f32 %v5153_v41, %v5155_v42 }
  0x73   : > { %7438 = vst [vmem:[#allocation4_spill] sm:$0xff] %v5159_v45 }
  0x74   : > { %4420 = vmatmul.msk.f32.gmra.mxu0 %vm593_vm0, %v4998_v55 }
  0x76   : > { %462 = vperm.xlu2 %4619, %v348_v46   ;;  %1178 = vperm.xlu1 %4618, %v1064_v47  }
  0x77   : > { %457 = vperm.xlu0 %4617, %v347_v48   ;;  %v1069_v48 = vld [vmem:[%s7408_s4 + $0xc8] sm:$0xff] }
  0x78   : > { %v5178_v51 = vpop.permute.xlu2 %1098 }
  0x79   : > { %v5182_v54 = vmul.f32 %v5117_v28, %v5178_v51  ;;  %v5186_v55 = vmul.f32 %v5176_v50, %v5178_v51 }
  0x7b   : > { %7439 = vst [vmem:[#allocation5_spill] sm:$0xff] %v5182_v54 }
  0x7c   : > { %7440 = vst [vmem:[#allocation6_spill] sm:$0xff] %v5186_v55  ;;  %4421 = vmatmul.msk.f32.gmra.mxu0 %vm593_vm0, %v5015_v59 }
  0x7e   : > { %1188 = vperm.xlu2 %4619, %v1066_v56   ;;  %467 = vperm.xlu1 %4618, %v349_v57   ;;  %v1068_v56 = vld [vmem:[%s7408_s4 + $0xc0] sm:$0xff] }
  0x7f   : > { %1183 = vperm.xlu0 %4617, %v1065_v58   ;;  %v5285_v57 = vld [vmem:[%s4837_s20 + $0x60] sm:$0xff]  ;;  %v5288_v58 = vld [vmem:[%s4837_s20 + $0x38] sm:$0xff] }
  0x80   : > { %v1084_v2 = vpop.permute.xlu1 %1083  ;;  %v5207_v3 = vpop.permute.xlu2 %387 }
  0x81   : > { %v5213_v59 = vmul.f32 %v5200_v60, %v1084_v2  ;;  %v5216_v6 = vmul.f32 %v5203_v63, %v1084_v2  ;;  %v1079_v7 = vpop.permute.xlu0 %1078  ;;  %v5225_v11 = vmul.f32 %v5210_v4, %v5207_v3  ;;  %v1237_v27 = vmul.f32 %v1084_v2, %v1013_v17 }
  0x82   : > { %v1236_v8 = vmul.f32 %v1079_v7, %v1012_v1  ;;  %v5218_v9 = vmul.f32 %v1079_v7, %v1014_v0  ;;  %v5221_v10 = vmul.f32 %v5122_v30, %v1079_v7  ;;  %v297_v1 = vld [vmem:[%s4837_s20 + $0x8] sm:$0xff]  ;;  %v1238_v2 = vmul.f32 %v5119_v29, %v1014_v0  ;;  %v5293_v7 = vld [vmem:[%s4837_s20 + $0x3a] sm:$0xff] }
  0x83   : > { %7441 = vst [vmem:[#allocation7_spill] sm:$0xff] %v5213_v59 }
  0x84   : > { %7442 = vst [vmem:[#allocation8_spill] sm:$0xff] %v5216_v6  ;;  %4344 = vmatmul.msk.f32.vlgmr.msrb.gmra.mxu2 %vm593_vm0, %v1236_v8  ;;  %4422 = vmatmul.msk.f32.gmra.mxu0 %vm593_vm0, %v4884_v22  ;;  %v1515_v8 = vld [vmem:[%s4837_s20 + $0x18] sm:$0xff] }
  0x85   : > { %7443 = vst [vmem:[#allocation9_spill] sm:$0xff] %v5218_v9  ;;  %v5564_v9 = vld [vmem:[%s4837_s20 + $0x70] sm:$0xff] }
  0x86   : > { %7444 = vst [vmem:[#allocation10_spill] sm:$0xff] %v5221_v10  ;;  %477 = vperm.xlu2 %4619, %v351_v13   ;;  %1193 = vperm.xlu1 %4618, %v1067_v14  }
  0x87   : > { %7445 = vst [vmem:[#allocation11_spill] sm:$0xff] %v5225_v11  ;;  %472 = vperm.xlu0 %4617, %v350_v15  }
  0x88   : > { %v5254_v22 = vpop.permute.xlu2 %1113  ;;  %v368_v33 = vpop.permute.xlu1 %367 }
  0x89   : > { %v5258_v36 = vmul.f32 %v5241_v18, %v5254_v22  ;;  %v5262_v37 = vmul.f32 %v5244_v19, %v5254_v22  ;;  %v363_v38 = vpop.permute.xlu0 %362  ;;  %v5265_v39 = vmul.f32 %v368_v33, %v5248_v21  ;;  %v1547_v0 = vmul.f32 %v1515_v8, %v368_v33 }
  0x8a   : > { %v520_v40 = vmul.f32 %v363_v38, %v296_v24  ;;  %v1546_v46 = vmul.f32 %v363_v38, %v298_v20  ;;  %v5268_v47 = vmul.f32 %v5252_v26, %v363_v38  ;;  %v521_v24 = vmul.f32 %v368_v33, %v297_v1  ;;  %v353_v33 = vld [vmem:[%s7407_s3 + $0xc8] sm:$0xff] }
  0x8b   : > { %7446 = vst [vmem:[#allocation12_spill] sm:$0xff] %v5258_v36 }
  0x8c   : > { %7447 = vst [vmem:[#allocation13_spill] sm:$0xff] %v5262_v37  ;;  %4308 = vmatmul.msk.f32.vlgmr.msrb.gmra.mxu1 %vm593_vm0, %v520_v40  ;;  %4345 = vmatmul.msk.f32.gmra.mxu2 %vm593_vm0, %v1237_v27  ;;  %v354_v40 = vld [vmem:[%s7407_s3 + $0xd0] sm:$0xff] }
  0x8d   : > { %7448 = vst [vmem:[#allocation14_spill] sm:$0xff] %v5265_v39  ;;  %4380 = vmatmul.msk.f32.vlgmr.msrb.gmra.mxu3 %vm593_vm0, %v1546_v46  ;;  %4423 = vmatmul.msk.f32.gmra.mxu0 %vm593_vm0, %v4925_v34  ;;  %v1070_v46 = vld [vmem:[%s7408_s4 + $0xd0] sm:$0xff] }
  0x8e   : > { %7449 = vst [vmem:[#allocation15_spill] sm:$0xff] %v5268_v47  ;;  %1203 = vperm.xlu2 %4619, %v1069_v48   ;;  %482 = vperm.xlu1 %4618, %v352_v49   ;;  %v5328_v48 = vld [vmem:[%s4837_s20 + $0x62] sm:$0xff]  ;;  %v5331_v49 = vld [vmem:[%s4837_s20 + $0x72] sm:$0xff] }
  0x8f   : > { %1198 = vperm.xlu0 %4617, %v1068_v56  }
  0x90   : > { %v5296_v13 = vpop.permute.xlu2 %402  ;;  %v378_v14 = vpop.permute.xlu1 %377 }
  0x91   : > { %v5300_v15 = vmul.f32 %v5285_v57, %v5296_v13  ;;  %v1094_v34 = vpop.permute.xlu0 %1093  ;;  %v5302_v17 = vpop.f32.mrf.mxu0  ;;  %v5305_v27 = vmul.f32 %v5288_v58, %v378_v14 }
  0x92   : > { %v5308_v29 = vmul.f32 %v5203_v63, %v1094_v34  ;;  %v5311_v38 = vmul.f32 %v1094_v34, %v5293_v7 }
  0x93   : > { %7450 = vst [vmem:[#allocation16_spill] sm:$0xff] %v5300_v15 }
  0x94   : > { %7451 = vst [vmem:[#allocation17_spill] sm:$0xff] %v5305_v27  ;;  %4309 = vmatmul.msk.f32.gmra.mxu1 %vm593_vm0, %v521_v24  ;;  %4346 = vmatmul.msk.f32.gmra.mxu2 %vm593_vm0, %v1238_v2  ;;  %v5446_v27 = vld [vmem:[%s4837_s20 + $0x58] sm:$0xff] }
  0x95   : > { %7452 = vst [vmem:[#allocation18_spill] sm:$0xff] %v5308_v29  ;;  %4381 = vmatmul.msk.f32.gmra.mxu3 %vm593_vm0, %v1547_v0  ;;  %4424 = vmatmul.msk.f32.gmra.mxu0 %vm593_vm0, %v4957_v43 }
  0x96   : > { %7453 = vst [vmem:[#allocation19_spill] sm:$0xff] %v5311_v38  ;;  %492 = vperm.xlu2 %4619, %v354_v40   ;;  %1208 = vperm.xlu1 %4618, %v1070_v46   ;;  %v522_v40 = vmul.f32 %v5155_v42, %v298_v20  ;;  %v5347_v46 = vld [vmem:[%s4837_s20 + $0x40] sm:$0xff] }
  0x97   : > { %487 = vperm.xlu0 %4617, %v353_v33   ;;  %v1239_v33 = vmul.f32 %v5200_v60, %v1094_v34  ;;  %v1072_v20 = vld [vmem:[%s7408_s4 + $0xe0] sm:$0xff]  ;;  %v355_v60 = vld [vmem:[%s7407_s3 + $0xd8] sm:$0xff] }
  0x98   : > { %v5333_v56 = vpop.permute.xlu2 %1128  ;;  %v1104_v1 = vpop.permute.xlu1 %1103  ;;  %v5376_v34 = vld [vmem:[%s4837_s20 + $0x78] sm:$0xff] }
  0x99   : > { %v5337_v2 = vmul.f32 %v5328_v48, %v5333_v56  ;;  %v5341_v24 = vmul.f32 %v5331_v49, %v5333_v56  ;;  %v383_v0 = vpop.permute.xlu0 %382  ;;  %v5343_v43 = vpop.f32.mrf.mxu0  ;;  %v5351_v15 = vmul.f32 %v1104_v1, %v5293_v7  ;;  %v5354_v36 = vmul.f32 %v5241_v18, %v1104_v1 }
  0x9a   : > { %v5359_v11 = vmul.f32 %v383_v0, %v5347_v46 }
  0x9b   : > { %7454 = vst [vmem:[#allocation20_spill] sm:$0xff] %v5337_v2  ;;  %v1548_v2 = vmul.f32 %v5252_v26, %v5155_v42  ;;  %v1071_v42 = vld [vmem:[%s7408_s4 + $0xd8] sm:$0xff] }
  0x9c   : > { %7455 = vst [vmem:[#allocation21_spill] sm:$0xff] %v5341_v24  ;;  %4310 = vmatmul.msk.f32.gmra.mxu1 %vm593_vm0, %v522_v40  ;;  %4347 = vmatmul.msk.f32.gmra.mxu2 %vm593_vm0, %v1239_v33  ;;  %v5383_v33 = vld [vmem:[%s4837_s20 + $0x50] sm:$0xff] }
  0x9d   : > { %7456 = vst [vmem:[#allocation22_spill] sm:$0xff] %v5351_v15  ;;  %4382 = vmatmul.msk.f32.gmra.mxu3 %vm593_vm0, %v1548_v2  ;;  %4425 = vmatmul.msk.f32.gmra.mxu0 %vm593_vm0, %v4989_v52  ;;  %v1240_v52 = vmul.f32 %v5122_v30, %v5178_v51  ;;  %v357_v30 = vld [vmem:[%s7407_s3 + $0xe8] sm:$0xff]  ;;  %v1554_v38 = vmul.f32 %v5383_v33, %v5296_v13 }
  0x9e   : > { %7457 = vst [vmem:[#allocation23_spill] sm:$0xff] %v5354_v36  ;;  %1218 = vperm.xlu2 %4619, %v1072_v20   ;;  %497 = vperm.xlu1 %4618, %v355_v60   ;;  %v523_v20 = vmul.f32 %v1515_v8, %v378_v14  ;;  %v5394_v60 = vld [vmem:[%s4837_s20 + $0x52] sm:$0xff]  ;;  %v1073_v51 = vld [vmem:[%s7408_s4 + $0xe8] sm:$0xff]  ;;  %v356_v8 = vld [vmem:[%s7407_s3 + $0xe0] sm:$0xff] }
  0x9f   : > { %7458 = vst [vmem:[#allocation24_spill] sm:$0xff] %v5359_v11  ;;  %1213 = vperm.xlu0 %4617, %v1071_v42  }
  0xa0   : > { %v5378_v15 = vpop.permute.xlu2 %417  ;;  %v5380_v40 = vpop.permute.xlu1 %392 }
  0xa1   : > { %v5387_v54 = vmul.f32 %v5376_v34, %v5378_v15  ;;  %v1109_v24 = vpop.permute.xlu0 %1108  ;;  %v5389_v2 = vpop.f32.mrf.mxu0  ;;  %v5398_v42 = vmul.f32 %v5383_v33, %v5380_v40 }
  0xa2   : > { %v5401_v11 = vmul.f32 %v5176_v50, %v1109_v24  ;;  %v5405_v29 = vmul.f32 %v1109_v24, %v5394_v60 }
  0xa3   : > { %7459 = vst [vmem:[#allocation25_spill] sm:$0xff] %v5387_v54  ;;  %v1549_v54 = vmul.f32 %v378_v14, %v5248_v21  ;;  %v5422_v14 = vld [vmem:[%s4837_s20 + $0x7a] sm:$0xff] }
  0xa4   : > { %7460 = vst [vmem:[#allocation26_spill] sm:$0xff] %v5398_v42  ;;  %4311 = vmatmul.msk.f32.gmra.mxu1 %vm593_vm0, %v523_v20  ;;  %4348 = vmatmul.msk.f32.gmra.mxu2 %vm593_vm0, %v1240_v52 }
  0xa5   : > { %7461 = vst [vmem:[#allocation27_spill] sm:$0xff] %v5401_v11  ;;  %4383 = vmatmul.msk.f32.gmra.mxu3 %vm593_vm0, %v1549_v54  ;;  %4426 = vmatmul.msk.f32.gmra.mxu0 %vm593_vm0, %v5021_v61  ;;  %v5425_v11 = vld [vmem:[%s4837_s20 + $0x8a] sm:$0xff] }
  0xa6   : > { %7462 = vst [vmem:[#allocation28_spill] sm:$0xff] %v5405_v29  ;;  %507 = vperm.xlu2 %4619, %v357_v30   ;;  %1223 = vperm.xlu1 %4618, %v1073_v51   ;;  %v1241_v51 = vmul.f32 %v5203_v63, %v1104_v1  ;;  %v1075_v63 = vld [vmem:[%s7408_s4 + $0xf8] sm:$0xff]  ;;  %v1074_v1 = vld [vmem:[%s7408_s4 + $0xf0] sm:$0xff]  ;;  %v5614_v29 = vld [vmem:[%s4837_s20 + $0x82] sm:$0xff] }
  0xa7   : > { %502 = vperm.xlu0 %4617, %v356_v8   ;;  %v524_v8 = vmul.f32 %v5252_v26, %v383_v0  ;;  %v358_v26 = vld [vmem:[%s7407_s3 + $0xf0] sm:$0xff] }
  0xa8   : > { %v5427_v20 = vpop.permute.xlu2 %1143  ;;  %v5429_v52 = vpop.permute.xlu1 %1118 }
  0xa9   : > { %v5433_v42 = vmul.f32 %v5422_v14, %v5427_v20  ;;  %v5437_v54 = vmul.f32 %v5425_v11, %v5427_v20  ;;  %v5439_v61 = vpop.permute.xlu0 %397  ;;  %v5441_v30 = vpop.f32.mrf.mxu0  ;;  %v5450_v31 = vmul.f32 %v5429_v52, %v5394_v60 }
  0xaa   : > { %v5459_v45 = vmul.f32 %v5439_v61, %v5446_v27 }
  0xab   : > { %7463 = vst [vmem:[#allocation29_spill] sm:$0xff] %v5433_v42  ;;  %v5454_v42 = vmul.f32 %v5328_v48, %v5429_v52 }
  0xac   : > { %7464 = vst [vmem:[#allocation30_spill] sm:$0xff] %v5437_v54  ;;  %v1550_v54 = vmul.f32 %v5153_v41, %v383_v0  ;;  %4312 = vmatmul.msk.f32.gmra.mxu1 %vm593_vm0, %v524_v8  ;;  %4349 = vmatmul.msk.f32.gmra.mxu2 %vm593_vm0, %v1241_v51  ;;  %v4486_v0 = vld [vmem:[%s7405_s1 + $0xd0] sm:$0xff] }
  0xad   : > { %7465 = vst [vmem:[#allocation31_spill] sm:$0xff] %v5450_v31  ;;  %4427 = vmatmul.msk.f32.gmra.mxu0 %vm593_vm0, %v5050_v5  ;;  %v4522_v8 = vld [vmem:[%s7405_s1 + $0xf0] sm:$0xff]  ;;  %2590 = vmatpush.msra.mxu2 %v4486_v0  ;;  %v5492_v5 = vld [vmem:[%s4837_s20 + $0x68] sm:$0xff] }
  0xae   : > { %7466 = vst [vmem:[#allocation32_spill] sm:$0xff] %v5454_v42  ;;  %4384 = vmatmul.msk.f32.gmra.mxu3 %vm593_vm0, %v1550_v54  ;;  %v4450_v51 = vld [vmem:[%s7405_s1 + $0xb0] sm:$0xff]  ;;  %1233 = vperm.xlu2 %4619, %v1075_v63  }
  0xaf   : > { %7467 = vst [vmem:[#allocation33_spill] sm:$0xff] %v5459_v45  ;;  %512 = vperm.xlu1 %4618, %v358_v26   ;;  %v5485_v31 = vld [vmem:[%s4837_s20 + $0x90] sm:$0xff]  ;;  %1228 = vperm.xlu0 %4617, %v1074_v1   ;;  %v525_v26 = vmul.f32 %v5207_v3, %v5248_v21  ;;  %v1242_v1 = vmul.f32 %v5117_v28, %v1109_v24  ;;  %v5522_v21 = vpop.f32.mrf.mxu2  ;;  %v359_v28 = vld [vmem:[%s7407_s3 + $0xf8] sm:$0xff] }
  0xb0   : > { %v5487_v45 = vpop.permute.xlu2 %432  ;;  %v5489_v54 = vpop.permute.xlu1 %407  ;;  %2868 = vmatpush.msra.mxu3 %v4522_v8  ;;  %2280 = vmatpush.msra.mxu1 %v4450_v51  ;;  %v5506_v0 = vld [vmem:[%s4837_s20 + $0x6a] sm:$0xff]  ;;  %7472 = vst [vmem:[#allocation38_spill] sm:$0xff] %v5522_v21  ;;  %v1552_v21 = vmul.f32 %v5380_v40, %v5347_v46 }
  0xb1   : > { %v5496_v42 = vmul.f32 %v5485_v31, %v5487_v45  ;;  %v5498_v59 = vpop.permute.xlu0 %1123  ;;  %v5500_v63 = vpop.f32.mrf.mxu0  ;;  %v5510_v8 = vmul.f32 %v5492_v5, %v5489_v54  ;;  %v4558_v24 = vld [vmem:[%s7405_s1 + $0x110] sm:$0xff] }
  0xb2   : > { %v5514_v51 = vmul.f32 %v5244_v19, %v5498_v59  ;;  %v5520_v37 = vmul.f32 %v5498_v59, %v5506_v0  ;;  %3178 = vmatpush.msra.mxu0 %v4558_v24  ;;  %v526_v24 = vmul.f32 %v5153_v41, %v5380_v40 }
  0xb3   : > { %7468 = vst [vmem:[#allocation34_spill] sm:$0xff] %v5496_v42  ;;  %v1551_v42 = vmul.f32 %v5288_v58, %v5207_v3  ;;  %v5532_v3 = vpop.f32.mrf.mxu1 }
  0xb4   : > { %7469 = vst [vmem:[#allocation35_spill] sm:$0xff] %v5510_v8  ;;  %4313 = vmatmul.msk.f32.gmra.mxu1 %vm593_vm0, %v525_v26  ;;  %4350 = vmatmul.msk.f32.gmra.mxu2 %vm593_vm0, %v1242_v1  ;;  %v5541_v26 = vld [vmem:[%s4837_s20 + $0xa2] sm:$0xff] }
  0xb5   : > { %7470 = vst [vmem:[#allocation36_spill] sm:$0xff] %v5514_v51  ;;  %4428 = vmatmul.msk.f32.gmra.mxu0 %vm593_vm0, %v5073_v12  ;;  %v5538_v51 = vld [vmem:[%s4837_s20 + $0x92] sm:$0xff] }
  0xb6   : > { %7471 = vst [vmem:[#allocation37_spill] sm:$0xff] %v5520_v37  ;;  %4385 = vmatmul.msk.f32.gmra.mxu3 %vm593_vm0, %v1551_v42 }
  0xb7   : > { %7473 = vst [vmem:[#allocation39_spill] sm:$0xff] %v5532_v3  ;;  %517 = vperm.xlu0 %4617, %v359_v28   ;;  %v1243_v28 = vmul.f32 %v5254_v22, %v5293_v7  ;;  %v5585_v41 = vpop.f32.mrf.mxu2  ;;  %v5587_v7 = vpop.f32.mrf.mxu3 }
  0xb8   : > { %v5543_v1 = vpop.permute.xlu2 %1158  ;;  %v5545_v8 = vpop.permute.xlu1 %1133  ;;  %7479 = vst [vmem:[#allocation45_spill] sm:$0xff] %v5585_v41  ;;  %v527_v41 = vmul.f32 %v5288_v58, %v5439_v61  ;;  %v5639_v58 = vld [vmem:[%s4837_s20 + $0xba] sm:$0xff] }
  0xb9   : > { %v5549_v42 = vmul.f32 %v5538_v51, %v5543_v1  ;;  %v5553_v12 = vmul.f32 %v5541_v26, %v5543_v1  ;;  %v5555_v37 = vpop.permute.xlu0 %412  ;;  %v5557_v39 = vpop.f32.mrf.mxu0  ;;  %7480 = vst [vmem:[#allocation46_spill] sm:$0xff] %v5587_v7  ;;  %v1244_v7 = vmul.f32 %v5176_v50, %v5429_v52  ;;  %v5636_v50 = vld [vmem:[%s4837_s20 + $0xaa] sm:$0xff] }
  0xba   : > { %v5578_v22 = vmul.f32 %v5555_v37, %v5564_v9 }
  0xbb   : > { %7474 = vst [vmem:[#allocation40_spill] sm:$0xff] %v5549_v42  ;;  %v5568_v42 = vmul.f32 %v5545_v8, %v5506_v0  ;;  %v5592_v40 = vpop.f32.mrf.mxu1 }
  0xbc   : > { %7475 = vst [vmem:[#allocation41_spill] sm:$0xff] %v5553_v12  ;;  %v5572_v12 = vmul.f32 %v5422_v14, %v5545_v8  ;;  %4314 = vmatmul.msk.f32.gmra.mxu1 %vm593_vm0, %v526_v24  ;;  %4351 = vmatmul.msk.f32.gmra.mxu2 %vm593_vm0, %v1243_v28  ;;  %v5599_v24 = vld [vmem:[%s4837_s20 + $0x80] sm:$0xff] }
  0xbd   : > { %7476 = vst [vmem:[#allocation42_spill] sm:$0xff] %v5568_v42  ;;  %4429 = vmatmul.msk.f32.gmra.mxu0 %vm593_vm0, %v5105_v25  ;;  %v5590_v42 = vld [vmem:[%s4837_s20 + $0xa8] sm:$0xff] }
  0xbe   : > { %7477 = vst [vmem:[#allocation43_spill] sm:$0xff] %v5572_v12  ;;  %4386 = vmatmul.msk.f32.gmra.mxu3 %vm593_vm0, %v1552_v21 }
  0xbf   : > { %7478 = vst [vmem:[#allocation44_spill] sm:$0xff] %v5578_v22  ;;  %v5641_v52 = vpop.f32.mrf.mxu2 }
  0xc0   : > { %7481 = vst [vmem:[#allocation47_spill] sm:$0xff] %v5592_v40  ;;  %v5594_v12 = vpop.permute.xlu2 %447  ;;  %v5596_v22 = vpop.permute.xlu1 %422  ;;  %v1556_v40 = vmul.f32 %v5285_v57, %v5555_v37 }
  0xc1   : > { %v5603_v21 = vmul.f32 %v5590_v42, %v5594_v12  ;;  %v5605_v25 = vpop.permute.xlu0 %1138  ;;  %v5607_v28 = vpop.f32.mrf.mxu0  ;;  %v5618_v47 = vmul.f32 %v5599_v24, %v5596_v22  ;;  %7486 = vst [vmem:[#allocation52_spill] sm:$0xff] %v5641_v52  ;;  %v5666_v52 = vld [vmem:[%s4837_s20 + $0x88] sm:$0xff] }
  0xc2   : > { %v5622_v36 = vmul.f32 %v5331_v49, %v5605_v25  ;;  %v5628_v55 = vmul.f32 %v5605_v25, %v5614_v29 }
  0xc3   : > { %7482 = vst [vmem:[#allocation48_spill] sm:$0xff] %v5603_v21  ;;  %v1553_v21 = vmul.f32 %v5210_v4, %v5439_v61  ;;  %v5643_v61 = vpop.f32.mrf.mxu3  ;;  %v5682_v32 = vpop.f32.mrf.mxu1 }
  0xc4   : > { %7483 = vst [vmem:[#allocation49_spill] sm:$0xff] %v5618_v47  ;;  %4315 = vmatmul.msk.f32.gmra.mxu1 %vm593_vm0, %v527_v41  ;;  %4352 = vmatmul.msk.f32.gmra.mxu2 %vm593_vm0, %v1244_v7 }
  0xc5   : > { %7484 = vst [vmem:[#allocation50_spill] sm:$0xff] %v5622_v36  ;;  %4430 = vmatmul.msk.f32.gmra.mxu0 %vm593_vm0, %v4862_v16 }
  0xc6   : > { %7485 = vst [vmem:[#allocation51_spill] sm:$0xff] %v5628_v55  ;;  %4387 = vmatmul.msk.f32.gmra.mxu3 %vm593_vm0, %v1553_v21  ;;  %v1245_v55 = vmul.f32 %v5241_v18, %v5498_v59  ;;  %v5690_v59 = vld [vmem:[%s4837_s20 + $0xc0] sm:$0xff] }
  0xc7   : > { %7487 = vst [vmem:[#allocation53_spill] sm:$0xff] %v5643_v61  ;;  %v528_v61 = vmul.f32 %v5296_v13, %v5347_v46 }
  0xc8   : > { %v5645_v36 = vpop.permute.xlu2 %1173  ;;  %v5647_v47 = vpop.permute.xlu1 %1148  ;;  %7494 = vst [vmem:[#allocation60_spill] sm:$0xff] %v5682_v32  ;;  %v1555_v32 = vmul.f32 %v5489_v54, %v5446_v27 }
  0xc9   : > { %v5651_v41 = vmul.f32 %v5636_v50, %v5645_v36  ;;  %v5655_v16 = vmul.f32 %v5639_v58, %v5645_v36  ;;  %v5657_v7 = vpop.permute.xlu0 %427  ;;  %v5659_v21 = vpop.f32.mrf.mxu0 }
  0xca   : > { %7490 = vst [vmem:[#allocation56_spill] sm:$0xff] %v5659_v21  ;;  %v5680_v46 = vmul.f32 %v5657_v7, %v5666_v52 }
  0xcb   : > { %7488 = vst [vmem:[#allocation54_spill] sm:$0xff] %v5651_v41  ;;  %v5670_v41 = vmul.f32 %v5647_v47, %v5614_v29 }
  0xcc   : > { %7489 = vst [vmem:[#allocation55_spill] sm:$0xff] %v5655_v16  ;;  %v5674_v16 = vmul.f32 %v5538_v51, %v5647_v47  ;;  %4316 = vmatmul.msk.f32.gmra.mxu1 %vm593_vm0, %v528_v61  ;;  %4353 = vmatmul.msk.f32.gmra.mxu2 %vm593_vm0, %v1245_v55 }
  0xcd   : > { %7491 = vst [vmem:[#allocation57_spill] sm:$0xff] %v5670_v41  ;;  %4431 = vmatmul.msk.f32.gmra.mxu0 %vm593_vm0, %v4887_v23  ;;  %v5697_v41 = vld [vmem:[%s4837_s20 + $0x98] sm:$0xff]  ;;  %v1246_v23 = vmul.f32 %v5333_v56, %v5394_v60  ;;  %v5728_v56 = vpop.f32.mrf.mxu2  ;;  %v5737_v60 = vpop.f32.mrf.mxu1 }
  0xce   : > { %7492 = vst [vmem:[#allocation58_spill] sm:$0xff] %v5674_v16  ;;  %4388 = vmatmul.msk.f32.gmra.mxu3 %vm593_vm0, %v1554_v38  ;;  %v529_v38 = vmul.f32 %v5210_v4, %v5489_v54  ;;  %v5712_v16 = vld [vmem:[%s4837_s20 + $0x9a] sm:$0xff]  ;;  %v5730_v4 = vpop.f32.mrf.mxu3  ;;  %v5740_v54 = vld [vmem:[%s4837_s20 + $0xc2] sm:$0xff] }
  0xcf   : > { %7493 = vst [vmem:[#allocation59_spill] sm:$0xff] %v5680_v46 }
  0xd0   : > { %v5692_v18 = vpop.permute.xlu2 %462  ;;  %v5694_v13 = vpop.permute.xlu1 %437  ;;  %7499 = vst [vmem:[#allocation65_spill] sm:$0xff] %v5728_v56  ;;  %v530_v56 = vmul.f32 %v5383_v33, %v5555_v37 }
  0xd1   : > { %v5701_v46 = vmul.f32 %v5690_v59, %v5692_v18  ;;  %v5703_v61 = vpop.permute.xlu0 %1153  ;;  %v5705_v55 = vpop.f32.mrf.mxu0  ;;  %v5716_v6 = vmul.f32 %v5697_v41, %v5694_v13  ;;  %7500 = vst [vmem:[#allocation66_spill] sm:$0xff] %v5730_v4  ;;  %v1247_v4 = vmul.f32 %v5244_v19, %v5545_v8 }
  0xd2   : > { %v5726_v10 = vmul.f32 %v5703_v61, %v5712_v16  ;;  %7501 = vst [vmem:[#allocation67_spill] sm:$0xff] %v5737_v60  ;;  %v5766_v60 = vld [vmem:[%s4837_s20 + $0xa0] sm:$0xff] }
  0xd3   : > { %7495 = vst [vmem:[#allocation61_spill] sm:$0xff] %v5701_v46  ;;  %v5720_v46 = vmul.f32 %v5425_v11, %v5703_v61 }
  0xd4   : > { %7496 = vst [vmem:[#allocation62_spill] sm:$0xff] %v5716_v6  ;;  %4317 = vmatmul.msk.f32.gmra.mxu1 %vm593_vm0, %v529_v38  ;;  %4354 = vmatmul.msk.f32.gmra.mxu2 %vm593_vm0, %v1246_v23 }
  0xd5   : > { %7497 = vst [vmem:[#allocation63_spill] sm:$0xff] %v5720_v46  ;;  %4432 = vmatmul.msk.f32.gmra.mxu0 %vm593_vm0, %v4930_v35  ;;  %v5743_v46 = vld [vmem:[%s4837_s20 + $0xd2] sm:$0xff]  ;;  %v5787_v33 = vpop.f32.mrf.mxu2  ;;  %v5794_v37 = vpop.f32.mrf.mxu1 }
  0xd6   : > { %7498 = vst [vmem:[#allocation64_spill] sm:$0xff] %v5726_v10  ;;  %4389 = vmatmul.msk.f32.gmra.mxu3 %vm593_vm0, %v1555_v32  ;;  %v5789_v8 = vpop.f32.mrf.mxu3 }
  0xd7   : > { %7502 = vst [vmem:[#allocation68_spill] sm:$0xff] %v5740_v54 }
  0xd8   : > { %v5745_v6 = vpop.permute.xlu2 %1188  ;;  %v5747_v10 = vpop.permute.xlu1 %1163  ;;  %7508 = vst [vmem:[#allocation74_spill] sm:$0xff] %v5787_v33  ;;  %v1248_v33 = vmul.f32 %v5328_v48, %v5605_v25  ;;  %v5841_v48 = vld [vmem:[%s4837_s20 + $0xea] sm:$0xff] }
  0xd9   : > { %v5751_v38 = vmul.f32 %v5740_v54, %v5745_v6  ;;  %v5755_v32 = vmul.f32 %v5743_v46, %v5745_v6  ;;  %v5757_v35 = vpop.permute.xlu0 %442  ;;  %v5759_v23 = vpop.f32.mrf.mxu0  ;;  %7509 = vst [vmem:[#allocation75_spill] sm:$0xff] %v5789_v8  ;;  %v531_v8 = vmul.f32 %v5378_v15, %v5446_v27  ;;  %v5838_v27 = vld [vmem:[%s4837_s20 + $0xda] sm:$0xff] }
  0xda   : > { %v5780_v19 = vmul.f32 %v5757_v35, %v5766_v60  ;;  %7511 = vst [vmem:[#allocation77_spill] sm:$0xff] %v5794_v37  ;;  %v5816_v37 = vld [vmem:[%s4837_s20 + $0xb2] sm:$0xff] }
  0xdb   : > { %7503 = vst [vmem:[#allocation69_spill] sm:$0xff] %v5751_v38  ;;  %v5770_v38 = vmul.f32 %v5747_v10, %v5712_v16 }
  0xdc   : > { %7504 = vst [vmem:[#allocation70_spill] sm:$0xff] %v5755_v32  ;;  %v5774_v32 = vmul.f32 %v5636_v50, %v5747_v10  ;;  %4318 = vmatmul.msk.f32.gmra.mxu1 %vm593_vm0, %v530_v56  ;;  %4355 = vmatmul.msk.f32.gmra.mxu2 %vm593_vm0, %v1247_v4  ;;  %v5801_v56 = vld [vmem:[%s4837_s20 + $0xb0] sm:$0xff] }
  0xdd   : > { %7505 = vst [vmem:[#allocation71_spill] sm:$0xff] %v5770_v38  ;;  %4433 = vmatmul.msk.f32.gmra.mxu0 %vm593_vm0, %v4960_v44  ;;  %v5792_v38 = vld [vmem:[%s4837_s20 + $0xd8] sm:$0xff]  ;;  %v5843_v25 = vpop.f32.mrf.mxu2 }
  0xde   : > { %7506 = vst [vmem:[#allocation72_spill] sm:$0xff] %v5774_v32  ;;  %4390 = vmatmul.msk.f32.gmra.mxu3 %vm593_vm0, %v1556_v40 }
  0xdf   : > { %7507 = vst [vmem:[#allocation73_spill] sm:$0xff] %v5780_v19 }
  0xe0   : > { %7510 = vst [vmem:[#allocation76_spill] sm:$0xff] %v5792_v38  ;;  %v5796_v32 = vpop.permute.xlu2 %477  ;;  %v5798_v19 = vpop.permute.xlu1 %452 }
  0xe1   : > { %v5805_v40 = vmul.f32 %v5792_v38, %v5796_v32  ;;  %v5807_v44 = vpop.permute.xlu0 %1168  ;;  %v5809_v4 = vpop.f32.mrf.mxu0  ;;  %v5820_v3 = vmul.f32 %v5801_v56, %v5798_v19  ;;  %7516 = vst [vmem:[#allocation82_spill] sm:$0xff] %v5838_v27 }
  0xe2   : > { %v5824_v38 = vmul.f32 %v5541_v26, %v5807_v44  ;;  %v5830_v21 = vmul.f32 %v5807_v44, %v5816_v37  ;;  %7517 = vst [vmem:[#allocation83_spill] sm:$0xff] %v5843_v25  ;;  %v5868_v25 = vld [vmem:[%s4837_s20 + $0xb8] sm:$0xff] }
  0xe3   : > { %7512 = vst [vmem:[#allocation78_spill] sm:$0xff] %v5805_v40  ;;  %v1557_v40 = vmul.f32 %v5492_v5, %v5378_v15  ;;  %v5845_v15 = vpop.f32.mrf.mxu3 }
  0xe4   : > { %7513 = vst [vmem:[#allocation79_spill] sm:$0xff] %v5820_v3  ;;  %4319 = vmatmul.msk.f32.gmra.mxu1 %vm593_vm0, %v531_v8  ;;  %4356 = vmatmul.msk.f32.gmra.mxu2 %vm593_vm0, %v1248_v33 }
  0xe5   : > { %7514 = vst [vmem:[#allocation80_spill] sm:$0xff] %v5824_v38  ;;  %4434 = vmatmul.msk.f32.gmra.mxu0 %vm593_vm0, %v4992_v53 }
  0xe6   : > { %7515 = vst [vmem:[#allocation81_spill] sm:$0xff] %v5830_v21  ;;  %4391 = vmatmul.msk.f32.gmra.mxu3 %vm593_vm0, %v1557_v40  ;;  %v532_v21 = vmul.f32 %v5285_v57, %v5596_v22  ;;  %v4485_v57 = vld [vmem:[%s7405_s1 + $0xc8] sm:$0xff] }
  0xe7   : > { %7518 = vst [vmem:[#allocation84_spill] sm:$0xff] %v5845_v15  ;;  %v1249_v15 = vmul.f32 %v5427_v20, %v5506_v0  ;;  %v5884_v0 = vpop.f32.mrf.mxu1  ;;  %2591 = vmatpush.msra.mxu2 %v4485_v57  ;;  %v5923_v57 = vld [vmem:[%s4837_s20 + $0xca] sm:$0xff] }
  0xe8   : > { %v5847_v38 = vpop.permute.xlu2 %1203  ;;  %v5849_v3 = vpop.permute.xlu1 %1178  ;;  %7525 = vst [vmem:[#allocation91_spill] sm:$0xff] %v5884_v0 }
  0xe9   : > { %7519 = vst [vmem:[#allocation85_spill] sm:$0xff] %v5847_v38  ;;  %v5853_v33 = vmul.f32 %v5838_v27, %v5847_v38  ;;  %v5857_v8 = vmul.f32 %v5841_v48, %v5847_v38  ;;  %v5859_v53 = vpop.permute.xlu0 %457  ;;  %v5861_v40 = vpop.f32.mrf.mxu0  ;;  %v1558_v38 = vmul.f32 %v5596_v22, %v5564_v9  ;;  %v4521_v22 = vld [vmem:[%s7405_s1 + $0xe8] sm:$0xff] }
  0xea   : > { %v5882_v20 = vmul.f32 %v5859_v53, %v5868_v25  ;;  %2869 = vmatpush.msra.mxu3 %v4521_v22 }
  0xeb   : > { %7520 = vst [vmem:[#allocation86_spill] sm:$0xff] %v5853_v33  ;;  %v5872_v33 = vmul.f32 %v5849_v3, %v5816_v37 }
  0xec   : > { %7521 = vst [vmem:[#allocation87_spill] sm:$0xff] %v5857_v8  ;;  %v5876_v8 = vmul.f32 %v5740_v54, %v5849_v3  ;;  %4320 = vmatmul.msk.f32.gmra.mxu1 %vm593_vm0, %v532_v21  ;;  %4357 = vmatmul.msk.f32.gmra.mxu2 %vm593_vm0, %v1249_v15  ;;  %v5908_v15 = vld [vmem:[%s4837_s20 + $0xc8] sm:$0xff]  ;;  %v1250_v54 = vmul.f32 %v5331_v49, %v5647_v47 }
  0xed   : > { %7522 = vst [vmem:[#allocation88_spill] sm:$0xff] %v5872_v33  ;;  %4435 = vmatmul.msk.f32.gmra.mxu0 %vm593_vm0, %v5024_v62  ;;  %v4449_v33 = vld [vmem:[%s7405_s1 + $0xa8] sm:$0xff]  ;;  %v1559_v47 = vmul.f32 %v5376_v34, %v5657_v7 }
  0xee   : > { %7523 = vst [vmem:[#allocation89_spill] sm:$0xff] %v5876_v8  ;;  %4392 = vmatmul.msk.f32.gmra.mxu3 %vm593_vm0, %v1558_v38  ;;  %2281 = vmatpush.msra.mxu1 %v4449_v33  ;;  %v533_v33 = vmul.f32 %v5492_v5, %v5657_v7  ;;  %v5942_v5 = vpop.f32.mrf.mxu2  ;;  %v4557_v7 = vld [vmem:[%s7405_s1 + $0x108] sm:$0xff] }
  0xef   : > { %7524 = vst [vmem:[#allocation90_spill] sm:$0xff] %v5882_v20  ;;  %v5901_v20 = vld [vmem:[%s4837_s20 + $0xf0] sm:$0xff]  ;;  %3179 = vmatpush.msra.mxu0 %v4557_v7 }
  0xf0   : > { %7526 = vst [vmem:[#allocation92_spill] sm:$0xff] %v5901_v20  ;;  %v5903_v21 = vpop.permute.xlu2 %492  ;;  %v5905_v38 = vpop.permute.xlu1 %467  ;;  %v5973_v7 = vld [vmem:[%s4837_s20 + $0xd0] sm:$0xff] }
  0xf1   : > { %7527 = vst [vmem:[#allocation93_spill] sm:$0xff] %v5903_v21  ;;  %v5912_v62 = vmul.f32 %v5901_v20, %v5903_v21  ;;  %v5914_v8 = vpop.permute.xlu0 %1183  ;;  %v5916_v0 = vpop.f32.mrf.mxu0  ;;  %v5927_v22 = vmul.f32 %v5908_v15, %v5905_v38  ;;  %v1844_v20 = vld [vmem:[%s4837_s20 + $0xb1] sm:$0xff] }
  0xf2   : > { %7528 = vst [vmem:[#allocation94_spill] sm:$0xff] %v5908_v15  ;;  %v5934_v21 = vpop.f32.mrf.mxu3  ;;  %v5940_v49 = vmul.f32 %v5914_v8, %v5923_v57  ;;  %v1560_v15 = vmul.f32 %v5599_v24, %v5487_v45 }
  0xf3   : > { %7529 = vst [vmem:[#allocation95_spill] sm:$0xff] %v5912_v62  ;;  %v5931_v62 = vmul.f32 %v5639_v58, %v5914_v8 }
  0xf4   : > { %7530 = vst [vmem:[#allocation96_spill] sm:$0xff] %v5927_v22  ;;  %4321 = vmatmul.msk.f32.gmra.mxu1 %vm593_vm0, %v533_v33  ;;  %4358 = vmatmul.msk.f32.gmra.mxu2 %vm593_vm0, %v1250_v54  ;;  %v5954_v22 = vld [vmem:[%s4837_s20 + $0xf2] sm:$0xff] }
  0xf5   : > { %7531 = vst [vmem:[#allocation97_spill] sm:$0xff] %v5931_v62  ;;  %4436 = vmatmul.msk.f32.gmra.mxu0 %vm593_vm0, %v1844_v20  ;;  %v5948_v62 = vpop.f32.mrf.mxu1 }
  0xf6   : > { %7532 = vst [vmem:[#allocation98_spill] sm:$0xff] %v5934_v21  ;;  %4393 = vmatmul.msk.f32.gmra.mxu3 %vm593_vm0, %v1559_v47  ;;  %v534_v47 = vmul.f32 %v5487_v45, %v5564_v9 }
  0xf7   : > { %7533 = vst [vmem:[#allocation99_spill] sm:$0xff] %v5940_v49 }
  0xf8   : > { %7534 = vst [vmem:[#allocation100_spill] sm:$0xff] %v5942_v5  ;;  %v5956_v49 = vpop.permute.xlu2 %1218  ;;  %v5958_v21 = vpop.permute.xlu1 %1193  ;;  %v1251_v5 = vmul.f32 %v5422_v14, %v5703_v61 }
  0xf9   : > { %7535 = vst [vmem:[#allocation101_spill] sm:$0xff] %v5948_v62  ;;  %v5962_v54 = vmul.f32 %v5954_v22, %v5956_v49  ;;  %v5964_v33 = vpop.permute.xlu0 %472  ;;  %v5966_v20 = vpop.f32.mrf.mxu0  ;;  %v5977_v62 = vmul.f32 %v5958_v21, %v5923_v57 }
  0xfa   : > { %7536 = vst [vmem:[#allocation102_spill] sm:$0xff] %v5954_v22  ;;  %v5988_v9 = vmul.f32 %v5964_v33, %v5973_v7  ;;  %v5992_v14 = vpop.f32.mrf.mxu3  ;;  %v5996_v61 = vpop.f32.mrf.mxu2 }
  0xfb   : > { %7537 = vst [vmem:[#allocation103_spill] sm:$0xff] %v5956_v49  ;;  %v1845_v49 = vld [vmem:[%s4837_s20 + $0xb9] sm:$0xff] }
  0xfc   : > { %7538 = vst [vmem:[#allocation104_spill] sm:$0xff] %v5962_v54  ;;  %v5981_v54 = vmul.f32 %v5838_v27, %v5958_v21  ;;  %4322 = vmatmul.msk.f32.gmra.mxu1 %vm593_vm0, %v534_v47  ;;  %4359 = vmatmul.msk.f32.gmra.mxu2 %vm593_vm0, %v1251_v5  ;;  %v6008_v47 = vld [vmem:[%s4837_s20 + $0xe0] sm:$0xff] }
  0xfd   : > { %7539 = vst [vmem:[#allocation105_spill] sm:$0xff] %v5977_v62  ;;  %4437 = vmatmul.msk.f32.gmra.mxu0 %vm593_vm0, %v1845_v49  ;;  %v5999_v62 = vld [vmem:[%s4837_s20 + $0x108] sm:$0xff]  ;;  %v6001_v45 = vpop.f32.mrf.mxu1 }
  0xfe   : > { %7540 = vst [vmem:[#allocation106_spill] sm:$0xff] %v5981_v54  ;;  %4394 = vmatmul.msk.f32.gmra.mxu3 %vm593_vm0, %v1560_v15 }
  0xff   : > { %7541 = vst [vmem:[#allocation107_spill] sm:$0xff] %v5988_v9 }
 0x100   : > { %7542 = vst [vmem:[#allocation108_spill] sm:$0xff] %v5992_v14  ;;  %v6003_v54 = vpop.permute.xlu2 %507  ;;  %v6005_v9 = vpop.permute.xlu1 %482  ;;  %v1252_v14 = vmul.f32 %v5543_v1, %v5614_v29  ;;  %v2133_v1 = vld [vmem:[%s4837_s20 + $0x10a] sm:$0xff] }
 0x101   : > { %7543 = vst [vmem:[#allocation109_spill] sm:$0xff] %v5996_v61  ;;  %v6012_v5 = vmul.f32 %v5999_v62, %v6003_v54  ;;  %v6014_v15 = vpop.permute.xlu0 %1198  ;;  %v6016_v49 = vpop.f32.mrf.mxu0  ;;  %v535_v61 = vmul.f32 %v5376_v34, %v5694_v13  ;;  %v6027_v27 = vmul.f32 %v6008_v47, %v6005_v9 }
 0x102   : > { %7544 = vst [vmem:[#allocation110_spill] sm:$0xff] %v5999_v62  ;;  %v1846_v62 = vld [vmem:[%s4837_s20 + $0xc1] sm:$0xff]  ;;  %v6044_v34 = vpop.f32.mrf.mxu3 }
 0x103   : > { %7545 = vst [vmem:[#allocation111_spill] sm:$0xff] %v6001_v45  ;;  %v6023_v45 = vld [vmem:[%s4837_s20 + $0xe2] sm:$0xff] }
 0x104   : > { %7546 = vst [vmem:[#allocation112_spill] sm:$0xff] %v6003_v54  ;;  %v1561_v54 = vmul.f32 %v5694_v13, %v5666_v52  ;;  %v6038_v29 = vmul.f32 %v6014_v15, %v6023_v45  ;;  %4323 = vmatmul.msk.f32.gmra.mxu1 %vm593_vm0, %v535_v61  ;;  %4360 = vmatmul.msk.f32.gmra.mxu2 %vm593_vm0, %v1252_v14  ;;  %v6061_v14 = vld [vmem:[%s4837_s20 + $0xe8] sm:$0xff] }
 0x105   : > { %7547 = vst [vmem:[#allocation113_spill] sm:$0xff] %v6008_v47  ;;  %4438 = vmatmul.msk.f32.gmra.mxu0 %vm593_vm0, %v1846_v62  ;;  %v536_v62 = vmul.f32 %v5599_v24, %v5757_v35 }
 0x106   : > { %7548 = vst [vmem:[#allocation114_spill] sm:$0xff] %v6012_v5  ;;  %v6031_v5 = vmul.f32 %v5743_v46, %v6014_v15  ;;  %4395 = vmatmul.msk.f32.gmra.mxu3 %vm593_vm0, %v1561_v54  ;;  %v1253_v54 = vmul.f32 %v5425_v11, %v5747_v10  ;;  %v1562_v10 = vmul.f32 %v5485_v31, %v5757_v35 }
 0x107   : > { %7549 = vst [vmem:[#allocation115_spill] sm:$0xff] %v6023_v45 }
 0x108   : > { %7550 = vst [vmem:[#allocation116_spill] sm:$0xff] %v6027_v27  ;;  %v6047_v27 = vpop.permute.xlu2 %1233  ;;  %v6049_v13 = vpop.permute.xlu1 %1208 }
 0x109   : > { %7551 = vst [vmem:[#allocation117_spill] sm:$0xff] %v6031_v5  ;;  %v1386_v5 = vpop.f32.mrf.mxu2  ;;  %v6052_v47 = vmul.f32 %v2133_v1, %v6047_v27  ;;  %v916_v61 = vpop.f32.mrf.mxu1  ;;  %v6069_v1 = vmul.f32 %v5954_v22, %v6049_v13  ;;  %v6086_v22 = vld [vmem:[%s4837_s20 + $0xf8] sm:$0xff] }
 0x10a   : > { %7552 = vst [vmem:[#allocation118_spill] sm:$0xff] %v6038_v29  ;;  %v6054_v29 = vpop.permute.xlu0 %487  ;;  %v917_v24 = vadd.f32 %v916_v61, %v5302_v17 }
 0x10b   : > { %7553 = vst [vmem:[#allocation119_spill] sm:$0xff] %v6044_v34  ;;  %v6065_v34 = vmul.f32 %v6049_v13, %v6023_v45  ;;  %v6078_v11 = vmul.f32 %v6054_v29, %v6061_v14 }
 0x10c   : > { %7554 = vst [vmem:[#allocation120_spill] sm:$0xff] %v6047_v27  ;;  %v1847_v27 = vld [vmem:[%s4837_s20 + $0xc9] sm:$0xff]  ;;  %4324 = vmatmul.msk.f32.gmra.mxu1 %vm593_vm0, %v536_v62  ;;  %4361 = vmatmul.msk.f32.gmra.mxu2 %vm593_vm0, %v1253_v54 }
 0x10d   : > { %7555 = vst [vmem:[#allocation121_spill] sm:$0xff] %v6052_v47  ;;  %v6071_v47 = vpop.f32.mrf.mxu0  ;;  %4439 = vmatmul.msk.f32.gmra.mxu0 %vm593_vm0, %v1847_v27  ;;  %v537_v27 = vmul.f32 %v5594_v12, %v5666_v52 }
 0x10e   : > { %7556 = vst [vmem:[#allocation122_spill] sm:$0xff] %v6061_v14  ;;  %4396 = vmatmul.msk.f32.gmra.mxu3 %vm593_vm0, %v1562_v10  ;;  %v6091_v14 = vld [vmem:[%s4837_s20 + $0xfa] sm:$0xff] }
 0x10f   : > { %7557 = vst [vmem:[#allocation123_spill] sm:$0xff] %v6065_v34 }
 0x110   : > { %7558 = vst [vmem:[#allocation124_spill] sm:$0xff] %v6069_v1  ;;  %v1482_v1 = vadd.f32 %v1386_v5, %v917_v24  ;;  %v1696_v35 = vpop.f32.mrf.mxu3  ;;  %v6088_v45 = vpop.permute.xlu1 %497  ;;  %v1254_v5 = vmul.f32 %v5538_v51, %v5807_v44  ;;  %v1848_v24 = vld [vmem:[%s4837_s20 + $0xd1] sm:$0xff] }
 0x111   : > { %7559 = vst [vmem:[#allocation125_spill] sm:$0xff] %v6078_v11  ;;  %v1389_v34 = vpop.f32.mrf.mxu2  ;;  %v6095_v17 = vmul.f32 %v6086_v22, %v6088_v45  ;;  %v919_v54 = vpop.f32.mrf.mxu1 }
 0x112   : > { %v1792_v11 = vadd.f32 %v1696_v35, %v1482_v1  ;;  %v6097_v61 = vpop.permute.xlu0 %1213  ;;  %v1563_v35 = vmul.f32 %v5697_v41, %v5594_v12 }
 0x113   : > { %7560 = vst [vmem:[#allocation126_spill] sm:$0xff] %v6095_v17  ;;  %v6105_v62 = vmul.f32 %v5841_v48, %v6097_v61  ;;  %v6109_v1 = vmul.f32 %v6097_v61, %v6091_v14  ;;  %v920_v17 = vadd.f32 %v919_v54, %v5343_v43 }
 0x114   : > { %v6118_v52 = vadd.f32 %v5705_v55, %v1792_v11  ;;  %4325 = vmatmul.msk.f32.gmra.mxu1 %vm593_vm0, %v537_v27  ;;  %4362 = vmatmul.msk.f32.gmra.mxu2 %vm593_vm0, %v1254_v5  ;;  %v1255_v27 = vmul.f32 %v5645_v36, %v5712_v16 }
 0x115   : > { %7561 = vst [vmem:[#allocation127_spill] sm:$0xff] %v6105_v62  ;;  %v6111_v10 = vpop.f32.mrf.mxu0  ;;  %4440 = vmatmul.msk.f32.gmra.mxu0 %vm593_vm0, %v1848_v24  ;;  %v1483_v44 = vadd.f32 %v1389_v34, %v920_v17  ;;  %v6125_v62 = vld [vmem:[%s4837_s20 + $0x100] sm:$0xff]  ;;  %v538_v34 = vmul.f32 %v5485_v31, %v5798_v19  ;;  %v1564_v24 = vmul.f32 %v5798_v19, %v5766_v60 }
 0x116   : > { %7562 = vst [vmem:[#allocation128_spill] sm:$0xff] %v6109_v1  ;;  %4397 = vmatmul.msk.f32.gmra.mxu3 %vm593_vm0, %v1563_v35 }
 0x118   : > { %v1699_v1 = vpop.f32.mrf.mxu3  ;;  %v6127_v12 = vpop.permute.xlu1 %1223 }
 0x119   : > { %v1392_v51 = vpop.f32.mrf.mxu2  ;;  %v1793_v43 = vadd.f32 %v1699_v1, %v1483_v44  ;;  %v6131_v55 = vmul.f32 %v6127_v12, %v6091_v14  ;;  %v922_v54 = vpop.f32.mrf.mxu1  ;;  %v1849_v1 = vld [vmem:[%s4837_s20 + $0xd9] sm:$0xff] }
 0x11a   : > { %v6133_v11 = vpop.permute.xlu0 %502  ;;  %v923_v35 = vadd.f32 %v922_v54, %v5389_v2 }
 0x11b   : > { %7563 = vst [vmem:[#allocation129_spill] sm:$0xff] %v6131_v55  ;;  %v6141_v17 = vmul.f32 %v6125_v62, %v6133_v11  ;;  %v6150_v44 = vadd.f32 %v5759_v23, %v1793_v43  ;;  %v3028_v55 = vld [vmem:[%s4837_s20 + $0x102] sm:$0xff]  ;;  %v1256_v23 = vmul.f32 %v5541_v26, %v5849_v3  ;;  %v539_v43 = vmul.f32 %v5697_v41, %v5859_v53 }
 0x11c   : > { %4326 = vmatmul.msk.f32.gmra.mxu1 %vm593_vm0, %v538_v34  ;;  %4363 = vmatmul.msk.f32.gmra.mxu2 %vm593_vm0, %v1255_v27  ;;  %v1484_v36 = vadd.f32 %v1392_v51, %v923_v35  ;;  %v1850_v34 = vld [vmem:[%s4837_s20 + $0xe1] sm:$0xff]  ;;  %v1565_v51 = vmul.f32 %v5590_v42, %v5859_v53  ;;  %v540_v53 = vmul.f32 %v5692_v18, %v5766_v60 }
 0x11d   : > { %7564 = vst [vmem:[#allocation130_spill] sm:$0xff] %v6141_v17  ;;  %v6143_v5 = vpop.f32.mrf.mxu0  ;;  %4441 = vmatmul.msk.f32.gmra.mxu0 %vm593_vm0, %v1849_v1 }
 0x11e   : > { %4398 = vmatmul.msk.f32.gmra.mxu3 %vm593_vm0, %v1564_v24 }
 0x120   : > { %v1702_v16 = vpop.f32.mrf.mxu3 }
 0x121   : > { %v1395_v31 = vpop.f32.mrf.mxu2  ;;  %v1794_v17 = vadd.f32 %v1702_v16, %v1484_v36  ;;  %v925_v2 = vpop.f32.mrf.mxu1  ;;  %v4484_v36 = vld [vmem:[%s7405_s1 + $0xc0] sm:$0xff]  ;;  %v1566_v16 = vmul.f32 %v5801_v56, %v5692_v18 }
 0x122   : > { %v6157_v19 = vpop.permute.xlu0 %1228  ;;  %v926_v1 = vadd.f32 %v925_v2, %v5441_v30  ;;  %v1257_v30 = vmul.f32 %v5636_v50, %v5914_v8  ;;  %2592 = vmatpush.msra.mxu2 %v4484_v36  ;;  %v4520_v50 = vld [vmem:[%s7405_s1 + $0xe0] sm:$0xff] }
 0x123   : > { %v6164_v54 = vmul.f32 %v3028_v55, %v6157_v19  ;;  %v6173_v24 = vadd.f32 %v5809_v4, %v1794_v17  ;;  %v1851_v17 = vld [vmem:[%s4837_s20 + $0xe9] sm:$0xff]  ;;  %2870 = vmatpush.msra.mxu3 %v4520_v50 }
 0x124   : > { %4327 = vmatmul.msk.f32.gmra.mxu1 %vm593_vm0, %v539_v43  ;;  %4364 = vmatmul.msk.f32.gmra.mxu2 %vm593_vm0, %v1256_v23  ;;  %v1485_v26 = vadd.f32 %v1395_v31, %v926_v1  ;;  %v1258_v43 = vmul.f32 %v5745_v6, %v5816_v37  ;;  %v1852_v1 = vld [vmem:[%s4837_s20 + $0xf1] sm:$0xff]  ;;  %v4556_v6 = vld [vmem:[%s7405_s1 + $0x100] sm:$0xff] }
 0x125   : > { %v6166_v27 = vpop.f32.mrf.mxu0  ;;  %4442 = vmatmul.msk.f32.gmra.mxu0 %vm593_vm0, %v1850_v34  ;;  %v541_v34 = vmul.f32 %v5590_v42, %v5905_v38 }
 0x126   : > { %4399 = vmatmul.msk.f32.gmra.mxu3 %vm593_vm0, %v1565_v51  ;;  %3180 = vmatpush.msra.mxu0 %v4556_v6 }
 0x128   : > { %v1705_v41 = vpop.f32.mrf.mxu3 }
 0x129   : > { %v1398_v3 = vpop.f32.mrf.mxu2  ;;  %v1795_v55 = vadd.f32 %v1705_v41, %v1485_v26  ;;  %v928_v35 = vpop.f32.mrf.mxu1  ;;  %v1567_v26 = vmul.f32 %v5905_v38, %v5868_v25 }
 0x12a   : > { %v929_v31 = vadd.f32 %v928_v35, %v5500_v63  ;;  %v4448_v63 = vld [vmem:[%s7405_s1 + $0xa0] sm:$0xff]  ;;  %v542_v35 = vmul.f32 %v5801_v56, %v5964_v33 }
 0x12b   : > { %v6193_v2 = vadd.f32 %v5861_v40, %v1795_v55  ;;  %2282 = vmatpush.msra.mxu1 %v4448_v63 }
 0x12c   : > { %4328 = vmatmul.msk.f32.gmra.mxu1 %vm593_vm0, %v540_v53  ;;  %4365 = vmatmul.msk.f32.gmra.mxu2 %vm593_vm0, %v1257_v30  ;;  %v1486_v60 = vadd.f32 %v1398_v3, %v929_v31  ;;  %v1853_v30 = vld [vmem:[%s4837_s20 + $0xf9] sm:$0xff] }
 0x12d   : > { %v6183_v4 = vpop.f32.mrf.mxu0  ;;  %4443 = vmatmul.msk.f32.gmra.mxu0 %vm593_vm0, %v1851_v17  ;;  %v1568_v17 = vmul.f32 %v5690_v59, %v5964_v33  ;;  %v543_v33 = vmul.f32 %v5796_v32, %v5868_v25 }
 0x12e   : > { %4400 = vmatmul.msk.f32.gmra.mxu3 %vm593_vm0, %v1566_v16 }
 0x131   : > { %v1401_v18 = vpop.f32.mrf.mxu2  ;;  %v1708_v8 = vpop.f32.mrf.mxu3 }
 0x132   : > { %v1796_v40 = vadd.f32 %v1708_v8, %v1486_v60  ;;  %v931_v23 = vpop.f32.mrf.mxu1  ;;  %v7566_v60 = vld [vmem:[#allocation94_spill] sm:$0xff] }
 0x133   : > { %v932_v41 = vadd.f32 %v931_v23, %v5557_v39  ;;  %v1569_v8 = vmul.f32 %v7566_v60, %v5796_v32  ;;  %v7568_v32 = vld [vmem:[#allocation85_spill] sm:$0xff] }
 0x134   : > { %v6216_v3 = vadd.f32 %v5916_v0, %v1796_v40  ;;  %4329 = vmatmul.msk.f32.gmra.mxu1 %vm593_vm0, %v541_v34  ;;  %4366 = vmatmul.msk.f32.gmra.mxu2 %vm593_vm0, %v1258_v43  ;;  %v1259_v0 = vmul.f32 %v5639_v58, %v5958_v21  ;;  %v7567_v40 = vld [vmem:[#allocation56_spill] sm:$0xff] }
 0x135   : > { %v6209_v51 = vpop.f32.mrf.mxu0  ;;  %4444 = vmatmul.msk.f32.gmra.mxu0 %vm593_vm0, %v1852_v1  ;;  %v1487_v37 = vadd.f32 %v1401_v18, %v932_v41  ;;  %v1854_v18 = vld [vmem:[%s4837_s20 + $0x101] sm:$0xff]  ;;  %v1261_v41 = vmul.f32 %v7568_v32, %v5923_v57 }
 0x136   : > { %4401 = vmatmul.msk.f32.gmra.mxu3 %vm593_vm0, %v1567_v26 }
 0x139   : > { %v1404_v42 = vpop.f32.mrf.mxu2  ;;  %v1711_v39 = vpop.f32.mrf.mxu3 }
 0x13a   : > { %v1797_v38 = vadd.f32 %v1711_v39, %v1487_v37  ;;  %v934_v55 = vpop.f32.mrf.mxu1  ;;  %v1570_v37 = vmul.f32 %v6005_v9, %v5973_v7  ;;  %v7569_v39 = vld [vmem:[#allocation39_spill] sm:$0xff] }
 0x13b   : > { %v935_v36 = vadd.f32 %v934_v55, %v5607_v28  ;;  %v7565_v28 = vld [vmem:[#allocation68_spill] sm:$0xff] }
 0x13c   : > { %v6236_v16 = vadd.f32 %v5966_v20, %v1797_v38  ;;  %4330 = vmatmul.msk.f32.gmra.mxu1 %vm593_vm0, %v542_v35  ;;  %4367 = vmatmul.msk.f32.gmra.mxu2 %vm593_vm0, %v1259_v0  ;;  %v1260_v20 = vmul.f32 %v7565_v28, %v6014_v15 }
 0x13d   : > { %v6229_v53 = vpop.f32.mrf.mxu0  ;;  %4445 = vmatmul.msk.f32.gmra.mxu0 %vm593_vm0, %v1853_v30  ;;  %v1488_v56 = vadd.f32 %v1404_v42, %v935_v36  ;;  %v1855_v42 = vld [vmem:[%s4837_s20 + $0x109] sm:$0xff] }
 0x13e   : > { %4402 = vmatmul.msk.f32.gmra.mxu3 %vm593_vm0, %v1568_v17  ;;  %v7570_v36 = vld [vmem:[#allocation76_spill] sm:$0xff] }
 0x141   : > { %v1407_v58 = vpop.f32.mrf.mxu2  ;;  %v1714_v21 = vpop.f32.mrf.mxu3 }
 0x142   : > { %v1798_v31 = vadd.f32 %v1714_v21, %v1488_v56  ;;  %v937_v50 = vpop.f32.mrf.mxu1  ;;  %v7571_v56 = vld [vmem:[#allocation47_spill] sm:$0xff] }
 0x143   : > { %v938_v23 = vadd.f32 %v937_v50, %v7567_v40  ;;  %v7575_v40 = vld [vmem:[#allocation113_spill] sm:$0xff] }
 0x144   : > { %v6253_v43 = vadd.f32 %v6016_v49, %v1798_v31  ;;  %4331 = vmatmul.msk.f32.gmra.mxu1 %vm593_vm0, %v543_v33  ;;  %4368 = vmatmul.msk.f32.gmra.mxu2 %vm593_vm0, %v1260_v20  ;;  %v544_v49 = vmul.f32 %v5690_v59, %v6005_v9  ;;  %v1262_v9 = vmul.f32 %v5743_v46, %v6049_v13  ;;  %v7572_v46 = vld [vmem:[#allocation10_spill] sm:$0xff] }
 0x145   : > { %v6246_v63 = vpop.f32.mrf.mxu0  ;;  %4446 = vmatmul.msk.f32.gmra.mxu0 %vm593_vm0, %v1854_v18  ;;  %v1489_v15 = vadd.f32 %v1407_v58, %v938_v23  ;;  %v1571_v58 = vmul.f32 %v7570_v36, %v6054_v29 }
 0x146   : > { %4403 = vmatmul.msk.f32.gmra.mxu3 %vm593_vm0, %v1569_v8 }
 0x149   : > { %v1410_v25 = vpop.f32.mrf.mxu2  ;;  %v1717_v34 = vpop.f32.mrf.mxu3 }
 0x14a   : > { %v1799_v1 = vadd.f32 %v1717_v34, %v1489_v15  ;;  %v940_v26 = vpop.f32.mrf.mxu1 }
 0x14b   : > { %v941_v38 = vadd.f32 %v940_v26, %v7569_v39 }
 0x14c   : > { %v6270_v55 = vadd.f32 %v6071_v47, %v1799_v1  ;;  %4332 = vmatmul.msk.f32.gmra.mxu1 %vm593_vm0, %v544_v49  ;;  %4369 = vmatmul.msk.f32.gmra.mxu2 %vm593_vm0, %v1261_v41  ;;  %v545_v47 = vmul.f32 %v7566_v60, %v6054_v29  ;;  %v7573_v29 = vld [vmem:[#allocation93_spill] sm:$0xff]  ;;  %v7578_v49 = vld [vmem:[#allocation115_spill] sm:$0xff] }
 0x14d   : > { %v6263_v6 = vpop.f32.mrf.mxu0  ;;  %4447 = vmatmul.msk.f32.gmra.mxu0 %vm593_vm0, %v1855_v42  ;;  %v1490_v57 = vadd.f32 %v1410_v25, %v941_v38  ;;  %v546_v18 = vmul.f32 %v7573_v29, %v5973_v7  ;;  %v1572_v23 = vmul.f32 %v7575_v40, %v7573_v29  ;;  %v7576_v25 = vld [vmem:[#allocation60_spill] sm:$0xff]  ;;  %v7579_v42 = vld [vmem:[#allocation103_spill] sm:$0xff]  ;;  %v7580_v38 = vld [vmem:[#allocation122_spill] sm:$0xff] }
 0x14e   : > { %4404 = vmatmul.msk.f32.gmra.mxu3 %vm593_vm0, %v1570_v37  ;;  %v7577_v7 = vld [vmem:[#allocation8_spill] sm:$0xff]  ;;  %v1264_v37 = vmul.f32 %v7579_v42, %v7578_v49 }
 0x151   : > { %v1413_v59 = vpop.f32.mrf.mxu2  ;;  %v1720_v0 = vpop.f32.mrf.mxu3 }
 0x152   : > { %v1800_v35 = vadd.f32 %v1720_v0, %v1490_v57  ;;  %v943_v30 = vpop.f32.mrf.mxu1  ;;  %v7581_v57 = vld [vmem:[#allocation67_spill] sm:$0xff] }
 0x153   : > { %v944_v21 = vadd.f32 %v943_v30, %v7571_v56  ;;  %v7582_v30 = vld [vmem:[#allocation3_spill] sm:$0xff] }
 0x154   : > { %v6286_v31 = vadd.f32 %v6111_v10, %v1800_v35  ;;  %4333 = vmatmul.msk.f32.gmra.mxu1 %vm593_vm0, %v545_v47  ;;  %4370 = vmatmul.msk.f32.gmra.mxu2 %vm593_vm0, %v1262_v9  ;;  %v7574_v10 = vld [vmem:[#allocation82_spill] sm:$0xff] }
 0x155   : > { %v6280_v17 = vpop.f32.mrf.mxu0  ;;  %4560 = vmatmul.msk.f32.vlgmr.msra.gmra.mxu0 %vm593_vm0, %v7572_v46  ;;  %v1491_v50 = vadd.f32 %v1413_v59, %v944_v21  ;;  %v1263_v60 = vmul.f32 %v7574_v10, %v6097_v61  ;;  %v1573_v59 = vmul.f32 %v6088_v45, %v7580_v38  ;;  %v7583_v46 = vld [vmem:[#allocation92_spill] sm:$0xff] }
 0x156   : > { %4405 = vmatmul.msk.f32.gmra.mxu3 %vm593_vm0, %v1571_v58 }
 0x159   : > { %v1416_v13 = vpop.f32.mrf.mxu2  ;;  %v1723_v33 = vpop.f32.mrf.mxu3 }
 0x15a   : > { %v1801_v28 = vadd.f32 %v1723_v33, %v1491_v50  ;;  %v946_v20 = vpop.f32.mrf.mxu1  ;;  %v7584_v50 = vld [vmem:[#allocation77_spill] sm:$0xff] }
 0x15b   : > { %v947_v15 = vadd.f32 %v946_v20, %v7576_v25 }
 0x15c   : > { %v6303_v34 = vadd.f32 %v6143_v5, %v1801_v28  ;;  %4334 = vmatmul.msk.f32.gmra.mxu1 %vm593_vm0, %v546_v18  ;;  %4371 = vmatmul.msk.f32.gmra.mxu2 %vm593_vm0, %v1263_v60  ;;  %v547_v5 = vmul.f32 %v7570_v36, %v6088_v45  ;;  %v1265_v45 = vmul.f32 %v5841_v48, %v6127_v12  ;;  %v7585_v48 = vld [vmem:[#allocation19_spill] sm:$0xff] }
 0x15d   : > { %v6297_v8 = vpop.f32.mrf.mxu0  ;;  %4561 = vmatmul.msk.f32.gmra.mxu0 %vm593_vm0, %v7577_v7  ;;  %v1492_v1 = vadd.f32 %v1416_v13, %v947_v15  ;;  %v1574_v13 = vmul.f32 %v7583_v46, %v6133_v11  ;;  %v7588_v7 = vld [vmem:[#allocation91_spill] sm:$0xff] }
 0x15e   : > { %4406 = vmatmul.msk.f32.gmra.mxu3 %vm593_vm0, %v1572_v23 }
 0x161   : > { %v1419_v61 = vpop.f32.mrf.mxu2  ;;  %v1726_v26 = vpop.f32.mrf.mxu3 }
 0x162   : > { %v1802_v32 = vadd.f32 %v1726_v26, %v1492_v1  ;;  %v949_v41 = vpop.f32.mrf.mxu1  ;;  %v7589_v26 = vld [vmem:[#allocation6_spill] sm:$0xff] }
 0x163   : > { %v950_v0 = vadd.f32 %v949_v41, %v7581_v57 }
 0x164   : > { %v6320_v35 = vadd.f32 %v6166_v27, %v1802_v32  ;;  %4335 = vmatmul.msk.f32.gmra.mxu1 %vm593_vm0, %v547_v5  ;;  %4372 = vmatmul.msk.f32.gmra.mxu2 %vm593_vm0, %v1264_v37  ;;  %v548_v27 = vmul.f32 %v7575_v40, %v6133_v11  ;;  %v7586_v11 = vld [vmem:[#allocation112_spill] sm:$0xff]  ;;  %v6361_v32 = vpop.permute.xlu1 %512 }
 0x165   : > { %v6314_v39 = vpop.f32.mrf.mxu0  ;;  %4562 = vmatmul.msk.f32.gmra.mxu0 %vm593_vm0, %v7582_v30  ;;  %v1493_v47 = vadd.f32 %v1419_v61, %v950_v0  ;;  %v549_v40 = vmul.f32 %v7586_v11, %v7580_v38  ;;  %v1575_v15 = vmul.f32 %v6086_v22, %v7586_v11  ;;  %v550_v57 = vmul.f32 %v7583_v46, %v6361_v32 }
 0x166   : > { %4407 = vmatmul.msk.f32.gmra.mxu3 %vm593_vm0, %v1573_v59  ;;  %v7590_v59 = vld [vmem:[#allocation120_spill] sm:$0xff]  ;;  %v1576_v30 = vmul.f32 %v6125_v62, %v6361_v32 }
 0x169   : > { %v1422_v9 = vpop.f32.mrf.mxu2  ;;  %v1729_v36 = vpop.f32.mrf.mxu3 }
 0x16a   : > { %v1803_v58 = vadd.f32 %v1729_v36, %v1493_v47  ;;  %v952_v56 = vpop.f32.mrf.mxu1 }
 0x16b   : > { %v953_v33 = vadd.f32 %v952_v56, %v7584_v50  ;;  %v7593_v50 = vld [vmem:[#allocation110_spill] sm:$0xff] }
 0x16c   : > { %v6337_v28 = vadd.f32 %v6183_v4, %v1803_v58  ;;  %4336 = vmatmul.msk.f32.gmra.mxu1 %vm593_vm0, %v548_v27  ;;  %4373 = vmatmul.msk.f32.gmra.mxu2 %vm593_vm0, %v1265_v45  ;;  %v7587_v4 = vld [vmem:[#allocation102_spill] sm:$0xff]  ;;  %v6380_v58 = vpop.permute.xlu0 %517 }
 0x16d   : > { %v6331_v21 = vpop.f32.mrf.mxu0  ;;  %4563 = vmatmul.msk.f32.gmra.mxu0 %vm593_vm0, %v7585_v48  ;;  %v1494_v29 = vadd.f32 %v1422_v9, %v953_v33  ;;  %v1266_v23 = vmul.f32 %v7587_v4, %v6157_v19  ;;  %v7591_v9 = vld [vmem:[#allocation101_spill] sm:$0xff]  ;;  %v1577_v33 = vmul.f32 %v7593_v50, %v6380_v58  ;;  %v7594_v48 = vld [vmem:[#allocation111_spill] sm:$0xff] }
 0x16e   : > { %4408 = vmatmul.msk.f32.gmra.mxu3 %vm593_vm0, %v1574_v13 }
 0x171   : > { %v1425_v20 = vpop.f32.mrf.mxu2  ;;  %v1732_v18 = vpop.f32.mrf.mxu3 }
 0x172   : > { %v1804_v10 = vadd.f32 %v1732_v18, %v1494_v29  ;;  %v955_v60 = vpop.f32.mrf.mxu1  ;;  %v7595_v18 = vld [vmem:[#allocation15_spill] sm:$0xff] }
 0x173   : > { %v956_v61 = vadd.f32 %v955_v60, %v7588_v7 }
 0x174   : > { %v6354_v1 = vadd.f32 %v6209_v51, %v1804_v10  ;;  %4337 = vmatmul.msk.f32.gmra.mxu1 %vm593_vm0, %v549_v40  ;;  %4374 = vmatmul.msk.f32.gmra.mxu2 %vm593_vm0, %v1266_v23  ;;  %v1267_v51 = vmul.f32 %v7590_v59, %v6091_v14  ;;  %v7592_v14 = vld [vmem:[#allocation23_spill] sm:$0xff]  ;;  %v7596_v10 = vld [vmem:[#allocation28_spill] sm:$0xff] }
 0x175   : > { %v6348_v25 = vpop.f32.mrf.mxu0  ;;  %4564 = vmatmul.msk.f32.gmra.mxu0 %vm593_vm0, %v7589_v26  ;;  %v1495_v49 = vadd.f32 %v1425_v20, %v956_v61  ;;  %v7598_v26 = vld [vmem:[#allocation9_spill] sm:$0xff] }
 0x176   : > { %4409 = vmatmul.msk.f32.gmra.mxu3 %vm593_vm0, %v1575_v15  ;;  %v7597_v15 = vld [vmem:[#allocation38_spill] sm:$0xff] }
 0x179   : > { %v1428_v41 = vpop.f32.mrf.mxu2  ;;  %v1735_v37 = vpop.f32.mrf.mxu3 }
 0x17a   : > { %v1805_v5 = vadd.f32 %v1735_v37, %v1495_v49  ;;  %v958_v38 = vpop.f32.mrf.mxu1  ;;  %v7600_v49 = vld [vmem:[#allocation13_spill] sm:$0xff] }
 0x17b   : > { %v959_v47 = vadd.f32 %v958_v38, %v7591_v9  ;;  %v7601_v9 = vld [vmem:[#allocation45_spill] sm:$0xff] }
 0x17c   : > { %v6373_v36 = vadd.f32 %v6229_v53, %v1805_v5  ;;  %4338 = vmatmul.msk.f32.gmra.mxu1 %vm593_vm0, %v550_v57  ;;  %4375 = vmatmul.msk.f32.gmra.mxu2 %vm593_vm0, %v1267_v51  ;;  %v551_v53 = vmul.f32 %v6086_v22, %v6380_v58 }
 0x17d   : > { %v6367_v0 = vpop.f32.mrf.mxu0  ;;  %4565 = vmatmul.msk.f32.gmra.mxu0 %vm593_vm0, %v7592_v14  ;;  %v1496_v45 = vadd.f32 %v1428_v41, %v959_v47  ;;  %v7599_v41 = vld [vmem:[#allocation14_spill] sm:$0xff] }
 0x17e   : > { %4410 = vmatmul.msk.f32.gmra.mxu3 %vm593_vm0, %v1576_v30 }
 0x181   : > { %v1431_v56 = vpop.f32.mrf.mxu2  ;;  %v1738_v27 = vpop.f32.mrf.mxu3 }
 0x182   : > { %v1806_v62 = vadd.f32 %v1738_v27, %v1496_v45  ;;  %v961_v46 = vpop.f32.mrf.mxu1  ;;  %v7603_v45 = vld [vmem:[#allocation4_spill] sm:$0xff] }
 0x183   : > { %v962_v20 = vadd.f32 %v961_v46, %v7594_v48  ;;  %v7604_v27 = vld [vmem:[#allocation32_spill] sm:$0xff] }
 0x184   : > { %v6390_v29 = vadd.f32 %v6246_v63, %v1806_v62  ;;  %4339 = vmatmul.msk.f32.gmra.mxu1 %vm593_vm0, %v551_v53  ;;  %4488 = vmatmul.msk.f32.vlgmr.msra.gmra.mxu2 %vm593_vm0, %v7595_v18  ;;  %v2722_v63 = vld [vmem:[%s4837_s20 + $0x21] sm:$0xff] }
 0x185   : > { %v6384_v13 = vpop.f32.mrf.mxu0  ;;  %4566 = vmatmul.msk.f32.gmra.mxu0 %vm593_vm0, %v7596_v10  ;;  %v1497_v60 = vadd.f32 %v1431_v56, %v962_v20  ;;  %v7602_v56 = vld [vmem:[#allocation7_spill] sm:$0xff]  ;;  %v7605_v20 = vld [vmem:[#allocation52_spill] sm:$0xff] }
 0x186   : > { %4411 = vmatmul.msk.f32.gmra.mxu3 %vm593_vm0, %v1577_v33 }
 0x189   : > { %v1434_v22 = vpop.f32.mrf.mxu2  ;;  %v1741_v11 = vpop.f32.mrf.mxu3 }
 0x18a   : > { %v1807_v40 = vadd.f32 %v1741_v11, %v1497_v60  ;;  %v964_v4 = vpop.f32.mrf.mxu1  ;;  %v7607_v60 = vld [vmem:[#allocation17_spill] sm:$0xff] }
 0x18b   : > { %v965_v7 = vadd.f32 %v964_v4, %v7597_v15  ;;  %v7608_v11 = vld [vmem:[#allocation37_spill] sm:$0xff] }
 0x18c   : > { %v6403_v61 = vadd.f32 %v6263_v6, %v1807_v40  ;;  %4452 = vmatmul.msk.f32.vlgmr.msra.gmra.mxu1 %vm593_vm0, %v7598_v26  ;;  %4489 = vmatmul.msk.f32.gmra.mxu2 %vm593_vm0, %v7599_v41  ;;  %v2723_v6 = vld [vmem:[%s4837_s20 + $0x29] sm:$0xff]  ;;  %v7609_v41 = vld [vmem:[#allocation65_spill] sm:$0xff] }
 0x18d   : > { %v6398_v23 = vpop.f32.mrf.mxu0  ;;  %4567 = vmatmul.msk.f32.gmra.mxu0 %vm593_vm0, %v7600_v49  ;;  %v1498_v5 = vadd.f32 %v1434_v22, %v965_v7  ;;  %v7606_v22 = vld [vmem:[#allocation2_spill] sm:$0xff] }
 0x18e   : > { %4524 = vmatmul.msk.f32.vlgmr.msra.gmra.mxu3 %vm593_vm0, %v2722_v63 }
 0x191   : > { %v1437_v37 = vpop.f32.mrf.mxu2  ;;  %v1744_v38 = vpop.f32.mrf.mxu3 }
 0x192   : > { %v1808_v51 = vadd.f32 %v1744_v38, %v1498_v5  ;;  %v967_v57 = vpop.f32.mrf.mxu1  ;;  %v7610_v5 = vld [vmem:[#allocation18_spill] sm:$0xff]  ;;  %v7611_v38 = vld [vmem:[#allocation24_spill] sm:$0xff] }
 0x193   : > { %v968_v47 = vadd.f32 %v967_v57, %v7601_v9 }
 0x194   : > { %v6417_v14 = vadd.f32 %v6280_v17, %v1808_v51  ;;  %4453 = vmatmul.msk.f32.gmra.mxu1 %vm593_vm0, %v7602_v56  ;;  %4490 = vmatmul.msk.f32.gmra.mxu2 %vm593_vm0, %v7603_v45  ;;  %v2724_v17 = vld [vmem:[%s4837_s20 + $0x31] sm:$0xff] }
 0x195   : > { %v6412_v30 = vpop.f32.mrf.mxu0  ;;  %4568 = vmatmul.msk.f32.gmra.mxu0 %vm593_vm0, %v7604_v27  ;;  %v1499_v46 = vadd.f32 %v1437_v37, %v968_v47  ;;  %v7612_v51 = vld [vmem:[#allocation21_spill] sm:$0xff]  ;;  %v7613_v27 = vld [vmem:[#allocation74_spill] sm:$0xff] }
 0x196   : > { %4525 = vmatmul.msk.f32.gmra.mxu3 %vm593_vm0, %v2723_v6 }
 0x199   : > { %v1440_v62 = vpop.f32.mrf.mxu2  ;;  %v1747_v53 = vpop.f32.mrf.mxu3 }
 0x19a   : > { %v1809_v50 = vadd.f32 %v1747_v53, %v1499_v46  ;;  %v970_v33 = vpop.f32.mrf.mxu1  ;;  %v7614_v53 = vld [vmem:[#allocation5_spill] sm:$0xff] }
 0x19b   : > { %v971_v18 = vadd.f32 %v970_v33, %v7605_v20  ;;  %v7616_v33 = vld [vmem:[#allocation43_spill] sm:$0xff] }
 0x19c   : > { %v6431_v10 = vadd.f32 %v6297_v8, %v1809_v50  ;;  %4454 = vmatmul.msk.f32.gmra.mxu1 %vm593_vm0, %v7606_v22  ;;  %4491 = vmatmul.msk.f32.gmra.mxu2 %vm593_vm0, %v7607_v60  ;;  %v2725_v8 = vld [vmem:[%s4837_s20 + $0x39] sm:$0xff]  ;;  %v7615_v50 = vld [vmem:[#allocation11_spill] sm:$0xff] }
 0x19d   : > { %v6426_v48 = vpop.f32.mrf.mxu0  ;;  %4569 = vmatmul.msk.f32.gmra.mxu0 %vm593_vm0, %v7608_v11  ;;  %v1500_v4 = vadd.f32 %v1440_v62, %v971_v18 }
 0x19e   : > { %4526 = vmatmul.msk.f32.gmra.mxu3 %vm593_vm0, %v2724_v17 }
 0x1a1   : > { %v1443_v40 = vpop.f32.mrf.mxu2  ;;  %v1750_v63 = vpop.f32.mrf.mxu3 }
 0x1a2   : > { %v1810_v15 = vadd.f32 %v1750_v63, %v1500_v4  ;;  %v973_v7 = vpop.f32.mrf.mxu1 }
 0x1a3   : > { %v974_v49 = vadd.f32 %v973_v7, %v7609_v41  ;;  %v7619_v7 = vld [vmem:[#allocation26_spill] sm:$0xff] }
 0x1a4   : > { %v6445_v37 = vadd.f32 %v6314_v39, %v1810_v15  ;;  %4455 = vmatmul.msk.f32.gmra.mxu1 %vm593_vm0, %v7610_v5  ;;  %4492 = vmatmul.msk.f32.gmra.mxu2 %vm593_vm0, %v7611_v38  ;;  %v2726_v39 = vld [vmem:[%s4837_s20 + $0x41] sm:$0xff] }
 0x1a5   : > { %v6440_v26 = vpop.f32.mrf.mxu0  ;;  %4570 = vmatmul.msk.f32.gmra.mxu0 %vm593_vm0, %v7612_v51  ;;  %v1501_v6 = vadd.f32 %v1443_v40, %v974_v49  ;;  %v7617_v40 = vld [vmem:[#allocation83_spill] sm:$0xff]  ;;  %v7618_v15 = vld [vmem:[#allocation22_spill] sm:$0xff] }
 0x1a6   : > { %4527 = vmatmul.msk.f32.gmra.mxu3 %vm593_vm0, %v2725_v8  ;;  %v7620_v8 = vld [vmem:[#allocation51_spill] sm:$0xff] }
 0x1a9   : > { %v1446_v57 = vpop.f32.mrf.mxu2  ;;  %v1753_v9 = vpop.f32.mrf.mxu3 }
 0x1aa   : > { %v1811_v47 = vadd.f32 %v1753_v9, %v1501_v6  ;;  %v976_v56 = vpop.f32.mrf.mxu1  ;;  %v7621_v6 = vld [vmem:[#allocation100_spill] sm:$0xff] }
 0x1ab   : > { %v977_v62 = vadd.f32 %v976_v56, %v7613_v27  ;;  %v7622_v56 = vld [vmem:[#allocation27_spill] sm:$0xff]  ;;  %v7624_v27 = vld [vmem:[#allocation30_spill] sm:$0xff] }
 0x1ac   : > { %v6459_v46 = vadd.f32 %v6331_v21, %v1811_v47  ;;  %4456 = vmatmul.msk.f32.gmra.mxu1 %vm593_vm0, %v7614_v53  ;;  %4493 = vmatmul.msk.f32.gmra.mxu2 %vm593_vm0, %v7615_v50  ;;  %v2727_v21 = vld [vmem:[%s4837_s20 + $0x49] sm:$0xff] }
 0x1ad   : > { %v6454_v45 = vpop.f32.mrf.mxu0  ;;  %4571 = vmatmul.msk.f32.gmra.mxu0 %vm593_vm0, %v7616_v33  ;;  %v1502_v20 = vadd.f32 %v1446_v57, %v977_v62 }
 0x1ae   : > { %4528 = vmatmul.msk.f32.gmra.mxu3 %vm593_vm0, %v2726_v39  ;;  %v7623_v39 = vld [vmem:[#allocation33_spill] sm:$0xff] }
 0x1b1   : > { %v1449_v17 = vpop.f32.mrf.mxu2  ;;  %v1756_v18 = vpop.f32.mrf.mxu3 }
 0x1b2   : > { %v1812_v22 = vadd.f32 %v1756_v18, %v1502_v20  ;;  %v979_v60 = vpop.f32.mrf.mxu1  ;;  %v7625_v18 = vld [vmem:[#allocation109_spill] sm:$0xff] }
 0x1b3   : > { %v980_v4 = vadd.f32 %v979_v60, %v7617_v40  ;;  %v7627_v40 = vld [vmem:[#allocation16_spill] sm:$0xff] }
 0x1b4   : > { %v6473_v63 = vadd.f32 %v6348_v25, %v1812_v22  ;;  %4457 = vmatmul.msk.f32.gmra.mxu1 %vm593_vm0, %v7618_v15  ;;  %4494 = vmatmul.msk.f32.gmra.mxu2 %vm593_vm0, %v7619_v7  ;;  %v2728_v25 = vld [vmem:[%s4837_s20 + $0x51] sm:$0xff] }
 0x1b5   : > { %v6468_v11 = vpop.f32.mrf.mxu0  ;;  %4572 = vmatmul.msk.f32.gmra.mxu0 %vm593_vm0, %v7620_v8  ;;  %v1503_v49 = vadd.f32 %v1449_v17, %v980_v4  ;;  %v7628_v4 = vld [vmem:[#allocation58_spill] sm:$0xff] }
 0x1b6   : > { %4529 = vmatmul.msk.f32.gmra.mxu3 %vm593_vm0, %v2727_v21  ;;  %v7626_v21 = vld [vmem:[#allocation12_spill] sm:$0xff] }
 0x1b9   : > { %v1452_v41 = vpop.f32.mrf.mxu2  ;;  %v1759_v5 = vpop.f32.mrf.mxu3 }
 0x1ba   : > { %v1813_v38 = vadd.f32 %v1759_v5, %v1503_v49  ;;  %v982_v51 = vpop.f32.mrf.mxu1 }
 0x1bb   : > { %v983_v9 = vadd.f32 %v982_v51, %v7621_v6  ;;  %v7630_v6 = vld [vmem:[#allocation31_spill] sm:$0xff] }
 0x1bc   : > { %v6487_v47 = vadd.f32 %v6367_v0, %v1813_v38  ;;  %4458 = vmatmul.msk.f32.gmra.mxu1 %vm593_vm0, %v7622_v56  ;;  %4495 = vmatmul.msk.f32.gmra.mxu2 %vm593_vm0, %v7623_v39  ;;  %v2729_v0 = vld [vmem:[%s4837_s20 + $0x59] sm:$0xff]  ;;  %v7632_v56 = vld [vmem:[#allocation64_spill] sm:$0xff] }
 0x1bd   : > { %v6482_v57 = vpop.f32.mrf.mxu0  ;;  %4573 = vmatmul.msk.f32.gmra.mxu0 %vm593_vm0, %v7624_v27  ;;  %v1504_v53 = vadd.f32 %v1452_v41, %v983_v9  ;;  %v7629_v38 = vld [vmem:[#allocation46_spill] sm:$0xff]  ;;  %v7631_v9 = vld [vmem:[#allocation35_spill] sm:$0xff] }
 0x1be   : > { %4530 = vmatmul.msk.f32.gmra.mxu3 %vm593_vm0, %v2728_v25 }
 0x1c1   : > { %v1455_v62 = vpop.f32.mrf.mxu2  ;;  %v1762_v50 = vpop.f32.mrf.mxu3 }
 0x1c2   : > { %v1814_v33 = vadd.f32 %v1762_v50, %v1504_v53  ;;  %v985_v17 = vpop.f32.mrf.mxu1 }
 0x1c3   : > { %v986_v22 = vadd.f32 %v985_v17, %v7625_v18 }
 0x1c4   : > { %v6501_v60 = vadd.f32 %v6384_v13, %v1814_v33  ;;  %4459 = vmatmul.msk.f32.gmra.mxu1 %vm593_vm0, %v7626_v21  ;;  %4496 = vmatmul.msk.f32.gmra.mxu2 %vm593_vm0, %v7627_v40  ;;  %v2730_v13 = vld [vmem:[%s4837_s20 + $0x61] sm:$0xff]  ;;  %v2731_v33 = vld [vmem:[%s4837_s20 + $0x69] sm:$0xff]  ;;  %v7636_v40 = vld [vmem:[#allocation41_spill] sm:$0xff] }
 0x1c5   : > { %v6496_v20 = vpop.f32.mrf.mxu0  ;;  %4574 = vmatmul.msk.f32.gmra.mxu0 %vm593_vm0, %v7628_v4  ;;  %v1505_v7 = vadd.f32 %v1455_v62, %v986_v22  ;;  %v7634_v22 = vld [vmem:[#allocation36_spill] sm:$0xff] }
 0x1c6   : > { %4531 = vmatmul.msk.f32.gmra.mxu3 %vm593_vm0, %v2729_v0  ;;  %v7635_v21 = vld [vmem:[#allocation44_spill] sm:$0xff] }
 0x1c9   : > { %v1458_v15 = vpop.f32.mrf.mxu2  ;;  %v1765_v8 = vpop.f32.mrf.mxu3 }
 0x1ca   : > { %v1815_v41 = vadd.f32 %v1765_v8, %v1505_v7  ;;  %v988_v49 = vpop.f32.mrf.mxu1 }
 0x1cb   : > { %v989_v51 = vadd.f32 %v988_v49, %v7629_v38  ;;  %v7637_v49 = vld [vmem:[#allocation66_spill] sm:$0xff] }
 0x1cc   : > { %v6515_v25 = vadd.f32 %v6398_v23, %v1815_v41  ;;  %4460 = vmatmul.msk.f32.gmra.mxu1 %vm593_vm0, %v7630_v6  ;;  %4497 = vmatmul.msk.f32.gmra.mxu2 %vm593_vm0, %v7631_v9  ;;  %v7633_v23 = vld [vmem:[#allocation53_spill] sm:$0xff]  ;;  %v7640_v9 = vld [vmem:[#allocation72_spill] sm:$0xff] }
 0x1cd   : > { %v6510_v5 = vpop.f32.mrf.mxu0  ;;  %4575 = vmatmul.msk.f32.gmra.mxu0 %vm593_vm0, %v7632_v56  ;;  %v1506_v27 = vadd.f32 %v1458_v15, %v989_v51  ;;  %v2732_v41 = vld [vmem:[%s4837_s20 + $0x71] sm:$0xff] }
 0x1ce   : > { %4532 = vmatmul.msk.f32.gmra.mxu3 %vm593_vm0, %v2730_v13  ;;  %v7638_v51 = vld [vmem:[#allocation20_spill] sm:$0xff]  ;;  %v7639_v6 = vld [vmem:[#allocation25_spill] sm:$0xff] }
 0x1d1   : > { %v1461_v39 = vpop.f32.mrf.mxu2  ;;  %v1768_v62 = vpop.f32.mrf.mxu3 }
 0x1d2   : > { %v1816_v53 = vadd.f32 %v1768_v62, %v1506_v27  ;;  %v991_v50 = vpop.f32.mrf.mxu1 }
 0x1d3   : > { %v992_v17 = vadd.f32 %v991_v50, %v7633_v23  ;;  %v2733_v50 = vld [vmem:[%s4837_s20 + $0x79] sm:$0xff] }
 0x1d4   : > { %v6527_v0 = vadd.f32 %v6412_v30, %v1816_v53  ;;  %4461 = vmatmul.msk.f32.gmra.mxu1 %vm593_vm0, %v7634_v22  ;;  %4498 = vmatmul.msk.f32.gmra.mxu2 %vm593_vm0, %v7635_v21  ;;  %v7642_v22 = vld [vmem:[#allocation42_spill] sm:$0xff]  ;;  %v7643_v21 = vld [vmem:[#allocation49_spill] sm:$0xff] }
 0x1d5   : > { %v6529_v18 = vpop.f32.mrf.mxu0  ;;  %4576 = vmatmul.msk.f32.gmra.mxu0 %vm593_vm0, %v7636_v40  ;;  %v1507_v15 = vadd.f32 %v1461_v39, %v992_v17  ;;  %v7644_v40 = vld [vmem:[#allocation81_spill] sm:$0xff] }
 0x1d6   : > { %4533 = vmatmul.msk.f32.gmra.mxu3 %vm593_vm0, %v2731_v33  ;;  %v7641_v33 = vld [vmem:[#allocation75_spill] sm:$0xff] }
 0x1d9   : > { %v1464_v4 = vpop.f32.mrf.mxu2  ;;  %v1771_v7 = vpop.f32.mrf.mxu3 }
 0x1da   : > { %v1817_v8 = vadd.f32 %v1771_v7, %v1507_v15  ;;  %v994_v30 = vpop.f32.mrf.mxu1 }
 0x1db   : > { %v995_v13 = vadd.f32 %v994_v30, %v7637_v49  ;;  %v7645_v49 = vld [vmem:[#allocation84_spill] sm:$0xff] }
 0x1dc   : > { %v6541_v38 = vadd.f32 %v6426_v48, %v1817_v8  ;;  %4462 = vmatmul.msk.f32.gmra.mxu1 %vm593_vm0, %v7638_v51  ;;  %4499 = vmatmul.msk.f32.gmra.mxu2 %vm593_vm0, %v7639_v6  ;;  %v7646_v6 = vld [vmem:[#allocation50_spill] sm:$0xff] }
 0x1dd   : > { %4577 = vmatmul.msk.f32.gmra.mxu0 %vm593_vm0, %v7640_v9  ;;  %v6550_v56 = vpop.f32.mrf.mxu0  ;;  %v1508_v27 = vadd.f32 %v1464_v4, %v995_v13  ;;  %v7647_v9 = vld [vmem:[#allocation59_spill] sm:$0xff] }
 0x1de   : > { %4534 = vmatmul.msk.f32.gmra.mxu3 %vm593_vm0, %v2732_v41  ;;  %v2734_v41 = vld [vmem:[%s4837_s20 + $0x81] sm:$0xff] }
 0x1e1   : > { %v1467_v39 = vpop.f32.mrf.mxu2  ;;  %v1774_v62 = vpop.f32.mrf.mxu3 }
 0x1e2   : > { %v1818_v53 = vadd.f32 %v1774_v62, %v1508_v27  ;;  %v997_v48 = vpop.f32.mrf.mxu1 }
 0x1e3   : > { %v998_v23 = vadd.f32 %v997_v48, %v7641_v33 }
 0x1e4   : > { %v6555_v17 = vadd.f32 %v6440_v26, %v1818_v53  ;;  %4463 = vmatmul.msk.f32.gmra.mxu1 %vm593_vm0, %v7642_v22  ;;  %4500 = vmatmul.msk.f32.gmra.mxu2 %vm593_vm0, %v7643_v21 }
 0x1e5   : > { %4578 = vmatmul.msk.f32.gmra.mxu0 %vm593_vm0, %v7644_v40  ;;  %v1509_v15 = vadd.f32 %v1467_v39, %v998_v23  ;;  %v6564_v7 = vpop.f32.mrf.mxu0  ;;  %v7648_v39 = vld [vmem:[#allocation55_spill] sm:$0xff]  ;;  %v7649_v23 = vld [vmem:[#allocation98_spill] sm:$0xff]  ;;  %v7651_v40 = vld [vmem:[#allocation29_spill] sm:$0xff] }
 0x1e6   : > { %4535 = vmatmul.msk.f32.gmra.mxu3 %vm593_vm0, %v2733_v50 }
 0x1e9   : > { %v1470_v4 = vpop.f32.mrf.mxu2  ;;  %v1777_v8 = vpop.f32.mrf.mxu3 }
 0x1ea   : > { %v1819_v30 = vadd.f32 %v1777_v8, %v1509_v15  ;;  %v1000_v26 = vpop.f32.mrf.mxu1  ;;  %v7652_v15 = vld [vmem:[#allocation34_spill] sm:$0xff] }
 0x1eb   : > { %v1001_v13 = vadd.f32 %v1000_v26, %v7645_v49 }
 0x1ec   : > { %v6569_v51 = vadd.f32 %v6454_v45, %v1819_v30  ;;  %4464 = vmatmul.msk.f32.gmra.mxu1 %vm593_vm0, %v7646_v6  ;;  %4501 = vmatmul.msk.f32.gmra.mxu2 %vm593_vm0, %v7647_v9  ;;  %v2735_v45 = vld [vmem:[%s4837_s20 + $0x89] sm:$0xff] }
 0x1ed   : > { %4579 = vmatmul.msk.f32.gmra.mxu0 %vm593_vm0, %v7648_v39  ;;  %v1510_v62 = vadd.f32 %v1470_v4, %v1001_v13  ;;  %v6578_v33 = vpop.f32.mrf.mxu0  ;;  %v7653_v4 = vld [vmem:[#allocation89_spill] sm:$0xff] }
 0x1ee   : > { %4536 = vmatmul.msk.f32.gmra.mxu3 %vm593_vm0, %v2734_v41  ;;  %v2736_v13 = vld [vmem:[%s4837_s20 + $0x91] sm:$0xff] }
 0x1f1   : > { %v1473_v27 = vpop.f32.mrf.mxu2  ;;  %v1780_v53 = vpop.f32.mrf.mxu3 }
 0x1f2   : > { %v1820_v48 = vadd.f32 %v1780_v53, %v1510_v62  ;;  %v1003_v50 = vpop.f32.mrf.mxu1  ;;  %v7656_v62 = vld [vmem:[#allocation57_spill] sm:$0xff]  ;;  %v7657_v53 = vld [vmem:[#allocation62_spill] sm:$0xff] }
 0x1f3   : > { %v1004_v22 = vadd.f32 %v1003_v50, %v7649_v23 }
 0x1f4   : > { %v6583_v21 = vadd.f32 %v6468_v11, %v1820_v48  ;;  %4465 = vmatmul.msk.f32.gmra.mxu1 %vm593_vm0, %v7651_v40  ;;  %4502 = vmatmul.msk.f32.gmra.mxu2 %vm593_vm0, %v7652_v15  ;;  %v7654_v11 = vld [vmem:[#allocation108_spill] sm:$0xff]  ;;  %v7659_v40 = vld [vmem:[#allocation119_spill] sm:$0xff] }
 0x1f5   : > { %4580 = vmatmul.msk.f32.gmra.mxu0 %vm593_vm0, %v7653_v4  ;;  %v1511_v30 = vadd.f32 %v1473_v27, %v1004_v22  ;;  %v6597_v39 = vpop.f32.mrf.mxu0  ;;  %v7658_v27 = vld [vmem:[#allocation99_spill] sm:$0xff]  ;;  %v2737_v22 = vld [vmem:[%s4837_s20 + $0x99] sm:$0xff] }
 0x1f6   : > { %7650 = vst [vmem:[#allocation68_spill] sm:$0xff] %v6583_v21  ;;  %4537 = vmatmul.msk.f32.gmra.mxu3 %vm593_vm0, %v2735_v45 }
 0x1f9   : > { %v1476_v8 = vpop.f32.mrf.mxu2  ;;  %v1783_v26 = vpop.f32.mrf.mxu3 }
 0x1fa   : > { %v1821_v41 = vadd.f32 %v1783_v26, %v1511_v30  ;;  %v1006_v49 = vpop.f32.mrf.mxu1  ;;  %v7661_v30 = vld [vmem:[#allocation63_spill] sm:$0xff]  ;;  %v7662_v26 = vld [vmem:[#allocation73_spill] sm:$0xff] }
 0x1fb   : > { %v1007_v6 = vadd.f32 %v1006_v49, %v7654_v11 }
 0x1fc   : > { %v6595_v9 = vadd.f32 %v6482_v57, %v1821_v41  ;;  %4466 = vmatmul.msk.f32.gmra.mxu1 %vm593_vm0, %v7656_v62  ;;  %4503 = vmatmul.msk.f32.gmra.mxu2 %vm593_vm0, %v7657_v53  ;;  %v7663_v41 = vld [vmem:[#allocation70_spill] sm:$0xff] }
 0x1fd   : > { %4581 = vmatmul.msk.f32.gmra.mxu0 %vm593_vm0, %v7658_v27  ;;  %v1512_v50 = vadd.f32 %v1476_v8, %v1007_v6  ;;  %v6618_v8 = vpop.f32.mrf.mxu0  ;;  %v2738_v62 = vld [vmem:[%s4837_s20 + $0xa1] sm:$0xff] }
 0x1fe   : > { %7655 = vst [vmem:[#allocation94_spill] sm:$0xff] %v6595_v9  ;;  %4538 = vmatmul.msk.f32.gmra.mxu3 %vm593_vm0, %v2736_v13 }
 0x201   : > { %v1479_v48 = vpop.f32.mrf.mxu2  ;;  %v1786_v45 = vpop.f32.mrf.mxu3 }
 0x202   : > { %v1822_v23 = vadd.f32 %v1786_v45, %v1512_v50  ;;  %v1009_v57 = vpop.f32.mrf.mxu1  ;;  %v7665_v50 = vld [vmem:[#allocation40_spill] sm:$0xff] }
 0x203   : > { %v1010_v15 = vadd.f32 %v1009_v57, %v7659_v40  ;;  %v7666_v45 = vld [vmem:[#allocation48_spill] sm:$0xff] }
 0x204   : > { %v6609_v4 = vadd.f32 %v6496_v20, %v1822_v23  ;;  %4467 = vmatmul.msk.f32.gmra.mxu1 %vm593_vm0, %v7661_v30  ;;  %4504 = vmatmul.msk.f32.gmra.mxu2 %vm593_vm0, %v7662_v26  ;;  %v2739_v30 = vld [vmem:[%s4837_s20 + $0xa9] sm:$0xff] }
 0x205   : > { %4582 = vmatmul.msk.f32.gmra.mxu0 %vm593_vm0, %v7663_v41  ;;  %v1513_v49 = vadd.f32 %v1479_v48, %v1010_v15  ;;  %v7667_v48 = vld [vmem:[#allocation106_spill] sm:$0xff] }
 0x206   : > { %7660 = vst [vmem:[#allocation56_spill] sm:$0xff] %v6609_v4  ;;  %4539 = vmatmul.msk.f32.gmra.mxu3 %vm593_vm0, %v2737_v22  ;;  %v6632_v22 = vpop.f32.mrf.mxu0 }
 0x209   : > { %v2594_v13 = vpop.f32.mrf.mxu2  ;;  %v1789_v11 = vpop.f32.mrf.mxu3 }
 0x20a   : > { %v1823_v6 = vadd.f32 %v1789_v11, %v1513_v49  ;;  %v2284_v20 = vpop.f32.mrf.mxu1  ;;  %v7668_v49 = vld [vmem:[#allocation71_spill] sm:$0xff] }
 0x20b   : > { %v2380_v53 = vadd.f32 %v2284_v20, %v6118_v52 }
 0x20c   : > { %v6623_v27 = vadd.f32 %v6510_v5, %v1823_v6  ;;  %4468 = vmatmul.msk.f32.gmra.mxu1 %vm593_vm0, %v7665_v50  ;;  %4505 = vmatmul.msk.f32.gmra.mxu2 %vm593_vm0, %v7666_v45  ;;  %v6637_v5 = vld [vmem:[%s7406_s2] ss:$0 sm:$0xff] }
 0x20d   : > { %4583 = vmatmul.msk.f32.gmra.mxu0 %vm593_vm0, %v7667_v48  ;;  %v2690_v57 = vadd.f32 %v2594_v13, %v2380_v53  ;;  %v7669_v13 = vld [vmem:[#allocation79_spill] sm:$0xff]  ;;  %v7670_v6 = vld [vmem:[#allocation118_spill] sm:$0xff] }
 0x20e   : > { %7664 = vst [vmem:[#allocation85_spill] sm:$0xff] %v6623_v27  ;;  %4540 = vmatmul.msk.f32.gmra.mxu3 %vm593_vm0, %v2738_v62  ;;  %v6653_v48 = vpop.f32.mrf.mxu0  ;;  %v4749_v27 = vld [vmem:[%s4837_s20 + $0x102] sm:$0xff] }
 0x20f   : > { %v3060_v4 = vmul.f32 %v4749_v27, %v7579_v42  ;;  %v7680_v27 = vld [vmem:[#allocation97_spill] sm:$0xff] }
 0x211   : > { %v2597_v23 = vpop.f32.mrf.mxu2  ;;  %v2872_v40 = vpop.f32.mrf.mxu3 }
 0x212   : > { %v2968_v52 = vadd.f32 %v2872_v40, %v2690_v57  ;;  %v2287_v15 = vpop.f32.mrf.mxu1  ;;  %v2740_v57 = vld [vmem:[%s4837_s20 + $0xb1] sm:$0xff] }
 0x213   : > { %v2381_v41 = vadd.f32 %v2287_v15, %v6150_v44  ;;  %v7671_v15 = vld [vmem:[#allocation80_spill] sm:$0xff] }
 0x214   : > { %v3278_v26 = vadd.f32 %v6529_v18, %v2968_v52  ;;  %4469 = vmatmul.msk.f32.gmra.mxu1 %vm593_vm0, %v7668_v49  ;;  %4506 = vmatmul.msk.f32.gmra.mxu2 %vm593_vm0, %v7669_v13 }
 0x215   : > { %4584 = vmatmul.msk.f32.gmra.mxu0 %vm593_vm0, %v7670_v6  ;;  %v2691_v18 = vadd.f32 %v2597_v23, %v2381_v41 }
 0x216   : > { %v6647_v11 = vadd.f32 %v6637_v5, %v3278_v26  ;;  %4541 = vmatmul.msk.f32.gmra.mxu3 %vm593_vm0, %v2739_v30  ;;  %v7672_v30 = vld [vmem:[#allocation90_spill] sm:$0xff]  ;;  %v7673_v26 = vld [vmem:[#allocation87_spill] sm:$0xff] }
 0x218   : > { %v3346_v20 = vsub.f32 0.0, %v6647_v11 }
 0x219   : > { %v2600_v62 = vpop.f32.mrf.mxu2  ;;  %v2875_v53 = vpop.f32.mrf.mxu3 }
 0x21a   : > { %v3378_v44 = vmul.f32 1.442695, %v3346_v20  ;;  %v2969_v50 = vadd.f32 %v2875_v53, %v2691_v18  ;;  %v2290_v45 = vpop.f32.mrf.mxu1 }
 0x21b   : > { %v2382_v52 = vadd.f32 %v2290_v45, %v6173_v24 }
 0x21c   : > { %4621 = vpow2.f32 %v3378_v44  ;;  %v3279_v40 = vadd.f32 %v6550_v56, %v2969_v50  ;;  %4470 = vmatmul.msk.f32.gmra.mxu1 %vm593_vm0, %v7671_v15  ;;  %4507 = vmatmul.msk.f32.gmra.mxu2 %vm593_vm0, %v7672_v30  ;;  %v2741_v44 = vld [vmem:[%s4837_s20 + $0xb9] sm:$0xff]  ;;  %v7676_v15 = vld [vmem:[#allocation124_spill] sm:$0xff] }
 0x21d   : > { %4585 = vmatmul.msk.f32.gmra.mxu0 %vm593_vm0, %v7673_v26  ;;  %v2692_v49 = vadd.f32 %v2600_v62, %v2382_v52  ;;  %v7675_v62 = vld [vmem:[#allocation61_spill] sm:$0xff] }
 0x21e   : > { %v6663_v23 = vadd.f32 %v6637_v5, %v3279_v40  ;;  %4542 = vmatmul.msk.f32.gmra.mxu3 %vm593_vm0, %v2740_v57  ;;  %v6672_v57 = vpop.f32.mrf.mxu0  ;;  %v7674_v40 = vld [vmem:[#allocation54_spill] sm:$0xff] }
 0x220   : > { %v3347_v41 = vsub.f32 0.0, %v6663_v23 }
 0x221   : > { %v2603_v56 = vpop.f32.mrf.mxu2  ;;  %v2878_v13 = vpop.f32.mrf.mxu3 }
 0x222   : > { %v4622_v24 = vpop.eup %4621  ;;  %v3380_v6 = vmul.f32 1.442695, %v3347_v41  ;;  %v2970_v20 = vadd.f32 %v2878_v13, %v2692_v49  ;;  %v2293_v18 = vpop.f32.mrf.mxu1 }
 0x223   : > { %v3442_v53 = vadd.f32 1.0, %v4622_v24  ;;  %v2383_v45 = vadd.f32 %v2293_v18, %v6193_v2  ;;  %v2742_v18 = vld [vmem:[%s4837_s20 + $0xc1] sm:$0xff] }
 0x224   : > { %4623 = vpow2.f32 %v3380_v6  ;;  %v3280_v50 = vadd.f32 %v6564_v7, %v2970_v20  ;;  %4471 = vmatmul.msk.f32.gmra.mxu1 %vm593_vm0, %v7674_v40  ;;  %4508 = vmatmul.msk.f32.gmra.mxu2 %vm593_vm0, %v7675_v62  ;;  %v7677_v62 = vld [vmem:[#allocation88_spill] sm:$0xff] }
 0x225   : > { %4625 = vrcp.f32 %v3442_v53  ;;  %4586 = vmatmul.msk.f32.gmra.mxu0 %vm593_vm0, %v7676_v15  ;;  %v2693_v30 = vadd.f32 %v2603_v56, %v2383_v45  ;;  %v7678_v56 = vld [vmem:[#allocation96_spill] sm:$0xff]  ;;  %vm3479_vm2 = vweird.f32 %v3442_v53 }
 0x226   : > { %v6679_v52 = vadd.f32 %v6637_v5, %v3280_v50  ;;  %4543 = vmatmul.msk.f32.gmra.mxu3 %vm593_vm0, %v2741_v44 }
 0x228   : > { %v3348_v2 = vsub.f32 0.0, %v6679_v52 }
 0x229   : > { %v2606_v7 = vpop.f32.mrf.mxu2  ;;  %v2881_v26 = vpop.f32.mrf.mxu3 }
 0x22a   : > { %v4624_v41 = vpop.eup %4623  ;;  %v3382_v49 = vmul.f32 1.442695, %v3348_v2  ;;  %v2971_v13 = vadd.f32 %v2881_v26, %v2693_v30  ;;  %v2296_v24 = vpop.f32.mrf.mxu1  ;;  %v7679_v2 = vld [vmem:[#allocation128_spill] sm:$0xff] }
 0x22b   : > { %v4626_v6 = vpop.eup %4625  ;;  %v6685_v20 = vadd.f32 1.0, %v4624_v41  ;;  %v2384_v40 = vadd.f32 %v2296_v24, %v6216_v3  ;;  %v3485_v3 = vand.u32 2147483648, %v3442_v53  ;;  %v6701_v30 = vpop.f32.mrf.mxu0 }
 0x22c   : > { %v3475_v50 = vmul.f32 %v4626_v6, %v3442_v53  ;;  %4627 = vpow2.f32 %v3382_v49  ;;  %v3281_v44 = vadd.f32 %v6578_v33, %v2971_v13  ;;  %4472 = vmatmul.msk.f32.gmra.mxu1 %vm593_vm0, %v7677_v62  ;;  %4509 = vmatmul.msk.f32.gmra.mxu2 %vm593_vm0, %v7678_v56  ;;  %v3483_v33 = vand.u32 2147483647, %v3442_v53 }
 0x22d   : > { %4629 = vrcp.f32 %v6685_v20  ;;  %4587 = vmatmul.msk.f32.gmra.mxu0 %vm593_vm0, %v7679_v2  ;;  %vm3480_vm1 = vweird.f32 %v4626_v6  ;;  %v2694_v13 = vadd.f32 %v2606_v7, %v2384_v40  ;;  %v2743_v7 = vld [vmem:[%s4837_s20 + $0xc9] sm:$0xff]  ;;  %vm3493_vm6 = vweird.f32 %v6685_v20 }
 0x22e   : > { %v3476_v45 = vsub.f32 1.0, %v3475_v50  ;;  %v6696_v15 = vadd.f32 %v6637_v5, %v3281_v44  ;;  %4544 = vmatmul.msk.f32.gmra.mxu3 %vm593_vm0, %v2742_v18  ;;  %vm3481_vm3 = vmor %vm3479_vm2, %vm3480_vm1  ;;  %vm3484_vm4 = vcmp.eq.f32.partialorder %v3483_v33, 8.507059e+37  ;;  %v7681_v33 = vld [vmem:[#allocation107_spill] sm:$0xff] }
 0x230   : > { %v3477_v26 = vmul.f32 %v4626_v6, %v3476_v45  ;;  %v3349_v41 = vsub.f32 0.0, %v6696_v15  ;;  %v3486_v45 = vor.u32 1.1754944e-38, %v3485_v3 }
 0x231   : > { %v2609_v49 = vpop.f32.mrf.mxu2  ;;  %v2884_v24 = vpop.f32.mrf.mxu3 }
 0x232   : > { %v4628_v50 = vpop.eup %4627  ;;  %v3478_v44 = vadd.f32 %v4626_v6, %v3477_v26  ;;  %v3384_v18 = vmul.f32 1.442695, %v3349_v41  ;;  %v2972_v62 = vadd.f32 %v2884_v24, %v2694_v13  ;;  %v2299_v56 = vpop.f32.mrf.mxu1  ;;  %v3497_v26 = vand.u32 2147483647, %v6685_v20 }
 0x233   : > { %v4630_v2 = vpop.eup %4629  ;;  %v6708_v9 = vadd.f32 1.0, %v4628_v50  ;;  %v2385_v53 = vadd.f32 %v2299_v56, %v6236_v16  ;;  %v3499_v41 = vand.u32 2147483648, %v6685_v20 }
 0x234   : > { %v3482_v40 = vsel %vm3481_vm3, %v4626_v6, %v3478_v44  ;;  %v3489_v21 = vmul.f32 %v4630_v2, %v6685_v20  ;;  %4631 = vpow2.f32 %v3384_v18  ;;  %4473 = vmatmul.msk.f32.gmra.mxu1 %vm593_vm0, %v7680_v27  ;;  %4510 = vmatmul.msk.f32.gmra.mxu2 %vm593_vm0, %v7681_v33  ;;  %v3282_v16 = vadd.f32 %v6597_v39, %v2972_v62  ;;  %v6731_v44 = vpop.f32.mrf.mxu0  ;;  %v4750_v18 = vld [vmem:[%s4837_s20 + $0x10a] sm:$0xff] }
 0x235   : > { %v3487_v42 = vsel %vm3484_vm4, %v3486_v45, %v3482_v40  ;;  %4633 = vrcp.f32 %v6708_v9  ;;  %4588 = vmatmul.msk.f32.gmra.mxu0 %vm593_vm0, %v3060_v4  ;;  %vm3494_vm5 = vweird.f32 %v4630_v2  ;;  %v2695_v50 = vadd.f32 %v2609_v49, %v2385_v53 }
 0x236   : > { %v3922_v6 = vmul.f32 %v3487_v42, %v6647_v11  ;;  %v3490_v3 = vsub.f32 1.0, %v3489_v21  ;;  %4545 = vmatmul.msk.f32.gmra.mxu3 %vm593_vm0, %v2743_v7  ;;  %v6734_v21 = vadd.f32 %v6637_v5, %v3282_v16  ;;  %v3061_v4 = vmul.f32 %v4750_v18, %v6127_v12  ;;  %vm3495_vm7 = vmor %vm3493_vm6, %vm3494_vm5  ;;  %v2744_v42 = vld [vmem:[%s4837_s20 + $0xd1] sm:$0xff] }
 0x237   : > { %vm3498_vm8 = vcmp.eq.f32.partialorder %v3497_v26, 8.507059e+37  ;;  %v3500_v49 = vor.u32 1.1754944e-38, %v3499_v41  ;;  %v3511_v16 = vand.u32 2147483647, %v6708_v9  ;;  %v7682_v26 = vld [vmem:[#allocation69_spill] sm:$0xff]  ;;  %v7683_v41 = vld [vmem:[#allocation78_spill] sm:$0xff]  ;;  %vm3507_vm10 = vweird.f32 %v6708_v9 }
 0x238   : > { %3954 = vst.msk [vmem:[%s6716_s11] sm:$0xff] %vm593_vm0, %v3922_v6  ;;  %v3491_v13 = vmul.f32 %v4630_v2, %v3490_v3  ;;  %v3350_v53 = vsub.f32 0.0, %v6734_v21  ;;  %v3030_v18 = vld [vmem:[%s4837_s20 + $0x112] sm:$0xff] }
 0x239   : > { %v2612_v24 = vpop.f32.mrf.mxu2  ;;  %v2887_v39 = vpop.f32.mrf.mxu3  ;;  %vm3512_vm12 = vcmp.eq.f32.partialorder %v3511_v16, 8.507059e+37 }
 0x23a   : > { %v4632_v11 = vpop.eup %4631  ;;  %v3492_v62 = vadd.f32 %v4630_v2, %v3491_v13  ;;  %v2973_v56 = vadd.f32 %v2887_v39, %v2695_v50  ;;  %v2302_v45 = vpop.f32.mrf.mxu1  ;;  %v3513_v39 = vand.u32 2147483648, %v6708_v9 }
 0x23b   : > { %v4634_v7 = vpop.eup %4633  ;;  %v6739_v40 = vadd.f32 1.0, %v4632_v11  ;;  %v2386_v12 = vadd.f32 %v2302_v45, %v6253_v43  ;;  %v3986_v43 = vsel %vm593_vm0, %v3922_v6, 0.0 }
 0x23c   : > { %v3496_v27 = vsel %vm3495_vm7, %v4630_v2, %v3492_v62  ;;  %v3503_v33 = vmul.f32 %v4634_v7, %v6708_v9  ;;  %v3283_v3 = vadd.f32 %v6618_v8, %v2973_v56  ;;  %4474 = vmatmul.msk.f32.gmra.mxu1 %vm593_vm0, %v7682_v26  ;;  %4511 = vmatmul.msk.f32.gmra.mxu2 %vm593_vm0, %v7683_v41  ;;  %v3386_v8 = vmul.f32 1.442695, %v3350_v53 }
 0x23d   : > { %v3501_v20 = vsel %vm3498_vm8, %v3500_v49, %v3496_v27  ;;  %4635 = vrcp.f32 %v6739_v40  ;;  %v4057_v2 = vmul.f32 %v3922_v6, %v3922_v6  ;;  %4589 = vmatmul.msk.f32.gmra.mxu0 %vm593_vm0, %v3061_v4  ;;  %vm3508_vm9 = vweird.f32 %v4634_v7 }
 0x23e   : > { %v3923_v13 = vmul.f32 %v3501_v20, %v6663_v23  ;;  %v3504_v50 = vsub.f32 1.0, %v3503_v33  ;;  %4546 = vmatmul.msk.f32.gmra.mxu3 %vm593_vm0, %v2744_v42  ;;  %v6758_v11 = vadd.f32 %v6637_v5, %v3283_v3  ;;  %v2696_v49 = vadd.f32 %v2612_v24, %v2386_v12  ;;  %vm3509_vm11 = vmor %vm3507_vm10, %vm3508_vm9  ;;  %v6770_v12 = vpop.f32.mrf.mxu0 }
 0x23f   : > { %4637 = vpow2.f32 %v3386_v8  ;;  %v4089_v42 = vsel %vm593_vm0, %v4057_v2, 0.0  ;;  %v3062_v41 = vmul.f32 %v3030_v18, %v6157_v19  ;;  %v3514_v9 = vor.u32 1.1754944e-38, %v3513_v39  ;;  %v7685_v19 = vld [vmem:[#allocation116_spill] sm:$0xff]  ;;  %v3031_v39 = vld [vmem:[%s4837_s20 + $0x11a] sm:$0xff] }
 0x240   : > { %3955 = vst.msk [vmem:[%s6716_s11 + $0x8] sm:$0xff] %vm593_vm0, %v3923_v13  ;;  %v3987_v62 = vsel %vm593_vm0, %v3923_v13, 0.0  ;;  %v4058_v23 = vmul.f32 %v3923_v13, %v3923_v13  ;;  %v3505_v56 = vmul.f32 %v4634_v7, %v3504_v50  ;;  %v3351_v6 = vsub.f32 0.0, %v6758_v11  ;;  %v2745_v50 = vld [vmem:[%s4837_s20 + $0xd9] sm:$0xff] }
 0x241   : > { %v2615_v45 = vpop.f32.mrf.mxu2  ;;  %v3988_v53 = vadd.f32 %v3987_v62, %v3986_v43  ;;  %v2890_v4 = vpop.f32.mrf.mxu3  ;;  %vm3521_vm14 = vweird.f32 %v6739_v40 }
 0x242   : > { %v4090_v27 = vsel %vm593_vm0, %v4058_v23, 0.0  ;;  %v3506_v33 = vadd.f32 %v4634_v7, %v3505_v56  ;;  %v2974_v3 = vadd.f32 %v2890_v4, %v2696_v49  ;;  %v2305_v20 = vpop.f32.mrf.mxu1  ;;  %v3388_v13 = vmul.f32 1.442695, %v3351_v6  ;;  %v7684_v23 = vld [vmem:[#allocation105_spill] sm:$0xff] }
 0x243   : > { %v4636_v26 = vpop.eup %4635  ;;  %v4091_v24 = vadd.f32 %v4090_v27, %v4089_v42  ;;  %v2387_v16 = vadd.f32 %v2305_v20, %v6270_v55  ;;  %v3525_v49 = vand.u32 2147483647, %v6739_v40  ;;  %v3527_v6 = vand.u32 2147483648, %v6739_v40 }
 0x244   : > { %v3510_v8 = vsel %vm3509_vm11, %v4634_v7, %v3506_v33  ;;  %v3517_v2 = vmul.f32 %v4636_v26, %v6739_v40  ;;  %v3284_v43 = vadd.f32 %v6632_v22, %v2974_v3  ;;  %4639 = vpow2.f32 %v3388_v13  ;;  %4475 = vmatmul.msk.f32.gmra.mxu1 %vm593_vm0, %v7684_v23  ;;  %4512 = vmatmul.msk.f32.gmra.mxu2 %vm593_vm0, %v7685_v19 }
 0x245   : > { %v3515_v62 = vsel %vm3512_vm12, %v3514_v9, %v3510_v8  ;;  %4590 = vmatmul.msk.f32.gmra.mxu0 %vm593_vm0, %v3062_v41  ;;  %v4638_v22 = vpop.eup %4637  ;;  %vm3522_vm13 = vweird.f32 %v4636_v26  ;;  %v3063_v55 = vmul.f32 %v3031_v39, %v7590_v59  ;;  %vm3526_vm1 = vcmp.eq.f32.partialorder %v3525_v49, 8.507059e+37 }
 0x246   : > { %v3924_v18 = vmul.f32 %v3515_v62, %v6679_v52  ;;  %v3518_v56 = vsub.f32 1.0, %v3517_v2  ;;  %v6782_v7 = vadd.f32 %v6637_v5, %v3284_v43  ;;  %4547 = vmatmul.msk.f32.gmra.mxu3 %vm593_vm0, %v2745_v50  ;;  %v6792_v27 = vadd.f32 1.0, %v4638_v22  ;;  %vm3523_vm15 = vmor %vm3521_vm14, %vm3522_vm13 }
 0x247   : > { %v2697_v50 = vadd.f32 %v2615_v45, %v2387_v16  ;;  %v3528_v59 = vor.u32 1.1754944e-38, %v3527_v6  ;;  %v7686_v45 = vld [vmem:[#allocation117_spill] sm:$0xff] }
 0x248   : > { %3956 = vst.msk [vmem:[%s6716_s11 + $0x10] sm:$0xff] %vm593_vm0, %v3924_v18  ;;  %v3989_v52 = vsel %vm593_vm0, %v3924_v18, 0.0  ;;  %v4059_v4 = vmul.f32 %v3924_v18, %v3924_v18  ;;  %v3519_v42 = vmul.f32 %v4636_v26, %v3518_v56  ;;  %v3352_v20 = vsub.f32 0.0, %v6782_v7  ;;  %v6804_v56 = vpop.f32.mrf.mxu0 }
 0x249   : > { %v2618_v33 = vpop.f32.mrf.mxu2  ;;  %v3990_v3 = vadd.f32 %v3989_v52, %v3988_v53  ;;  %v2893_v41 = vpop.f32.mrf.mxu3  ;;  %4641 = vrcp.f32 %v6792_v27  ;;  %v2746_v53 = vld [vmem:[%s4837_s20 + $0xe1] sm:$0xff]  ;;  %vm3535_vm3 = vweird.f32 %v6792_v27 }
 0x24a   : > { %v4092_v9 = vsel %vm593_vm0, %v4059_v4, 0.0  ;;  %v3520_v13 = vadd.f32 %v4636_v26, %v3519_v42  ;;  %v2308_v8 = vpop.f32.mrf.mxu1  ;;  %v4640_v2 = vpop.eup %4639  ;;  %v3390_v62 = vmul.f32 1.442695, %v3352_v20  ;;  %v2975_v19 = vadd.f32 %v2893_v41, %v2697_v50 }
 0x24b   : > { %v4093_v43 = vadd.f32 %v4092_v9, %v4091_v24  ;;  %v6801_v23 = vadd.f32 1.0, %v4640_v2  ;;  %v2388_v39 = vadd.f32 %v2308_v8, %v6286_v31  ;;  %v7687_v24 = vld [vmem:[#allocation125_spill] sm:$0xff]  ;;  %v3539_v42 = vand.u32 2147483647, %v6792_v27 }
 0x24c   : > { %v3524_v40 = vsel %vm3523_vm15, %v4636_v26, %v3520_v13  ;;  %4643 = vpow2.f32 %v3390_v62  ;;  %4476 = vmatmul.msk.f32.gmra.mxu1 %vm593_vm0, %v7686_v45  ;;  %4513 = vmatmul.msk.f32.gmra.mxu2 %vm593_vm0, %v7687_v24  ;;  %v3285_v31 = vadd.f32 %v6653_v48, %v2975_v19  ;;  %v3541_v48 = vand.u32 2147483648, %v6792_v27 }
 0x24d   : > { %v3529_v18 = vsel %vm3526_vm1, %v3528_v59, %v3524_v40  ;;  %4645 = vrcp.f32 %v6801_v23  ;;  %4591 = vmatmul.msk.f32.gmra.mxu0 %vm593_vm0, %v3063_v55  ;;  %v2698_v52 = vadd.f32 %v2618_v33, %v2388_v39  ;;  %vm6841_vm4 = vcmp.eq.f32.partialorder %v3539_v42, 8.507059e+37 }
 0x24e   : > { %v3925_v16 = vmul.f32 %v3529_v18, %v6696_v15  ;;  %4548 = vmatmul.msk.f32.gmra.mxu3 %vm593_vm0, %v2746_v53  ;;  %v6825_v41 = vadd.f32 %v6637_v5, %v3285_v31  ;;  %v7688_v18 = vld [vmem:[#allocation86_spill] sm:$0xff]  ;;  %v3542_v24 = vor.u32 1.1754944e-38, %v3541_v48  ;;  %vm3549_vm7 = vweird.f32 %v6801_v23 }
 0x24f   : > { %v4642_v26 = vpop.eup %4641 }
 0x250   : > { %3957 = vst.msk [vmem:[%s6716_s11 + $0x18] sm:$0xff] %vm593_vm0, %v3925_v16  ;;  %v3991_v22 = vsel %vm593_vm0, %v3925_v16, 0.0  ;;  %v4060_v49 = vmul.f32 %v3925_v16, %v3925_v16  ;;  %v3531_v15 = vmul.f32 %v4642_v26, %v6792_v27  ;;  %v3353_v62 = vsub.f32 0.0, %v6825_v41  ;;  %v6847_v16 = vpop.f32.mrf.mxu0 }
 0x251   : > { %v2621_v6 = vpop.f32.mrf.mxu2  ;;  %v6818_v4 = vadd.f32 %v3991_v22, %v3990_v3  ;;  %v2896_v20 = vpop.f32.mrf.mxu3  ;;  %v2747_v3 = vld [vmem:[%s4837_s20 + $0xe9] sm:$0xff]  ;;  %vm3536_vm2 = vweird.f32 %v4642_v26  ;;  %v3553_v27 = vand.u32 2147483647, %v6801_v23 }
 0x252   : > { %v4094_v55 = vsel %vm593_vm0, %v4060_v49, 0.0  ;;  %v2976_v9 = vadd.f32 %v2896_v20, %v2698_v52  ;;  %v2311_v13 = vpop.f32.mrf.mxu1  ;;  %v4644_v50 = vpop.eup %4643  ;;  %v3532_v33 = vsub.f32 1.0, %v3531_v15  ;;  %v3392_v31 = vmul.f32 1.442695, %v3353_v62  ;;  %vm3537_vm5 = vmor %vm3535_vm3, %vm3536_vm2 }
 0x253   : > { %v6827_v8 = vadd.f32 %v4094_v55, %v4093_v43  ;;  %v4646_v2 = vpop.eup %4645  ;;  %v6830_v59 = vadd.f32 1.0, %v4644_v50  ;;  %v2389_v40 = vadd.f32 %v2311_v13, %v6303_v34  ;;  %v7689_v43 = vld [vmem:[#allocation95_spill] sm:$0xff]  ;;  %v3555_v49 = vand.u32 2147483648, %v6801_v23 }
 0x254   : > { %v3286_v53 = vadd.f32 %v6672_v57, %v2976_v9  ;;  %v3533_v19 = vmul.f32 %v4642_v26, %v3532_v33  ;;  %v3545_v39 = vmul.f32 %v4646_v2, %v6801_v23  ;;  %4477 = vmatmul.msk.f32.gmra.mxu1 %vm593_vm0, %v7688_v18  ;;  %4514 = vmatmul.msk.f32.gmra.mxu2 %vm593_vm0, %v7689_v43  ;;  %vm3550_vm6 = vweird.f32 %v4646_v2  ;;  %v7692_v23 = vld [vmem:[#allocation123_spill] sm:$0xff] }
 0x255   : > { %4647 = vrcp.f32 %v6830_v59  ;;  %v2699_v15 = vadd.f32 %v2621_v6, %v2389_v40  ;;  %vm3551_vm8 = vmor %vm3549_vm7, %vm3550_vm6  ;;  %vm3554_vm9 = vcmp.eq.f32.partialorder %v3553_v27, 8.507059e+37  ;;  %v3567_v40 = vand.u32 2147483647, %v6830_v59 }
 0x256   : > { %4549 = vmatmul.msk.f32.gmra.mxu3 %vm593_vm0, %v2747_v3  ;;  %v3534_v34 = vadd.f32 %v4642_v26, %v3533_v19  ;;  %v3546_v57 = vsub.f32 1.0, %v3545_v39  ;;  %v6850_v22 = vadd.f32 %v6637_v5, %v3286_v53  ;;  %4649 = vpow2.f32 %v3392_v31  ;;  %v2748_v53 = vld [vmem:[%s4837_s20 + $0xf1] sm:$0xff] }
 0x257   : > { %vm3563_vm11 = vweird.f32 %v6830_v59  ;;  %vm3568_vm13 = vcmp.eq.f32.partialorder %v3567_v40, 8.507059e+37 }
 0x258   : > { %v3538_v42 = vsel %vm3537_vm5, %v4642_v26, %v3534_v34  ;;  %v3547_v20 = vmul.f32 %v4646_v2, %v3546_v57  ;;  %v3354_v55 = vsub.f32 0.0, %v6850_v22  ;;  %v3556_v26 = vor.u32 1.1754944e-38, %v3555_v49  ;;  %v7693_v57 = vld [vmem:[#allocation126_spill] sm:$0xff] }
 0x259   : > { %v2624_v52 = vpop.f32.mrf.mxu2  ;;  %v2899_v48 = vpop.f32.mrf.mxu3  ;;  %v3543_v9 = vsel %vm6841_vm4, %v3542_v24, %v3538_v42 }
 0x25a   : > { %v2977_v13 = vadd.f32 %v2899_v48, %v2699_v15  ;;  %v2314_v50 = vpop.f32.mrf.mxu1  ;;  %v3926_v33 = vmul.f32 %v3543_v9, %v6734_v21  ;;  %v3548_v3 = vadd.f32 %v4646_v2, %v3547_v20  ;;  %v3394_v62 = vmul.f32 1.442695, %v3354_v55 }
 0x25b   : > { %v4648_v6 = vpop.eup %4647  ;;  %v2390_v34 = vadd.f32 %v2314_v50, %v6320_v35  ;;  %v3569_v15 = vand.u32 2147483648, %v6830_v59 }
 0x25c   : > { %v3287_v19 = vadd.f32 %v6701_v30, %v2977_v13  ;;  %3958 = vst.msk [vmem:[%s6716_s11 + $0x20] sm:$0xff] %vm593_vm0, %v3926_v33  ;;  %v3993_v39 = vsel %vm593_vm0, %v3926_v33, 0.0  ;;  %v4061_v18 = vmul.f32 %v3926_v33, %v3926_v33  ;;  %v3552_v21 = vsel %vm3551_vm8, %v4646_v2, %v3548_v3  ;;  %4478 = vmatmul.msk.f32.gmra.mxu1 %vm593_vm0, %v7692_v23  ;;  %v4650_v30 = vpop.eup %4649 }
 0x25d   : > { %v3559_v43 = vmul.f32 %v4648_v6, %v6830_v59  ;;  %v3994_v45 = vadd.f32 %v3993_v39, %v6818_v4  ;;  %v3557_v24 = vsel %vm3554_vm9, %v3556_v26, %v3552_v21  ;;  %4651 = vpow2.f32 %v3394_v62  ;;  %4515 = vmatmul.msk.f32.gmra.mxu2 %vm593_vm0, %v7693_v57  ;;  %v2749_v26 = vld [vmem:[%s4837_s20 + $0xf9] sm:$0xff] }
 0x25e   : > { %4550 = vmatmul.msk.f32.gmra.mxu3 %vm593_vm0, %v2748_v53  ;;  %v4096_v2 = vsel %vm593_vm0, %v4061_v18, 0.0  ;;  %v3927_v31 = vmul.f32 %v3557_v24, %v6758_v11  ;;  %v6877_v49 = vadd.f32 %v6637_v5, %v3287_v19  ;;  %vm3564_vm10 = vweird.f32 %v4648_v6  ;;  %v6886_v11 = vpop.f32.mrf.mxu0 }
 0x25f   : > { %v3560_v27 = vsub.f32 1.0, %v3559_v43  ;;  %v4097_v4 = vadd.f32 %v4096_v2, %v6827_v8  ;;  %v6881_v35 = vadd.f32 1.0, %v4650_v30  ;;  %v2700_v8 = vadd.f32 %v2624_v52, %v2390_v34  ;;  %vm3565_vm12 = vmor %vm3563_vm11, %vm3564_vm10  ;;  %v7695_v34 = vld [vmem:[#allocation130_spill] sm:$0xff] }
 0x260   : > { %3959 = vst.msk [vmem:[%s6716_s11 + $0x28] sm:$0xff] %vm593_vm0, %v3927_v31  ;;  %v3995_v20 = vsel %vm593_vm0, %v3927_v31, 0.0  ;;  %v4062_v55 = vmul.f32 %v3927_v31, %v3927_v31  ;;  %v3355_v9 = vsub.f32 0.0, %v6877_v49  ;;  %v3570_v18 = vor.u32 1.1754944e-38, %v3569_v15 }
 0x261   : > { %v2627_v42 = vpop.f32.mrf.mxu2  ;;  %v3561_v48 = vmul.f32 %v4648_v6, %v3560_v27  ;;  %v2902_v13 = vpop.f32.mrf.mxu3  ;;  %v3996_v50 = vadd.f32 %v3995_v20, %v3994_v45  ;;  %4653 = vrcp.f32 %v6881_v35  ;;  %v7694_v45 = vld [vmem:[#allocation127_spill] sm:$0xff]  ;;  %vm3577_vm15 = vweird.f32 %v6881_v35 }
 0x262   : > { %v2317_v33 = vpop.f32.mrf.mxu1  ;;  %v4098_v3 = vsel %vm593_vm0, %v4062_v55, 0.0  ;;  %v3396_v53 = vmul.f32 1.442695, %v3355_v9  ;;  %v2978_v21 = vadd.f32 %v2902_v13, %v2700_v8  ;;  %v3583_v9 = vand.u32 2147483648, %v6881_v35 }
 0x263   : > { %v3562_v62 = vadd.f32 %v4648_v6, %v3561_v48  ;;  %v4652_v19 = vpop.eup %4651  ;;  %v4099_v39 = vadd.f32 %v4098_v3, %v4097_v4  ;;  %v2391_v52 = vadd.f32 %v2317_v33, %v6337_v28  ;;  %v2750_v33 = vld [vmem:[%s4837_s20 + $0x101] sm:$0xff] }
 0x264   : > { %v6894_v23 = vadd.f32 1.0, %v4652_v19  ;;  %4655 = vpow2.f32 %v3396_v53  ;;  %4479 = vmatmul.msk.f32.gmra.mxu1 %vm593_vm0, %v7694_v45  ;;  %v3288_v24 = vadd.f32 %v6731_v44, %v2978_v21  ;;  %v3581_v19 = vand.u32 2147483647, %v6881_v35  ;;  %v7696_v21 = vld [vmem:[#allocation104_spill] sm:$0xff] }
 0x265   : > { %v3566_v43 = vsel %vm3565_vm12, %v4648_v6, %v3562_v62  ;;  %4516 = vmatmul.msk.f32.gmra.mxu2 %vm593_vm0, %v7695_v34  ;;  %v2701_v31 = vadd.f32 %v2627_v42, %v2391_v52  ;;  %v7697_v52 = vld [vmem:[#allocation114_spill] sm:$0xff] }
 0x266   : > { %v3571_v59 = vsel %vm3568_vm13, %v3570_v18, %v3566_v43  ;;  %4551 = vmatmul.msk.f32.gmra.mxu3 %vm593_vm0, %v2749_v26  ;;  %4657 = vrcp.f32 %v6894_v23  ;;  %v6906_v57 = vadd.f32 %v6637_v5, %v3288_v24  ;;  %v6917_v13 = vpop.f32.mrf.mxu0  ;;  %v2442_v43 = vld [vmem:[%s4837_s20 + $0x110] sm:$0xff]  ;;  %v3595_v45 = vand.u32 2147483647, %v6894_v23 }
 0x267   : > { %v3928_v40 = vmul.f32 %v3571_v59, %v6782_v7  ;;  %v4654_v6 = vpop.eup %4653  ;;  %v3584_v59 = vor.u32 1.1754944e-38, %v3583_v9  ;;  %vm3582_vm2 = vcmp.eq.f32.partialorder %v3581_v19, 8.507059e+37  ;;  %vm3591_vm4 = vweird.f32 %v6894_v23 }
 0x268   : > { %v3573_v2 = vmul.f32 %v4654_v6, %v6881_v35  ;;  %v3356_v7 = vsub.f32 0.0, %v6906_v57  ;;  %vm3578_vm14 = vweird.f32 %v4654_v6  ;;  %vm6945_vm5 = vcmp.eq.f32.partialorder %v3595_v45, 8.507059e+37 }
 0x269   : > { %v2630_v28 = vpop.f32.mrf.mxu2  ;;  %3960 = vst.msk [vmem:[%s6716_s11 + $0x30] sm:$0xff] %vm593_vm0, %v3928_v40  ;;  %v3997_v30 = vsel %vm593_vm0, %v3928_v40, 0.0  ;;  %v4063_v44 = vmul.f32 %v3928_v40, %v3928_v40  ;;  %v2905_v27 = vpop.f32.mrf.mxu3  ;;  %vm3579_vm1 = vmor %vm3577_vm15, %vm3578_vm14 }
 0x26a   : > { %v6912_v4 = vadd.f32 %v3997_v30, %v3996_v50  ;;  %v2320_v15 = vpop.f32.mrf.mxu1  ;;  %v4656_v20 = vpop.eup %4655  ;;  %v3574_v48 = vsub.f32 1.0, %v3573_v2  ;;  %v2979_v8 = vadd.f32 %v2905_v27, %v2701_v31  ;;  %v3398_v50 = vmul.f32 1.442695, %v3356_v7 }
 0x26b   : > { %v4100_v55 = vsel %vm593_vm0, %v4063_v44, 0.0  ;;  %v6922_v42 = vadd.f32 1.0, %v4656_v20  ;;  %v2392_v62 = vadd.f32 %v2320_v15, %v6354_v1  ;;  %v2474_v30 = vmul.f32 %v2442_v43, %v6361_v32 }
 0x26c   : > { %v6920_v3 = vadd.f32 %v4100_v55, %v4099_v39  ;;  %v4658_v53 = vpop.eup %4657  ;;  %v3575_v26 = vmul.f32 %v4654_v6, %v3574_v48  ;;  %v3289_v18 = vadd.f32 %v6770_v12, %v2979_v8  ;;  %4480 = vmatmul.msk.f32.gmra.mxu1 %vm593_vm0, %v7696_v21  ;;  %v3597_v12 = vand.u32 2147483648, %v6894_v23  ;;  %v7700_v21 = vld [vmem:[#allocation129_spill] sm:$0xff] }
 0x26d   : > { %v3587_v39 = vmul.f32 %v4658_v53, %v6894_v23  ;;  %4659 = vrcp.f32 %v6922_v42  ;;  %4517 = vmatmul.msk.f32.gmra.mxu2 %vm593_vm0, %v7697_v52  ;;  %v2702_v40 = vadd.f32 %v2630_v28, %v2392_v62  ;;  %vm3592_vm3 = vweird.f32 %v4658_v53  ;;  %v2443_v52 = vld [vmem:[%s4837_s20 + $0x118] sm:$0xff] }
 0x26e   : > { %4552 = vmatmul.msk.f32.gmra.mxu3 %vm593_vm0, %v2750_v33  ;;  %v3576_v1 = vadd.f32 %v4654_v6, %v3575_v26  ;;  %4661 = vpow2.f32 %v3398_v50  ;;  %v6939_v35 = vadd.f32 %v6637_v5, %v3289_v18  ;;  %v3598_v32 = vor.u32 1.1754944e-38, %v3597_v12  ;;  %vm3593_vm6 = vmor %vm3591_vm4, %vm3592_vm3  ;;  %v6956_v26 = vpop.f32.mrf.mxu0 }
 0x26f   : > { %v3588_v24 = vsub.f32 1.0, %v3587_v39  ;;  %v3609_v8 = vand.u32 2147483647, %v6922_v42  ;;  %vm3605_vm8 = vweird.f32 %v6922_v42 }
 0x270   : > { %v3580_v44 = vsel %vm3579_vm1, %v4654_v6, %v3576_v1  ;;  %v3357_v7 = vsub.f32 0.0, %v6939_v35  ;;  %v2751_v6 = vld [vmem:[%s4837_s20 + $0x109] sm:$0xff] }
 0x271   : > { %v2633_v34 = vpop.f32.mrf.mxu2  ;;  %v2908_v2 = vpop.f32.mrf.mxu3  ;;  %v3585_v31 = vsel %vm3582_vm2, %v3584_v59, %v3580_v44  ;;  %v3589_v27 = vmul.f32 %v4658_v53, %v3588_v24  ;;  %v3611_v59 = vand.u32 2147483648, %v6922_v42  ;;  %vm3610_vm9 = vcmp.eq.f32.partialorder %v3609_v8, 8.507059e+37 }
 0x272   : > { %v2980_v15 = vadd.f32 %v2908_v2, %v2702_v40  ;;  %v2323_v20 = vpop.f32.mrf.mxu1  ;;  %v3929_v55 = vmul.f32 %v3585_v31, %v6825_v41  ;;  %v3400_v33 = vmul.f32 1.442695, %v3357_v7  ;;  %v2475_v2 = vmul.f32 %v2443_v52, %v6380_v58 }
 0x273   : > { %v4660_v28 = vpop.eup %4659  ;;  %v3590_v9 = vadd.f32 %v4658_v53, %v3589_v27  ;;  %v2393_v18 = vadd.f32 %v2323_v20, %v6373_v36  ;;  %v2752_v20 = vld [vmem:[%s4837_s20 + $0x111] sm:$0xff] }
 0x274   : > { %v3290_v50 = vadd.f32 %v6804_v56, %v2980_v15  ;;  %v4662_v62 = vpop.eup %4661  ;;  %3961 = vst.msk [vmem:[%s6716_s11 + $0x38] sm:$0xff] %vm593_vm0, %v3929_v55  ;;  %v3999_v41 = vsel %vm593_vm0, %v3929_v55, 0.0  ;;  %v4064_v23 = vmul.f32 %v3929_v55, %v3929_v55  ;;  %v3601_v19 = vmul.f32 %v4660_v28, %v6922_v42  ;;  %4481 = vmatmul.msk.f32.gmra.mxu1 %vm593_vm0, %v7700_v21 }
 0x275   : > { %v4000_v56 = vadd.f32 %v3999_v41, %v6912_v4  ;;  %v3594_v43 = vsel %vm3593_vm6, %v4658_v53, %v3590_v9  ;;  %v6963_v39 = vadd.f32 1.0, %v4662_v62  ;;  %4663 = vpow2.f32 %v3400_v33  ;;  %4518 = vmatmul.msk.f32.gmra.mxu2 %vm593_vm0, %v2474_v30 }
 0x276   : > { %4553 = vmatmul.msk.f32.gmra.mxu3 %vm593_vm0, %v2751_v6  ;;  %v4102_v1 = vsel %vm593_vm0, %v4064_v23, 0.0  ;;  %v3599_v36 = vsel %vm6945_vm5, %v3598_v32, %v3594_v43  ;;  %v3602_v45 = vsub.f32 1.0, %v3601_v19  ;;  %v6972_v12 = vadd.f32 %v6637_v5, %v3290_v50 }
 0x277   : > { %v4103_v4 = vadd.f32 %v4102_v1, %v6920_v3  ;;  %v3930_v53 = vmul.f32 %v3599_v36, %v6850_v22  ;;  %4665 = vrcp.f32 %v6963_v39  ;;  %vm3606_vm7 = vweird.f32 %v4660_v28 }
 0x278   : > { %v3603_v40 = vmul.f32 %v4660_v28, %v3602_v45  ;;  %v3358_v30 = vsub.f32 0.0, %v6972_v12  ;;  %v2703_v27 = vadd.f32 %v2633_v34, %v2393_v18  ;;  %vm3607_vm10 = vmor %vm3605_vm8, %vm3606_vm7  ;;  %v3612_v32 = vor.u32 1.1754944e-38, %v3611_v59 }
 0x279   : > { %v2636_v24 = vpop.f32.mrf.mxu2  ;;  %v2911_v44 = vpop.f32.mrf.mxu3  ;;  %3962 = vst.msk [vmem:[%s6716_s11 + $0x40] sm:$0xff] %vm593_vm0, %v3930_v53  ;;  %v4001_v31 = vsel %vm593_vm0, %v3930_v53, 0.0  ;;  %v4065_v3 = vmul.f32 %v3930_v53, %v3930_v53  ;;  %v3623_v43 = vand.u32 2147483647, %v6963_v39  ;;  %v3625_v52 = vand.u32 2147483648, %v6963_v39  ;;  %v2753_v53 = vld [vmem:[%s4837_s20 + $0x119] sm:$0xff] }
 0x27a   : > { %v2326_v22 = vpop.f32.mrf.mxu1  ;;  %v4002_v7 = vadd.f32 %v4001_v31, %v4000_v56  ;;  %v3604_v15 = vadd.f32 %v4660_v28, %v3603_v40  ;;  %v3402_v58 = vmul.f32 1.442695, %v3358_v30  ;;  %v2981_v6 = vadd.f32 %v2911_v44, %v2703_v27  ;;  %v7701_v27 = vld [vmem:[#allocation121_spill] sm:$0xff] }
 0x27b   : > { %v4664_v55 = vpop.eup %4663  ;;  %v4104_v48 = vsel %vm593_vm0, %v4065_v3, 0.0  ;;  %v2394_v34 = vadd.f32 %v2326_v22, %v6390_v29  ;;  %vm3619_vm12 = vweird.f32 %v6963_v39  ;;  %v3626_v22 = vor.u32 1.1754944e-38, %v3625_v52 }
 0x27c   : > { %v4105_v9 = vadd.f32 %v4104_v48, %v4103_v4  ;;  %v3608_v33 = vsel %vm3607_vm10, %v4660_v28, %v3604_v15  ;;  %v6987_v50 = vadd.f32 1.0, %v4664_v55  ;;  %4482 = vmatmul.msk.f32.gmra.mxu1 %vm593_vm0, %v6164_v54  ;;  %4667 = vpow2.f32 %v3402_v58  ;;  %v6996_v28 = vpop.f32.mrf.mxu0 }
 0x27d   : > { %v4666_v42 = vpop.eup %4665  ;;  %v3613_v8 = vsel %vm3610_vm9, %v3612_v32, %v3608_v33  ;;  %v3291_v62 = vadd.f32 %v6847_v16, %v2981_v6  ;;  %4519 = vmatmul.msk.f32.gmra.mxu2 %vm593_vm0, %v2475_v2  ;;  %v2704_v21 = vadd.f32 %v2636_v24, %v2394_v34  ;;  %vm3624_vm14 = vcmp.eq.f32.partialorder %v3623_v43, 8.507059e+37 }
 0x27e   : > { %4554 = vmatmul.msk.f32.gmra.mxu3 %vm593_vm0, %v2752_v20  ;;  %v3931_v41 = vmul.f32 %v3613_v8, %v6877_v49  ;;  %v3615_v23 = vmul.f32 %v4666_v42, %v6963_v39  ;;  %4669 = vrcp.f32 %v6987_v50  ;;  %vm3620_vm11 = vweird.f32 %v4666_v42 }
 0x27f   : > { %v7001_v29 = vadd.f32 %v6637_v5, %v3291_v62  ;;  %vm3621_vm13 = vmor %vm3619_vm12, %vm3620_vm11  ;;  %vm3633_vm1 = vweird.f32 %v6987_v50 }
 0x280   : > { %3963 = vst.msk [vmem:[%s6716_s11 + $0x48] sm:$0xff] %vm593_vm0, %v3931_v41  ;;  %v4003_v16 = vsel %vm593_vm0, %v3931_v41, 0.0  ;;  %v4066_v19 = vmul.f32 %v3931_v41, %v3931_v41  ;;  %v3616_v18 = vsub.f32 1.0, %v3615_v23 }
 0x281   : > { %v2639_v54 = vpop.f32.mrf.mxu2  ;;  %v2914_v56 = vpop.f32.mrf.mxu3  ;;  %v4004_v49 = vadd.f32 %v4003_v16, %v4002_v7  ;;  %v3359_v1 = vsub.f32 0.0, %v7001_v29 }
 0x282   : > { %v2329_v36 = vpop.f32.mrf.mxu1  ;;  %v4106_v5 = vsel %vm593_vm0, %v4066_v19, 0.0  ;;  %v3617_v45 = vmul.f32 %v4666_v42, %v3616_v18  ;;  %v2982_v4 = vadd.f32 %v2914_v56, %v2704_v21  ;;  %v4668_v59 = vpop.eup %4667 }
 0x283   : > { %v4107_v40 = vadd.f32 %v4106_v5, %v4105_v9  ;;  %v3404_v30 = vmul.f32 1.442695, %v3359_v1  ;;  %v2395_v24 = vadd.f32 %v2329_v36, %v6403_v61  ;;  %v7013_v31 = vadd.f32 1.0, %v4668_v59 }
 0x284   : > { %v4670_v44 = vpop.eup %4669  ;;  %v3618_v2 = vadd.f32 %v4666_v42, %v3617_v45  ;;  %v3292_v3 = vadd.f32 %v6886_v11, %v2982_v4  ;;  %4483 = vmatmul.msk.f32.gmra.mxu1 %vm593_vm0, %v7701_v27  ;;  %v3639_v61 = vand.u32 2147483648, %v6987_v50  ;;  %v7025_v11 = vld [vmem:[%s7406_s2] ss:$0 sm:$0xff]  ;;  %v7031_v6 = vpop.f32.mrf.mxu0  ;;  %v3637_v9 = vand.u32 2147483647, %v6987_v50 }
 0x285   : > { %v3629_v7 = vmul.f32 %v4670_v44, %v6987_v50  ;;  %4671 = vpow2.f32 %v3404_v30  ;;  %v2705_v32 = vadd.f32 %v2639_v54, %v2395_v24  ;;  %vm3634_vm15 = vweird.f32 %v4670_v44 }
 0x286   : > { %4555 = vmatmul.msk.f32.gmra.mxu3 %vm593_vm0, %v2753_v53  ;;  %v3622_v15 = vsel %vm3621_vm13, %v4666_v42, %v3618_v2  ;;  %4673 = vrcp.f32 %v7013_v31  ;;  %v7028_v55 = vadd.f32 %v7025_v11, %v3292_v3  ;;  %v3640_v19 = vor.u32 1.1754944e-38, %v3639_v61  ;;  %vm3635_vm2 = vmor %vm3633_vm1, %vm3634_vm15 }
 0x287   : > { %v3627_v39 = vsel %vm3624_vm14, %v3626_v22, %v3622_v15  ;;  %v3630_v20 = vsub.f32 1.0, %v3629_v7  ;;  %vm3638_vm3 = vcmp.eq.f32.partialorder %v3637_v9, 8.507059e+37  ;;  %v3653_v53 = vand.u32 2147483648, %v7013_v31 }
 0x288   : > { %v3932_v58 = vmul.f32 %v3627_v39, %v6906_v57  ;;  %v3360_v42 = vsub.f32 0.0, %v7028_v55  ;;  %vm3647_vm5 = vweird.f32 %v7013_v31 }
 0x289   : > { %v2642_v48 = vpop.f32.mrf.mxu2  ;;  %v2917_v33 = vpop.f32.mrf.mxu3  ;;  %v3631_v34 = vmul.f32 %v4670_v44, %v3630_v20  ;;  %v3654_v39 = vor.u32 1.1754944e-38, %v3653_v53 }
 0x28a   : > { %v2983_v8 = vadd.f32 %v2917_v33, %v2705_v32  ;;  %v2332_v62 = vpop.f32.mrf.mxu1  ;;  %3964 = vst.msk [vmem:[%s6716_s11 + $0x50] sm:$0xff] %vm593_vm0, %v3932_v58  ;;  %v4005_v41 = vsel %vm593_vm0, %v3932_v58, 0.0  ;;  %v4067_v23 = vmul.f32 %v3932_v58, %v3932_v58  ;;  %v3406_v18 = vmul.f32 1.442695, %v3360_v42 }
 0x28b   : > { %v4672_v54 = vpop.eup %4671  ;;  %v4006_v57 = vadd.f32 %v4005_v41, %v4004_v49  ;;  %v3632_v16 = vadd.f32 %v4670_v44, %v3631_v34  ;;  %v2396_v1 = vadd.f32 %v2332_v62, %v6417_v14 }
 0x28c   : > { %v4674_v21 = vpop.eup %4673  ;;  %v4108_v56 = vsel %vm593_vm0, %v4067_v23, 0.0  ;;  %v7041_v43 = vadd.f32 1.0, %v4672_v54  ;;  %v3293_v52 = vadd.f32 %v6917_v13, %v2983_v8  ;;  %v3651_v13 = vand.u32 2147483647, %v7013_v31  ;;  %v7056_v27 = vpop.f32.mrf.mxu0 }
 0x28d   : > { %v4109_v36 = vadd.f32 %v4108_v56, %v4107_v40  ;;  %v3636_v5 = vsel %vm3635_vm2, %v4670_v44, %v3632_v16  ;;  %v3643_v50 = vmul.f32 %v4674_v21, %v7013_v31  ;;  %v2706_v40 = vadd.f32 %v2642_v48, %v2396_v1 }
 0x28e   : > { %v3641_v49 = vsel %vm3638_vm3, %v3640_v19, %v3636_v5  ;;  %4675 = vrcp.f32 %v7041_v43  ;;  %v7051_v14 = vadd.f32 %v7025_v11, %v3293_v52  ;;  %vm3648_vm4 = vweird.f32 %v4674_v21 }
 0x28f   : > { %v3933_v45 = vmul.f32 %v3641_v49, %v6939_v35  ;;  %v3644_v4 = vsub.f32 1.0, %v3643_v50  ;;  %4677 = vpow2.f32 %v3406_v18  ;;  %vm3649_vm6 = vmor %vm3647_vm5, %vm3648_vm4  ;;  %vm3652_vm7 = vcmp.eq.f32.partialorder %v3651_v13, 8.507059e+37 }
 0x290   : > { %v3361_v22 = vsub.f32 0.0, %v7051_v14  ;;  %vm3661_vm9 = vweird.f32 %v7041_v43 }
 0x291   : > { %v2645_v59 = vpop.f32.mrf.mxu2  ;;  %v2920_v30 = vpop.f32.mrf.mxu3  ;;  %3965 = vst.msk [vmem:[%s6716_s11 + $0x58] sm:$0xff] %vm593_vm0, %v3933_v45  ;;  %v4007_v24 = vsel %vm593_vm0, %v3933_v45, 0.0  ;;  %v4068_v44 = vmul.f32 %v3933_v45, %v3933_v45  ;;  %v3645_v2 = vmul.f32 %v4674_v21, %v3644_v4 }
 0x292   : > { %v2335_v35 = vpop.f32.mrf.mxu1  ;;  %v4008_v3 = vadd.f32 %v4007_v24, %v4006_v57  ;;  %v2984_v7 = vadd.f32 %v2920_v30, %v2706_v40  ;;  %v3408_v32 = vmul.f32 1.442695, %v3361_v22 }
 0x293   : > { %v4110_v15 = vsel %vm593_vm0, %v4068_v44, 0.0  ;;  %v3646_v61 = vadd.f32 %v4674_v21, %v3645_v2  ;;  %v2397_v9 = vadd.f32 %v2335_v35, %v6431_v10  ;;  %v3667_v10 = vand.u32 2147483648, %v7041_v43 }
 0x294   : > { %v4676_v20 = vpop.eup %4675  ;;  %v4111_v48 = vadd.f32 %v4110_v15, %v4109_v36  ;;  %v3294_v58 = vadd.f32 %v6956_v26, %v2984_v7  ;;  %4679 = vpow2.f32 %v3408_v32  ;;  %v3665_v26 = vand.u32 2147483647, %v7041_v43  ;;  %v7080_v53 = vpop.f32.mrf.mxu0 }
 0x295   : > { %v4678_v33 = vpop.eup %4677  ;;  %v3650_v34 = vsel %vm3649_vm6, %v4674_v21, %v3646_v61  ;;  %v3657_v42 = vmul.f32 %v4676_v20, %v7041_v43  ;;  %vm3662_vm8 = vweird.f32 %v4676_v20  ;;  %v2707_v57 = vadd.f32 %v2645_v59, %v2397_v9 }
 0x296   : > { %v3655_v8 = vsel %vm3652_vm7, %v3654_v39, %v3650_v34  ;;  %v7064_v62 = vadd.f32 1.0, %v4678_v33  ;;  %v7067_v31 = vadd.f32 %v7025_v11, %v3294_v58  ;;  %vm3663_vm10 = vmor %vm3661_vm9, %vm3662_vm8  ;;  %v3668_v59 = vor.u32 1.1754944e-38, %v3667_v10 }
 0x297   : > { %v3934_v41 = vmul.f32 %v3655_v8, %v6972_v12  ;;  %v3658_v23 = vsub.f32 1.0, %v3657_v42  ;;  %vm3666_vm11 = vcmp.eq.f32.partialorder %v3665_v26, 8.507059e+37 }
 0x298   : > { %4681 = vrcp.f32 %v7064_v62  ;;  %v3362_v56 = vsub.f32 0.0, %v7067_v31  ;;  %v3681_v32 = vand.u32 2147483648, %v7064_v62  ;;  %vm3675_vm13 = vweird.f32 %v7064_v62 }
 0x299   : > { %v2648_v54 = vpop.f32.mrf.mxu2  ;;  %v2923_v16 = vpop.f32.mrf.mxu3  ;;  %3966 = vst.msk [vmem:[%s6716_s11 + $0x60] sm:$0xff] %vm593_vm0, %v3934_v41  ;;  %v4009_v19 = vsel %vm593_vm0, %v3934_v41, 0.0  ;;  %v4069_v18 = vmul.f32 %v3934_v41, %v3934_v41  ;;  %v3659_v21 = vmul.f32 %v4676_v20, %v3658_v23 }
 0x29a   : > { %v2338_v12 = vpop.f32.mrf.mxu1  ;;  %v4010_v52 = vadd.f32 %v4009_v19, %v4008_v3  ;;  %v2985_v1 = vadd.f32 %v2923_v16, %v2707_v57  ;;  %v3410_v50 = vmul.f32 1.442695, %v3362_v56  ;;  %v4680_v45 = vpop.eup %4679  ;;  %v3682_v16 = vor.u32 1.1754944e-38, %v3681_v32 }
 0x29b   : > { %v4112_v36 = vsel %vm593_vm0, %v4069_v18, 0.0  ;;  %v3660_v5 = vadd.f32 %v4676_v20, %v3659_v21  ;;  %v2398_v49 = vadd.f32 %v2338_v12, %v6445_v37  ;;  %v7084_v43 = vadd.f32 1.0, %v4680_v45 }
 0x29c   : > { %v4113_v4 = vadd.f32 %v4112_v36, %v4111_v48  ;;  %v3295_v13 = vadd.f32 %v6996_v28, %v2985_v1  ;;  %4683 = vpow2.f32 %v3410_v50  ;;  %v7107_v57 = vpop.f32.mrf.mxu0 }
 0x29d   : > { %v3664_v40 = vsel %vm3663_vm10, %v4676_v20, %v3660_v5  ;;  %4685 = vrcp.f32 %v7084_v43  ;;  %v2708_v3 = vadd.f32 %v2648_v54, %v2398_v49  ;;  %v3693_v1 = vand.u32 2147483647, %v7084_v43 }
 0x29e   : > { %v4682_v30 = vpop.eup %4681  ;;  %v3669_v24 = vsel %vm3666_vm11, %v3668_v59, %v3664_v40  ;;  %v7087_v44 = vadd.f32 %v7025_v11, %v3295_v13  ;;  %v3695_v36 = vand.u32 2147483648, %v7084_v43  ;;  %vm3689_vm2 = vweird.f32 %v7084_v43 }
 0x29f   : > { %v3935_v37 = vmul.f32 %v3669_v24, %v7001_v29  ;;  %v3671_v2 = vmul.f32 %v4682_v30, %v7064_v62  ;;  %v3679_v29 = vand.u32 2147483647, %v7064_v62  ;;  %vm3676_vm12 = vweird.f32 %v4682_v30 }
 0x2a0   : > { %v3363_v28 = vsub.f32 0.0, %v7087_v44  ;;  %vm3677_vm14 = vmor %vm3675_vm13, %vm3676_vm12  ;;  %vm3694_vm4 = vcmp.eq.f32.partialorder %v3693_v1, 8.507059e+37 }
 0x2a1   : > { %v2651_v35 = vpop.f32.mrf.mxu2  ;;  %v2926_v22 = vpop.f32.mrf.mxu3  ;;  %3967 = vst.msk [vmem:[%s6716_s11 + $0x68] sm:$0xff] %vm593_vm0, %v3935_v37  ;;  %v4011_v7 = vsel %vm593_vm0, %v3935_v37, 0.0  ;;  %v4070_v15 = vmul.f32 %v3935_v37, %v3935_v37  ;;  %v3672_v61 = vsub.f32 1.0, %v3671_v2  ;;  %vm3680_vm15 = vcmp.eq.f32.partialorder %v3679_v29, 8.507059e+37 }
 0x2a2   : > { %v2986_v39 = vadd.f32 %v2926_v22, %v2708_v3  ;;  %v2341_v20 = vpop.f32.mrf.mxu1  ;;  %v4012_v48 = vadd.f32 %v4011_v7, %v4010_v52  ;;  %v3412_v58 = vmul.f32 1.442695, %v3363_v28  ;;  %v4684_v9 = vpop.eup %4683  ;;  %v3696_v3 = vor.u32 1.1754944e-38, %v3695_v36 }
 0x2a3   : > { %v4114_v33 = vsel %vm593_vm0, %v4070_v15, 0.0  ;;  %v3673_v34 = vmul.f32 %v4682_v30, %v3672_v61  ;;  %v7100_v41 = vadd.f32 1.0, %v4684_v9  ;;  %v2399_v23 = vadd.f32 %v2341_v20, %v6459_v46  ;;  %v4686_v26 = vpop.eup %4685 }
 0x2a4   : > { %v3296_v42 = vadd.f32 %v7031_v6, %v2986_v39  ;;  %v4115_v8 = vadd.f32 %v4114_v33, %v4113_v4  ;;  %4687 = vpow2.f32 %v3412_v58  ;;  %v3685_v19 = vmul.f32 %v4686_v26, %v7084_v43 }
 0x2a5   : > { %v3674_v54 = vadd.f32 %v4682_v30, %v3673_v34  ;;  %4689 = vrcp.f32 %v7100_v41  ;;  %v2709_v62 = vadd.f32 %v2651_v35, %v2399_v23  ;;  %vm3690_vm1 = vweird.f32 %v4686_v26 }
 0x2a6   : > { %v7105_v10 = vadd.f32 %v7025_v11, %v3296_v42  ;;  %v3686_v56 = vsub.f32 1.0, %v3685_v19  ;;  %vm3691_vm3 = vmor %vm3689_vm2, %vm3690_vm1  ;;  %vm3703_vm5 = vweird.f32 %v7100_v41  ;;  %v3709_v29 = vand.u32 2147483648, %v7100_v41 }
 0x2a7   : > { %v3678_v6 = vsel %vm3677_vm14, %v4682_v30, %v3674_v54 }
 0x2a8   : > { %v3364_v18 = vsub.f32 0.0, %v7105_v10  ;;  %v3683_v21 = vsel %vm3680_vm15, %v3682_v16, %v3678_v6  ;;  %v3687_v45 = vmul.f32 %v4686_v26, %v3686_v56 }
 0x2a9   : > { %v2654_v46 = vpop.f32.mrf.mxu2  ;;  %v2929_v12 = vpop.f32.mrf.mxu3  ;;  %v3936_v52 = vmul.f32 %v3683_v21, %v7028_v55  ;;  %v3710_v21 = vor.u32 1.1754944e-38, %v3709_v29 }
 0x2aa   : > { %v3414_v5 = vmul.f32 1.442695, %v3364_v18  ;;  %v2344_v50 = vpop.f32.mrf.mxu1  ;;  %v4688_v49 = vpop.eup %4687  ;;  %v2987_v4 = vadd.f32 %v2929_v12, %v2709_v62  ;;  %v3688_v37 = vadd.f32 %v4686_v26, %v3687_v45 }
 0x2ab   : > { %v2400_v59 = vadd.f32 %v2344_v50, %v6473_v63  ;;  %3968 = vst.msk [vmem:[%s6716_s11 + $0x70] sm:$0xff] %vm593_vm0, %v3936_v52  ;;  %v4013_v13 = vsel %vm593_vm0, %v3936_v52, 0.0  ;;  %v4071_v40 = vmul.f32 %v3936_v52, %v3936_v52  ;;  %v7119_v30 = vadd.f32 1.0, %v4688_v49  ;;  %v4690_v55 = vpop.eup %4689 }
 0x2ac   : > { %4691 = vpow2.f32 %v3414_v5  ;;  %v4014_v24 = vadd.f32 %v4013_v13, %v4012_v48  ;;  %v3297_v2 = vadd.f32 %v7056_v27, %v2987_v4  ;;  %v3699_v63 = vmul.f32 %v4690_v55, %v7100_v41  ;;  %v7129_v27 = vpop.f32.mrf.mxu0 }
 0x2ad   : > { %v4116_v35 = vsel %vm593_vm0, %v4071_v40, 0.0  ;;  %4693 = vrcp.f32 %v7119_v30  ;;  %v3692_v22 = vsel %vm3691_vm3, %v4686_v26, %v3688_v37  ;;  %v2710_v39 = vadd.f32 %v2654_v46, %v2400_v59 }
 0x2ae   : > { %v4117_v28 = vadd.f32 %v4116_v35, %v4115_v8  ;;  %v3697_v7 = vsel %vm3694_vm4, %v3696_v3, %v3692_v22  ;;  %v3700_v15 = vsub.f32 1.0, %v3699_v63  ;;  %v7127_v61 = vadd.f32 %v7025_v11, %v3297_v2 }
 0x2af   : > { %v3937_v20 = vmul.f32 %v3697_v7, %v7051_v14  ;;  %v3707_v48 = vand.u32 2147483647, %v7100_v41  ;;  %vm3704_vm6 = vweird.f32 %v4690_v55  ;;  %v3723_v1 = vand.u32 2147483648, %v7119_v30 }
 0x2b0   : > { %v3701_v9 = vmul.f32 %v4690_v55, %v3700_v15  ;;  %v3365_v33 = vsub.f32 0.0, %v7127_v61  ;;  %vm3705_vm7 = vmor %vm3703_vm5, %vm3704_vm6  ;;  %v3721_v49 = vand.u32 2147483647, %v7119_v30  ;;  %vm3717_vm10 = vweird.f32 %v7119_v30 }
 0x2b1   : > { %v2657_v43 = vpop.f32.mrf.mxu2  ;;  %v2932_v32 = vpop.f32.mrf.mxu3  ;;  %3969 = vst.msk [vmem:[%s6716_s11 + $0x78] sm:$0xff] %vm593_vm0, %v3937_v20  ;;  %v4015_v8 = vsel %vm593_vm0, %v3937_v20, 0.0  ;;  %v4072_v23 = vmul.f32 %v3937_v20, %v3937_v20  ;;  %vm3708_vm8 = vcmp.eq.f32.partialorder %v3707_v48, 8.507059e+37  ;;  %v3724_v35 = vor.u32 1.1754944e-38, %v3723_v1 }
 0x2b2   : > { %v4692_v58 = vpop.eup %4691  ;;  %v2988_v34 = vadd.f32 %v2932_v32, %v2710_v39  ;;  %v2347_v42 = vpop.f32.mrf.mxu1  ;;  %v4016_v16 = vadd.f32 %v4015_v8, %v4014_v24  ;;  %v3702_v19 = vadd.f32 %v4690_v55, %v3701_v9  ;;  %v3416_v6 = vmul.f32 1.442695, %v3365_v33 }
 0x2b3   : > { %v7139_v14 = vadd.f32 1.0, %v4692_v58  ;;  %v2401_v26 = vadd.f32 %v2347_v42, %v6487_v47  ;;  %v4694_v54 = vpop.eup %4693  ;;  %v4118_v46 = vsel %vm593_vm0, %v4072_v23, 0.0  ;;  %vm3722_vm12 = vcmp.eq.f32.partialorder %v3721_v49, 8.507059e+37 }
 0x2b4   : > { %v3298_v18 = vadd.f32 %v7080_v53, %v2988_v34  ;;  %v3713_v56 = vmul.f32 %v4694_v54, %v7119_v30  ;;  %v4119_v62 = vadd.f32 %v4118_v46, %v4117_v28  ;;  %v3706_v47 = vsel %vm3705_vm7, %v4690_v55, %v3702_v19  ;;  %v7159_v24 = vpop.f32.mrf.mxu0 }
 0x2b5   : > { %4695 = vrcp.f32 %v7139_v14  ;;  %v3711_v12 = vsel %vm3708_vm8, %v3710_v21, %v3706_v47  ;;  %v2711_v5 = vadd.f32 %v2657_v43, %v2401_v26  ;;  %vm3718_vm9 = vweird.f32 %v4694_v54 }
 0x2b6   : > { %v3714_v52 = vsub.f32 1.0, %v3713_v56  ;;  %4697 = vpow2.f32 %v3416_v6  ;;  %v3938_v53 = vmul.f32 %v3711_v12, %v7067_v31  ;;  %v7152_v36 = vadd.f32 %v7025_v11, %v3298_v18  ;;  %vm3719_vm11 = vmor %vm3717_vm10, %vm3718_vm9 }
 0x2b7   : > { %v3735_v32 = vand.u32 2147483647, %v7139_v14  ;;  %v3737_v58 = vand.u32 2147483648, %v7139_v14  ;;  %vm3731_vm14 = vweird.f32 %v7139_v14 }
 0x2b8   : > { %v3715_v50 = vmul.f32 %v4694_v54, %v3714_v52  ;;  %3970 = vst.msk [vmem:[%s6716_s11 + $0x80] sm:$0xff] %vm593_vm0, %v3938_v53  ;;  %v4017_v4 = vsel %vm593_vm0, %v3938_v53, 0.0  ;;  %v4073_v59 = vmul.f32 %v3938_v53, %v3938_v53  ;;  %v3366_v13 = vsub.f32 0.0, %v7152_v36 }
 0x2b9   : > { %v2660_v41 = vpop.f32.mrf.mxu2  ;;  %v2935_v45 = vpop.f32.mrf.mxu3  ;;  %v4018_v37 = vadd.f32 %v4017_v4, %v4016_v16  ;;  %vm3736_vm1 = vcmp.eq.f32.partialorder %v3735_v32, 8.507059e+37  ;;  %v3738_v6 = vor.u32 1.1754944e-38, %v3737_v58 }
 0x2ba   : > { %v2989_v40 = vadd.f32 %v2935_v45, %v2711_v5  ;;  %v2350_v55 = vpop.f32.mrf.mxu1  ;;  %v3716_v2 = vadd.f32 %v4694_v54, %v3715_v50  ;;  %v4120_v3 = vsel %vm593_vm0, %v4073_v59, 0.0  ;;  %v3418_v28 = vmul.f32 1.442695, %v3366_v13 }
 0x2bb   : > { %v4696_v31 = vpop.eup %4695  ;;  %v2402_v22 = vadd.f32 %v2350_v55, %v6501_v60  ;;  %v4121_v15 = vadd.f32 %v4120_v3, %v4119_v62 }
 0x2bc   : > { %v3727_v63 = vmul.f32 %v4696_v31, %v7139_v14  ;;  %v4698_v7 = vpop.eup %4697  ;;  %v3720_v43 = vsel %vm3719_vm11, %v4694_v54, %v3716_v2  ;;  %v3299_v39 = vadd.f32 %v7107_v57, %v2989_v40  ;;  %4699 = vpow2.f32 %v3418_v28  ;;  %v7185_v12 = vpop.f32.mrf.mxu0 }
 0x2bd   : > { %v3725_v20 = vsel %vm3722_vm12, %v3724_v35, %v3720_v43  ;;  %v7167_v30 = vadd.f32 1.0, %v4698_v7  ;;  %vm3732_vm13 = vweird.f32 %v4696_v31  ;;  %v2712_v57 = vadd.f32 %v2660_v41, %v2402_v22 }
 0x2be   : > { %v3728_v48 = vsub.f32 1.0, %v3727_v63  ;;  %v3939_v29 = vmul.f32 %v3725_v20, %v7087_v44  ;;  %v7173_v60 = vadd.f32 %v7025_v11, %v3299_v39  ;;  %vm3733_vm15 = vmor %vm3731_vm14, %vm3732_vm13 }
 0x2bf   : > { %4701 = vrcp.f32 %v7167_v30  ;;  %v3749_v40 = vand.u32 2147483647, %v7167_v30  ;;  %v3751_v55 = vand.u32 2147483648, %v7167_v30  ;;  %vm3745_vm3 = vweird.f32 %v7167_v30 }
 0x2c0   : > { %v3729_v9 = vmul.f32 %v4696_v31, %v3728_v48  ;;  %3971 = vst.msk [vmem:[%s6716_s11 + $0x88] sm:$0xff] %vm593_vm0, %v3939_v29  ;;  %v4019_v34 = vsel %vm593_vm0, %v3939_v29, 0.0  ;;  %v4074_v42 = vmul.f32 %v3939_v29, %v3939_v29  ;;  %v3367_v44 = vsub.f32 0.0, %v7173_v60 }
 0x2c1   : > { %v2663_v33 = vpop.f32.mrf.mxu2  ;;  %v2938_v8 = vpop.f32.mrf.mxu3  ;;  %v4020_v23 = vadd.f32 %v4019_v34, %v4018_v37  ;;  %v3752_v39 = vor.u32 1.1754944e-38, %v3751_v55  ;;  %vm3750_vm5 = vcmp.eq.f32.partialorder %v3749_v40, 8.507059e+37 }
 0x2c2   : > { %v3730_v26 = vadd.f32 %v4696_v31, %v3729_v9  ;;  %v2990_v54 = vadd.f32 %v2938_v8, %v2712_v57  ;;  %v2353_v16 = vpop.f32.mrf.mxu1  ;;  %v4122_v19 = vsel %vm593_vm0, %v4074_v42, 0.0  ;;  %v3420_v18 = vmul.f32 1.442695, %v3367_v44  ;;  %v4700_v46 = vpop.eup %4699 }
 0x2c3   : > { %v4123_v21 = vadd.f32 %v4122_v19, %v4121_v15  ;;  %v2403_v47 = vadd.f32 %v2353_v16, %v6515_v25  ;;  %v7187_v52 = vadd.f32 1.0, %v4700_v46 }
 0x2c4   : > { %v3734_v56 = vsel %vm3733_vm15, %v4696_v31, %v3730_v26  ;;  %v3300_v62 = vadd.f32 %v7129_v27, %v2990_v54  ;;  %4703 = vpow2.f32 %v3420_v18  ;;  %v7209_v48 = vpop.f32.mrf.mxu0 }
 0x2c5   : > { %v3739_v14 = vsel %vm3736_vm1, %v3738_v6, %v3734_v56  ;;  %v4702_v1 = vpop.eup %4701  ;;  %4705 = vrcp.f32 %v7187_v52  ;;  %v2713_v49 = vadd.f32 %v2663_v33, %v2403_v47  ;;  %vm3759_vm6 = vweird.f32 %v7187_v52 }
 0x2c6   : > { %v3940_v53 = vmul.f32 %v3739_v14, %v7105_v10  ;;  %v7191_v41 = vadd.f32 %v7025_v11, %v3300_v62  ;;  %v3741_v5 = vmul.f32 %v4702_v1, %v7167_v30  ;;  %vm3746_vm2 = vweird.f32 %v4702_v1 }
 0x2c7   : > { %vm3747_vm4 = vmor %vm3745_vm3, %vm3746_vm2  ;;  %v3765_v33 = vand.u32 2147483648, %v7187_v52  ;;  %v3763_v44 = vand.u32 2147483647, %v7187_v52 }
 0x2c8   : > { %3972 = vst.msk [vmem:[%s6716_s11 + $0x90] sm:$0xff] %vm593_vm0, %v3940_v53  ;;  %v4021_v25 = vsel %vm593_vm0, %v3940_v53, 0.0  ;;  %v4075_v27 = vmul.f32 %v3940_v53, %v3940_v53  ;;  %v3742_v4 = vsub.f32 1.0, %v3741_v5  ;;  %v3368_v59 = vsub.f32 0.0, %v7191_v41 }
 0x2c9   : > { %v2666_v50 = vpop.f32.mrf.mxu2  ;;  %v4022_v45 = vadd.f32 %v4021_v25, %v4020_v23  ;;  %v2941_v13 = vpop.f32.mrf.mxu3  ;;  %v3766_v47 = vor.u32 1.1754944e-38, %v3765_v33  ;;  %vm3764_vm9 = vcmp.eq.f32.partialorder %v3763_v44, 8.507059e+37 }
 0x2ca   : > { %v4124_v10 = vsel %vm593_vm0, %v4075_v27, 0.0  ;;  %v2991_v31 = vadd.f32 %v2941_v13, %v2713_v49  ;;  %v2356_v37 = vpop.f32.mrf.mxu1  ;;  %v4704_v2 = vpop.eup %4703  ;;  %v3743_v3 = vmul.f32 %v4702_v1, %v3742_v4  ;;  %v3422_v63 = vmul.f32 1.442695, %v3368_v59 }
 0x2cb   : > { %v4125_v35 = vadd.f32 %v4124_v10, %v4123_v21  ;;  %v7202_v28 = vadd.f32 1.0, %v4704_v2  ;;  %v2404_v7 = vadd.f32 %v2356_v37, %v6527_v0  ;;  %v4706_v15 = vpop.eup %4705 }
 0x2cc   : > { %v3301_v22 = vadd.f32 %v7159_v24, %v2991_v31  ;;  %v3744_v43 = vadd.f32 %v4702_v1, %v3743_v3  ;;  %4707 = vpow2.f32 %v3422_v63  ;;  %v3755_v20 = vmul.f32 %v4706_v15, %v7187_v52  ;;  %v3260_v49 = vpop.f32.mrf.mxu0 }
 0x2cd   : > { %4709 = vrcp.f32 %v7202_v28  ;;  %v2714_v9 = vadd.f32 %v2666_v50, %v2404_v7  ;;  %vm3760_vm7 = vweird.f32 %v4706_v15  ;;  %vm3773_vm10 = vweird.f32 %v7202_v28 }
 0x2ce   : > { %v3748_v29 = vsel %vm3747_vm4, %v4702_v1, %v3744_v43  ;;  %v7212_v32 = vadd.f32 %v7025_v11, %v3301_v22  ;;  %v3756_v24 = vsub.f32 1.0, %v3755_v20  ;;  %vm3761_vm8 = vmor %vm3759_vm6, %vm3760_vm7  ;;  %v3777_v4 = vand.u32 2147483647, %v7202_v28 }
 0x2cf   : > { %v3753_v0 = vsel %vm3750_vm5, %v3752_v39, %v3748_v29 }
 0x2d0   : > { %v3941_v30 = vmul.f32 %v3753_v0, %v7127_v61  ;;  %v3369_v57 = vsub.f32 0.0, %v7212_v32  ;;  %v3757_v42 = vmul.f32 %v4706_v15, %v3756_v24  ;;  %vm3778_vm13 = vcmp.eq.f32.partialorder %v3777_v4, 8.507059e+37 }
 0x2d1   : > { %v2669_v58 = vpop.f32.mrf.mxu2  ;;  %v2944_v34 = vpop.f32.mrf.mxu3 }
 0x2d2   : > { %v2992_v8 = vadd.f32 %v2944_v34, %v2714_v9  ;;  %v2359_v23 = vpop.f32.mrf.mxu1  ;;  %v4708_v26 = vpop.eup %4707  ;;  %3973 = vst.msk [vmem:[%s6716_s11 + $0x98] sm:$0xff] %vm593_vm0, %v3941_v30  ;;  %v4023_v54 = vsel %vm593_vm0, %v3941_v30, 0.0  ;;  %v4076_v16 = vmul.f32 %v3941_v30, %v3941_v30  ;;  %v3424_v61 = vmul.f32 1.442695, %v3369_v57 }
 0x2d3   : > { %v2405_v19 = vadd.f32 %v2359_v23, %v6541_v38  ;;  %v4710_v6 = vpop.eup %4709  ;;  %v4024_v18 = vadd.f32 %v4023_v54, %v4022_v45  ;;  %v3758_v46 = vadd.f32 %v4706_v15, %v3757_v42  ;;  %v7223_v21 = vadd.f32 1.0, %v4708_v26 }
 0x2d4   : > { %v3302_v56 = vadd.f32 %v7185_v12, %v2992_v8  ;;  %v4126_v62 = vsel %vm593_vm0, %v4076_v16, 0.0  ;;  %v3769_v14 = vmul.f32 %v4710_v6, %v7202_v28  ;;  %4711 = vpow2.f32 %v3424_v61  ;;  %v3263_v26 = vpop.f32.mrf.mxu0 }
 0x2d5   : > { %v4127_v1 = vadd.f32 %v4126_v62, %v4125_v35  ;;  %v3762_v53 = vsel %vm3761_vm8, %v4706_v15, %v3758_v46  ;;  %4713 = vrcp.f32 %v7223_v21  ;;  %v3779_v12 = vand.u32 2147483648, %v7202_v28 }
 0x2d6   : > { %v3767_v38 = vsel %vm3764_vm9, %v3766_v47, %v3762_v53  ;;  %v3770_v5 = vsub.f32 1.0, %v3769_v14  ;;  %v7235_v27 = vadd.f32 %v7025_v11, %v3302_v56  ;;  %v2715_v50 = vadd.f32 %v2669_v58, %v2405_v19 }
 0x2d7   : > { %v3942_v25 = vmul.f32 %v3767_v38, %v7152_v36  ;;  %vm3774_vm11 = vweird.f32 %v4710_v6  ;;  %v3780_v35 = vor.u32 1.1754944e-38, %v3779_v12  ;;  %v3793_v28 = vand.u32 2147483648, %v7223_v21 }
 0x2d8   : > { %v3771_v45 = vmul.f32 %v4710_v6, %v3770_v5  ;;  %v3370_v36 = vsub.f32 0.0, %v7235_v27  ;;  %vm3775_vm12 = vmor %vm3773_vm10, %vm3774_vm11  ;;  %v3791_v58 = vand.u32 2147483647, %v7223_v21  ;;  %vm3787_vm15 = vweird.f32 %v7223_v21 }
 0x2d9   : > { %v2672_v52 = vpop.f32.mrf.mxu2  ;;  %v2947_v59 = vpop.f32.mrf.mxu3  ;;  %3974 = vst.msk [vmem:[%s6716_s11 + $0xa0] sm:$0xff] %vm593_vm0, %v3942_v25  ;;  %v4025_v13 = vsel %vm593_vm0, %v3942_v25, 0.0  ;;  %v4077_v10 = vmul.f32 %v3942_v25, %v3942_v25  ;;  %v3794_v61 = vor.u32 1.1754944e-38, %v3793_v28 }
 0x2da   : > { %v2993_v40 = vadd.f32 %v2947_v59, %v2715_v50  ;;  %v2362_v55 = vpop.f32.mrf.mxu1  ;;  %v4712_v31 = vpop.eup %4711  ;;  %v4026_v37 = vadd.f32 %v4025_v13, %v4024_v18  ;;  %v3772_v2 = vadd.f32 %v4710_v6, %v3771_v45  ;;  %v3426_v15 = vmul.f32 1.442695, %v3370_v36 }
 0x2db   : > { %v2406_v3 = vadd.f32 %v2362_v55, %v6555_v17  ;;  %v4714_v63 = vpop.eup %4713  ;;  %v4128_v22 = vsel %vm593_vm0, %v4077_v10, 0.0  ;;  %v7248_v7 = vadd.f32 1.0, %v4712_v31  ;;  %vm3792_vm2 = vcmp.eq.f32.partialorder %v3791_v58, 8.507059e+37 }
 0x2dc   : > { %v3303_v43 = vadd.f32 %v7209_v48, %v2993_v40  ;;  %v4129_v39 = vadd.f32 %v4128_v22, %v4127_v1  ;;  %v3776_v20 = vsel %vm3775_vm12, %v4710_v6, %v3772_v2  ;;  %v3783_v29 = vmul.f32 %v4714_v63, %v7223_v21 }
 0x2dd   : > { %v3781_v0 = vsel %vm3778_vm13, %v3780_v35, %v3776_v20  ;;  %4715 = vrcp.f32 %v7248_v7  ;;  %v2716_v48 = vadd.f32 %v2672_v52, %v2406_v3  ;;  %vm3788_vm14 = vweird.f32 %v4714_v63  ;;  %v3266_v3 = vpop.f32.mrf.mxu0 }
 0x2de   : > { %v3943_v17 = vmul.f32 %v3781_v0, %v7173_v60  ;;  %v3784_v24 = vsub.f32 1.0, %v3783_v29  ;;  %4717 = vpow2.f32 %v3426_v15  ;;  %v7257_v9 = vadd.f32 %v7025_v11, %v3303_v43  ;;  %vm3789_vm1 = vmor %vm3787_vm15, %vm3788_vm14  ;;  %v7702_v15 = vld [vmem:[#allocation68_spill] sm:$0xff] }
 0x2df   : > { %v3805_v12 = vand.u32 2147483647, %v7248_v7  ;;  %vm3801_vm4 = vweird.f32 %v7248_v7 }
 0x2e0   : > { %3975 = vst.msk [vmem:[%s6716_s11 + $0xa8] sm:$0xff] %vm593_vm0, %v3943_v17  ;;  %v4027_v30 = vsel %vm593_vm0, %v3943_v17, 0.0  ;;  %v4078_v33 = vmul.f32 %v3943_v17, %v3943_v17  ;;  %v3785_v57 = vmul.f32 %v4714_v63, %v3784_v24  ;;  %v3371_v44 = vsub.f32 0.0, %v7257_v9 }
 0x2e1   : > { %v2675_v34 = vpop.f32.mrf.mxu2  ;;  %v2950_v42 = vpop.f32.mrf.mxu3  ;;  %v4028_v60 = vadd.f32 %v4027_v30, %v4026_v37  ;;  %vm3806_vm6 = vcmp.eq.f32.partialorder %v3805_v12, 8.507059e+37 }
 0x2e2   : > { %v2994_v8 = vadd.f32 %v2950_v42, %v2716_v48  ;;  %v2365_v23 = vpop.f32.mrf.mxu1  ;;  %v4130_v54 = vsel %vm593_vm0, %v4078_v33, 0.0  ;;  %v3786_v16 = vadd.f32 %v4714_v63, %v3785_v57  ;;  %v3428_v18 = vmul.f32 1.442695, %v3371_v44 }
 0x2e3   : > { %v4716_v19 = vpop.eup %4715  ;;  %v4131_v6 = vadd.f32 %v4130_v54, %v4129_v39  ;;  %v2407_v56 = vadd.f32 %v2365_v23, %v6569_v51  ;;  %v3807_v51 = vand.u32 2147483648, %v7248_v7 }
 0x2e4   : > { %v3304_v46 = vadd.f32 %v3260_v49, %v2994_v8  ;;  %v4718_v62 = vpop.eup %4717  ;;  %v3790_v47 = vsel %vm3789_vm1, %v4714_v63, %v3786_v16  ;;  %v3797_v14 = vmul.f32 %v4716_v19, %v7248_v7  ;;  %4719 = vpow2.f32 %v3428_v18 }
 0x2e5   : > { %v3795_v1 = vsel %vm3792_vm2, %v3794_v61, %v3790_v47  ;;  %v7267_v53 = vadd.f32 1.0, %v4718_v62  ;;  %vm3802_vm3 = vweird.f32 %v4716_v19  ;;  %v2717_v25 = vadd.f32 %v2675_v34, %v2407_v56  ;;  %v7703_v61 = vld [vmem:[#allocation94_spill] sm:$0xff]  ;;  %v3269_v47 = vpop.f32.mrf.mxu0 }
 0x2e6   : > { %v7270_v21 = vadd.f32 %v7025_v11, %v3304_v46  ;;  %v3944_v38 = vmul.f32 %v3795_v1, %v7191_v41  ;;  %v3798_v5 = vsub.f32 1.0, %v3797_v14  ;;  %vm3803_vm5 = vmor %vm3801_vm4, %vm3802_vm3  ;;  %v3808_v2 = vor.u32 1.1754944e-38, %v3807_v51 }
 0x2e7   : > { %4721 = vrcp.f32 %v7267_v53  ;;  %v3819_v57 = vand.u32 2147483647, %v7267_v53  ;;  %v3821_v34 = vand.u32 2147483648, %v7267_v53  ;;  %vm3815_vm8 = vweird.f32 %v7267_v53 }
 0x2e8   : > { %3976 = vst.msk [vmem:[%s6716_s11 + $0xb0] sm:$0xff] %vm593_vm0, %v3944_v38  ;;  %v4029_v52 = vsel %vm593_vm0, %v3944_v38, 0.0  ;;  %v4079_v50 = vmul.f32 %v3944_v38, %v3944_v38  ;;  %v3799_v49 = vmul.f32 %v4716_v19, %v3798_v5  ;;  %v3372_v45 = vsub.f32 0.0, %v7270_v21 }
 0x2e9   : > { %v2678_v4 = vpop.f32.mrf.mxu2  ;;  %v2953_v59 = vpop.f32.mrf.mxu3  ;;  %v4030_v41 = vadd.f32 %v4029_v52, %v4028_v60  ;;  %v3822_v56 = vor.u32 1.1754944e-38, %v3821_v34  ;;  %vm3820_vm10 = vcmp.eq.f32.partialorder %v3819_v57, 8.507059e+37 }
 0x2ea   : > { %v2995_v13 = vadd.f32 %v2953_v59, %v2717_v25  ;;  %v2368_v10 = vpop.f32.mrf.mxu1  ;;  %v4132_v36 = vsel %vm593_vm0, %v4079_v50, 0.0  ;;  %v3800_v40 = vadd.f32 %v4716_v19, %v3799_v49  ;;  %v3430_v55 = vmul.f32 1.442695, %v3372_v45  ;;  %v4720_v31 = vpop.eup %4719 }
 0x2eb   : > { %v4133_v37 = vadd.f32 %v4132_v36, %v4131_v6  ;;  %v7283_v22 = vadd.f32 1.0, %v4720_v31  ;;  %v2408_v43 = vadd.f32 %v2368_v10, %v7702_v15  ;;  %v7704_v31 = vld [vmem:[#allocation56_spill] sm:$0xff] }
 0x2ec   : > { %v3305_v35 = vadd.f32 %v3263_v26, %v2995_v13  ;;  %v3804_v63 = vsel %vm3803_vm5, %v4716_v19, %v3800_v40  ;;  %4723 = vpow2.f32 %v3430_v55 }
 0x2ed   : > { %v4722_v39 = vpop.eup %4721  ;;  %v3809_v20 = vsel %vm3806_vm6, %v3808_v2, %v3804_v63  ;;  %4725 = vrcp.f32 %v7283_v22  ;;  %v2718_v48 = vadd.f32 %v2678_v4, %v2408_v43  ;;  %vm3829_vm11 = vweird.f32 %v7283_v22 }
 0x2ee   : > { %v7287_v7 = vadd.f32 %v7025_v11, %v3305_v35  ;;  %v3945_v29 = vmul.f32 %v3809_v20, %v7212_v32  ;;  %v3811_v0 = vmul.f32 %v4722_v39, %v7267_v53  ;;  %vm3816_vm7 = vweird.f32 %v4722_v39 }
 0x2ef   : > { %vm3817_vm9 = vmor %vm3815_vm8, %vm3816_vm7  ;;  %v3835_v53 = vand.u32 2147483648, %v7283_v22  ;;  %v3833_v45 = vand.u32 2147483647, %v7283_v22 }
 0x2f0   : > { %v3373_v17 = vsub.f32 0.0, %v7287_v7  ;;  %3977 = vst.msk [vmem:[%s6716_s11 + $0xb8] sm:$0xff] %vm593_vm0, %v3945_v29  ;;  %v4031_v24 = vsel %vm593_vm0, %v3945_v29, 0.0  ;;  %v4080_v28 = vmul.f32 %v3945_v29, %v3945_v29  ;;  %v3812_v58 = vsub.f32 1.0, %v3811_v0 }
 0x2f1   : > { %v2956_v30 = vpop.f32.mrf.mxu3  ;;  %v4032_v33 = vadd.f32 %v4031_v24, %v4030_v41  ;;  %v2681_v23 = vpop.f32.mrf.mxu2  ;;  %v3836_v35 = vor.u32 1.1754944e-38, %v3835_v53  ;;  %vm3834_vm14 = vcmp.eq.f32.partialorder %v3833_v45, 8.507059e+37 }
 0x2f2   : > { %v3432_v32 = vmul.f32 1.442695, %v3373_v17  ;;  %v2371_v42 = vpop.f32.mrf.mxu1  ;;  %v4724_v60 = vpop.eup %4723  ;;  %v4134_v44 = vsel %vm593_vm0, %v4080_v28, 0.0  ;;  %v3813_v8 = vmul.f32 %v4722_v39, %v3812_v58  ;;  %v2996_v26 = vadd.f32 %v2956_v30, %v2718_v48 }
 0x2f3   : > { %v4135_v54 = vadd.f32 %v4134_v44, %v4133_v37  ;;  %v7299_v16 = vadd.f32 1.0, %v4724_v60  ;;  %v2409_v19 = vadd.f32 %v2371_v42, %v7703_v61  ;;  %v4726_v6 = vpop.eup %4725  ;;  %v3272_v28 = vpop.f32.mrf.mxu0  ;;  %v7705_v61 = vld [vmem:[#allocation85_spill] sm:$0xff] }
 0x2f4   : > { %4727 = vpow2.f32 %v3432_v32  ;;  %v3814_v18 = vadd.f32 %v4722_v39, %v3813_v8  ;;  %v3306_v46 = vadd.f32 %v3266_v3, %v2996_v26  ;;  %v3825_v62 = vmul.f32 %v4726_v6, %v7283_v22  ;;  %v7330_v22 = vld [vmem:[%s7406_s2] ss:$0 sm:$0xff] }
 0x2f5   : > { %4729 = vrcp.f32 %v7299_v16  ;;  %v2719_v12 = vadd.f32 %v2681_v23, %v2409_v19  ;;  %vm3830_vm12 = vweird.f32 %v4726_v6  ;;  %v3849_v29 = vand.u32 2147483648, %v7299_v16 }
 0x2f6   : > { %v3818_v14 = vsel %vm3817_vm9, %v4722_v39, %v3814_v18  ;;  %v7306_v1 = vadd.f32 %v7025_v11, %v3306_v46  ;;  %v3826_v5 = vsub.f32 1.0, %v3825_v62  ;;  %vm3831_vm13 = vmor %vm3829_vm11, %vm3830_vm12  ;;  %v3847_v48 = vand.u32 2147483647, %v7299_v16 }
 0x2f7   : > { %v3823_v38 = vsel %vm3820_vm10, %v3822_v56, %v3818_v14  ;;  %vm3843_vm1 = vweird.f32 %v7299_v16  ;;  %v3850_v8 = vor.u32 1.1754944e-38, %v3849_v29 }
 0x2f8   : > { %v3946_v51 = vmul.f32 %v3823_v38, %v7235_v27  ;;  %v3374_v25 = vsub.f32 0.0, %v7306_v1  ;;  %v3827_v49 = vmul.f32 %v4726_v6, %v3826_v5  ;;  %vm3848_vm3 = vcmp.eq.f32.partialorder %v3847_v48, 8.507059e+37 }
 0x2f9   : > { %v2959_v52 = vpop.f32.mrf.mxu3  ;;  %v2684_v63 = vpop.f32.mrf.mxu2 }
 0x2fa   : > { %v4728_v50 = vpop.eup %4727  ;;  %v2997_v4 = vadd.f32 %v2959_v52, %v2719_v12  ;;  %v2374_v11 = vpop.f32.mrf.mxu1  ;;  %3978 = vst.msk [vmem:[%s6716_s11 + $0xc0] sm:$0xff] %vm593_vm0, %v3946_v51  ;;  %v4033_v59 = vsel %vm593_vm0, %v3946_v51, 0.0  ;;  %v4081_v41 = vmul.f32 %v3946_v51, %v3946_v51  ;;  %v3434_v13 = vmul.f32 1.442695, %v3374_v25 }
 0x2fb   : > { %v7316_v27 = vadd.f32 1.0, %v4728_v50  ;;  %v4730_v10 = vpop.eup %4729  ;;  %v4034_v36 = vadd.f32 %v4033_v59, %v4032_v33  ;;  %v3828_v40 = vadd.f32 %v4726_v6, %v3827_v49  ;;  %v2410_v37 = vadd.f32 %v2374_v11, %v7704_v31  ;;  %v3275_v59 = vpop.f32.mrf.mxu0 }
 0x2fc   : > { %v3307_v55 = vadd.f32 %v3269_v47, %v2997_v4  ;;  %v4136_v2 = vsel %vm593_vm0, %v4081_v41, 0.0  ;;  %v3839_v3 = vmul.f32 %v4730_v10, %v7299_v16  ;;  %vm3844_vm15 = vweird.f32 %v4730_v10 }
 0x2fd   : > { %4731 = vrcp.f32 %v7316_v27  ;;  %v4137_v15 = vadd.f32 %v4136_v2, %v4135_v54  ;;  %v3832_v43 = vsel %vm3831_vm13, %v4726_v6, %v3828_v40  ;;  %v2720_v24 = vadd.f32 %v2684_v63, %v2410_v37  ;;  %vm3845_vm2 = vmor %vm3843_vm1, %vm3844_vm15 }
 0x2fe   : > { %v3837_v39 = vsel %vm3834_vm14, %v3836_v35, %v3832_v43  ;;  %v3840_v20 = vsub.f32 1.0, %v3839_v3  ;;  %4733 = vpow2.f32 %v3434_v13  ;;  %v7333_v17 = vadd.f32 %v7330_v22, %v3307_v55 }
 0x2ff   : > { %v3947_v0 = vmul.f32 %v3837_v39, %v7257_v9  ;;  %v3861_v38 = vand.u32 2147483647, %v7316_v27  ;;  %v3863_v5 = vand.u32 2147483648, %v7316_v27  ;;  %vm3857_vm5 = vweird.f32 %v7316_v27 }
 0x300   : > { %v3841_v58 = vmul.f32 %v4730_v10, %v3840_v20  ;;  %v3375_v57 = vsub.f32 0.0, %v7333_v17 }
 0x301   : > { %v2962_v30 = vpop.f32.mrf.mxu3  ;;  %3979 = vst.msk [vmem:[%s6716_s11 + $0xc8] sm:$0xff] %vm593_vm0, %v3947_v0  ;;  %v4035_v33 = vsel %vm593_vm0, %v3947_v0, 0.0  ;;  %v4082_v9 = vmul.f32 %v3947_v0, %v3947_v0  ;;  %v2687_v12 = vpop.f32.mrf.mxu2  ;;  %v3864_v13 = vor.u32 1.1754944e-38, %v3863_v5  ;;  %vm3862_vm7 = vcmp.eq.f32.partialorder %v3861_v38, 8.507059e+37 }
 0x302   : > { %v2998_v34 = vadd.f32 %v2962_v30, %v2720_v24  ;;  %v2377_v32 = vpop.f32.mrf.mxu1  ;;  %v4036_v60 = vadd.f32 %v4035_v33, %v4034_v36  ;;  %v3842_v44 = vadd.f32 %v4730_v10, %v3841_v58  ;;  %v3436_v54 = vmul.f32 1.442695, %v3375_v57 }
 0x303   : > { %v4732_v42 = vpop.eup %4731  ;;  %v4138_v23 = vsel %vm593_vm0, %v4082_v9, 0.0  ;;  %v2411_v19 = vadd.f32 %v2377_v32, %v7705_v61 }
 0x304   : > { %v3853_v26 = vmul.f32 %v4732_v42, %v7316_v27  ;;  %v4734_v6 = vpop.eup %4733  ;;  %v4139_v18 = vadd.f32 %v4138_v23, %v4137_v15  ;;  %v3846_v46 = vsel %vm3845_vm2, %v4730_v10, %v3842_v44  ;;  %v3308_v56 = vadd.f32 %v3272_v28, %v2998_v34 }
 0x305   : > { %v3851_v62 = vsel %vm3848_vm3, %v3850_v8, %v3846_v46  ;;  %v7345_v14 = vadd.f32 1.0, %v4734_v6  ;;  %4735 = vpow2.f32 %v3436_v54  ;;  %vm3858_vm4 = vweird.f32 %v4732_v42 }
 0x306   : > { %v3854_v47 = vsub.f32 1.0, %v3853_v26  ;;  %v3948_v16 = vmul.f32 %v3851_v62, %v7270_v21  ;;  %v7351_v51 = vadd.f32 %v7330_v22, %v3308_v56  ;;  %v2721_v25 = vadd.f32 %v2687_v12, %v2411_v19  ;;  %vm3859_vm6 = vmor %vm3857_vm5, %vm3858_vm4 }
 0x307   : > { %4737 = vrcp.f32 %v7345_v14  ;;  %v3875_v24 = vand.u32 2147483647, %v7345_v14  ;;  %vm3871_vm9 = vweird.f32 %v7345_v14 }
 0x308   : > { %v3855_v53 = vmul.f32 %v4732_v42, %v3854_v47  ;;  %3980 = vst.msk [vmem:[%s6716_s11 + $0xd0] sm:$0xff] %vm593_vm0, %v3948_v16  ;;  %v4037_v52 = vsel %vm593_vm0, %v3948_v16, 0.0  ;;  %v4083_v50 = vmul.f32 %v3948_v16, %v3948_v16  ;;  %v3376_v21 = vsub.f32 0.0, %v7351_v51 }
 0x309   : > { %v2965_v49 = vpop.f32.mrf.mxu3  ;;  %v4038_v45 = vadd.f32 %v4037_v52, %v4036_v60  ;;  %vm3876_vm11 = vcmp.eq.f32.partialorder %v3875_v24, 8.507059e+37 }
 0x30a   : > { %v3856_v4 = vadd.f32 %v4732_v42, %v3855_v53  ;;  %v2999_v11 = vadd.f32 %v2965_v49, %v2721_v25  ;;  %v4140_v41 = vsel %vm593_vm0, %v4083_v50, 0.0  ;;  %v3438_v10 = vmul.f32 1.442695, %v3376_v21 }
 0x30b   : > { %v4736_v36 = vpop.eup %4735  ;;  %v4141_v40 = vadd.f32 %v4140_v41, %v4139_v18 }
 0x30c   : > { %v3860_v55 = vsel %vm3859_vm6, %v4732_v42, %v3856_v4  ;;  %v3309_v31 = vadd.f32 %v3275_v59, %v2999_v11  ;;  %v3471_v2 = vadd.f32 1.0, %v4736_v36  ;;  %4739 = vpow2.f32 %v3438_v10 }
 0x30d   : > { %v3865_v37 = vsel %vm3862_vm7, %v3864_v13, %v3860_v55  ;;  %v4738_v35 = vpop.eup %4737 }
 0x30e   : > { %v3949_v3 = vmul.f32 %v3865_v37, %v7287_v7  ;;  %v7362_v27 = vadd.f32 %v7330_v22, %v3309_v31  ;;  %v3867_v63 = vmul.f32 %v4738_v35, %v7345_v14  ;;  %4741 = vrcp.f32 %v3471_v2 }
 0x30f   : > { %v3877_v7 = vand.u32 2147483648, %v7345_v14  ;;  %vm3872_vm8 = vweird.f32 %v4738_v35  ;;  %v3891_v8 = vand.u32 2147483648, %v3471_v2  ;;  %v3889_v26 = vand.u32 2147483647, %v3471_v2 }
 0x310   : > { %3981 = vst.msk [vmem:[%s6716_s11 + $0xd8] sm:$0xff] %vm593_vm0, %v3949_v3  ;;  %v4039_v15 = vsel %vm593_vm0, %v3949_v3, 0.0  ;;  %v4084_v43 = vmul.f32 %v3949_v3, %v3949_v3  ;;  %v3868_v20 = vsub.f32 1.0, %v3867_v63  ;;  %v3377_v29 = vsub.f32 0.0, %v7362_v27  ;;  %vm3873_vm10 = vmor %vm3871_vm9, %vm3872_vm8 }
 0x311   : > { %v4040_v39 = vadd.f32 %v4039_v15, %v4038_v45  ;;  %v3878_v57 = vor.u32 1.1754944e-38, %v3877_v7  ;;  %vm3885_vm13 = vweird.f32 %v3471_v2  ;;  %vm3890_vm15 = vcmp.eq.f32.partialorder %v3889_v26, 8.507059e+37 }
 0x312   : > { %v4142_v0 = vsel %vm593_vm0, %v4084_v43, 0.0  ;;  %v4740_v22 = vpop.eup %4739  ;;  %v3869_v58 = vmul.f32 %v4738_v35, %v3868_v20  ;;  %v3440_v48 = vmul.f32 1.442695, %v3377_v29  ;;  %vm4055_vm9 = vcmask 253952  }
 0x313   : > { %v4143_v28 = vadd.f32 %v4142_v0, %v4141_v40  ;;  %v3472_v30 = vadd.f32 1.0, %v4740_v22 }
 0x314   : > { %v4742_v33 = vpop.eup %4741  ;;  %v3870_v9 = vadd.f32 %v4738_v35, %v3869_v58  ;;  %4743 = vpow2.f32 %v3440_v48 }
 0x315   : > { %v3881_v34 = vmul.f32 %v4742_v33, %v3471_v2  ;;  %4745 = vrcp.f32 %v3472_v30  ;;  %vm3886_vm12 = vweird.f32 %v4742_v33  ;;  %v3905_v53 = vand.u32 2147483648, %v3472_v30 }
 0x316   : > { %v3874_v32 = vsel %vm3873_vm10, %v4738_v35, %v3870_v9  ;;  %vm3887_vm14 = vmor %vm3885_vm13, %vm3886_vm12  ;;  %v3903_v52 = vand.u32 2147483647, %v3472_v30  ;;  %vm3899_vm2 = vweird.f32 %v3472_v30 }
 0x317   : > { %v3879_v42 = vsel %vm3876_vm11, %v3878_v57, %v3874_v32  ;;  %v3882_v60 = vsub.f32 1.0, %v3881_v34  ;;  %v3906_v59 = vor.u32 1.1754944e-38, %v3905_v53 }
 0x318   : > { %v3950_v44 = vmul.f32 %v3879_v42, %v7306_v1  ;;  %v3892_v1 = vor.u32 1.1754944e-38, %v3891_v8  ;;  %vm3904_vm4 = vcmp.eq.f32.partialorder %v3903_v52, 8.507059e+37 }
 0x319   : > { %v3883_v23 = vmul.f32 %v4742_v33, %v3882_v60 }
 0x31a   : > { %v4744_v54 = vpop.eup %4743  ;;  %3982 = vst.msk [vmem:[%s6716_s11 + $0xe0] sm:$0xff] %vm593_vm0, %v3950_v44  ;;  %v4041_v61 = vsel %vm593_vm0, %v3950_v44, 0.0  ;;  %v4085_v19 = vmul.f32 %v3950_v44, %v3950_v44 }
 0x31b   : > { %v4746_v6 = vpop.eup %4745  ;;  %v4042_v18 = vadd.f32 %v4041_v61, %v4040_v39  ;;  %v3884_v46 = vadd.f32 %v4742_v33, %v3883_v23  ;;  %v3473_v56 = vadd.f32 1.0, %v4744_v54 }
 0x31c   : > { %v4144_v62 = vsel %vm593_vm0, %v4085_v19, 0.0  ;;  %v3895_v47 = vmul.f32 %v4746_v6, %v3472_v30  ;;  %vm3900_vm1 = vweird.f32 %v4746_v6 }
 0x31d   : > { %v4145_v14 = vadd.f32 %v4144_v62, %v4143_v28  ;;  %v3888_v16 = vsel %vm3887_vm14, %v4742_v33, %v3884_v46  ;;  %4747 = vrcp.f32 %v3473_v56  ;;  %vm3901_vm3 = vmor %vm3899_vm2, %vm3900_vm1  ;;  %v3917_v55 = vand.u32 2147483647, %v3473_v56 }
 0x31e   : > { %v3893_v38 = vsel %vm3890_vm15, %v3892_v1, %v3888_v16  ;;  %v3896_v5 = vsub.f32 1.0, %v3895_v47  ;;  %v3919_v31 = vand.u32 2147483648, %v3473_v56  ;;  %vm3913_vm6 = vweird.f32 %v3473_v56 }
 0x31f   : > { %v3951_v12 = vmul.f32 %v3893_v38, %v7333_v17  ;;  %vm3918_vm8 = vcmp.eq.f32.partialorder %v3917_v55, 8.507059e+37 }
 0x320   : > { %v3897_v25 = vmul.f32 %v4746_v6, %v3896_v5  ;;  %v3920_v39 = vor.u32 1.1754944e-38, %v3919_v31 }
 0x321   : > { %3983 = vst.msk [vmem:[%s6716_s11 + $0xe8] sm:$0xff] %vm593_vm0, %v3951_v12  ;;  %v4043_v50 = vsel %vm593_vm0, %v3951_v12, 0.0  ;;  %v4086_v21 = vmul.f32 %v3951_v12, %v3951_v12 }
 0x322   : > { %v4044_v49 = vadd.f32 %v4043_v50, %v4042_v18  ;;  %v3898_v45 = vadd.f32 %v4746_v6, %v3897_v25 }
 0x323   : > { %v4748_v4 = vpop.eup %4747  ;;  %v4146_v11 = vsel %vm593_vm0, %v4086_v21, 0.0 }
 0x324   : > { %v4147_v41 = vadd.f32 %v4146_v11, %v4145_v14  ;;  %v3902_v17 = vsel %vm3901_vm3, %v4746_v6, %v3898_v45  ;;  %v3909_v13 = vmul.f32 %v4748_v4, %v3473_v56  ;;  %vm3914_vm5 = vweird.f32 %v4748_v4 }
 0x325   : > { %v3907_v10 = vsel %vm3904_vm4, %v3906_v59, %v3902_v17  ;;  %vm3915_vm7 = vmor %vm3913_vm6, %vm3914_vm5 }
 0x326   : > { %v3952_v36 = vmul.f32 %v3907_v10, %v7351_v51  ;;  %v3910_v40 = vsub.f32 1.0, %v3909_v13 }
 0x328   : > { %3984 = vst.msk [vmem:[%s6716_s11 + $0xf0] sm:$0xff] %vm593_vm0, %v3952_v36  ;;  %v4045_v37 = vsel %vm593_vm0, %v3952_v36, 0.0  ;;  %v4087_v2 = vmul.f32 %v3952_v36, %v3952_v36  ;;  %v3911_v35 = vmul.f32 %v4748_v4, %v3910_v40 }
 0x329   : > { %v4046_v3 = vadd.f32 %v4045_v37, %v4044_v49 }
 0x32a   : > { %v4148_v63 = vsel %vm593_vm0, %v4087_v2, 0.0  ;;  %v3912_v15 = vadd.f32 %v4748_v4, %v3911_v35 }
 0x32b   : > { %v4149_v43 = vadd.f32 %v4148_v63, %v4147_v41 }
 0x32c   : > { %v3916_v51 = vsel %vm3915_vm7, %v4748_v4, %v3912_v15 }
 0x32d   : > { %v3921_v20 = vsel %vm3918_vm8, %v3920_v39, %v3916_v51 }
 0x32e   : > { %v3953_v29 = vmul.f32 %v3921_v20, %v7362_v27 }
 0x330   : > { %3985 = vst.msk [vmem:[%s6716_s11 + $0xf8] sm:$0xff] %vm593_vm0, %v3953_v29  ;;  %v4047_v0 = vsel %vm593_vm0, %v3953_v29, 0.0  ;;  %v4088_v24 = vmul.f32 %v3953_v29, %v3953_v29 }
 0x331   : > { %v4048_v7 = vadd.f32 %v4047_v0, %v4046_v3 }
 0x332   : > { %v4150_v22 = vsel %vm593_vm0, %v4088_v24, 0.0 }
 0x333   : > { %v4049_v28 = vrot.slane %v4048_v7, 4  ;;  %v4151_v58 = vadd.f32 %v4150_v22, %v4149_v43 }
 0x335   : > { %v4050_v48 = vadd.f32 %v4049_v28, %v4048_v7  ;;  %v4152_v30 = vrot.slane %v4151_v58, 4 }
 0x337   : > { %v4051_v33 = vrot.slane %v4050_v48, 2  ;;  %v4153_v9 = vadd.f32 %v4152_v30, %v4151_v58 }
 0x339   : > { %v4052_v57 = vadd.f32 %v4051_v33, %v4050_v48  ;;  %v4154_v34 = vrot.slane %v4153_v9, 2 }
 0x33b   : > { %v4053_v32 = vrot.slane %v4052_v57, 1  ;;  %v4155_v27 = vadd.f32 %v4154_v34, %v4153_v9 }
 0x33d   : > { %v4054_v42 = vadd.f32 %v4053_v32, %v4052_v57  ;;  %v4156_v60 = vrot.slane %v4155_v27, 1 }
 0x33f   : > { %4056 = vst.msk [vmem:[%s292_s17] sm:$0x1] %vm4055_vm9, %v4054_v42  ;;  %v4157_v44 = vadd.f32 %v4156_v60, %v4155_v27 }
 0x341   : > { %4158 = vst.msk [vmem:[%s295_s21] sm:$0x1] %vm4055_vm9, %v4157_v44 }
 0x342 PF: > { %s18_s24 = sadd.s32 1, %s4759_s24  }
 0x343   : > { %p15_p4 = scmp.ge.s32.totalorder %s18_s24, 4  }
 0x345   :  { %17 = sbr.rel (!%p15_p4) target bundleno = 1 (0x1), region = 102 }

</bundles_post_ra>
